<compile_context>
chip_gen: v5e
topology: v5e:2x2
jax: 0.10.0
libtpu: 0.0.40
codegen_flags: <defaults>
</compile_context>

<pallas_src>
import jax
import jax.numpy as jnp
from jax.experimental import pallas as pl
from jax.experimental.pallas import tpu as pltpu


def make_fused_kernel(S, B, H, L):
    """Build a kernel for L fused LSTM layers over an S-step sequence.

    Kernel args: x_flat_ref, (wx_ref, wh_ref, b_ref) * L, out_ref
      x_flat: (S*B, IN)        packed layer-0 input, all timesteps
      wx_l:   (IN or H, 4H)    packed input->gates weights, order [i,f,g,o]
      wh_l:   (H, 4H)          packed hidden->gates weights
      b_l:    (1, 4H)          fused bias
      out:    (B, S*H)         lane-dense: columns [t*H:(t+1)*H] = h^{L-1}_t
    """

    def kernel(*refs):
        x_ref = refs[0]
        out_ref = refs[-1]
        layer_refs = [refs[1 + 3 * l: 1 + 3 * (l + 1)] for l in range(L)]

        # ---- hoisted layer-0 input projection (all timesteps at once) ----
        wx0_ref, wh0_ref, b0_ref = layer_refs[0]
        xproj = jnp.dot(x_ref[...], wx0_ref[...],
                        preferred_element_type=jnp.float32) + b0_ref[...]

        # ---- load weights once; they stay in vregs/VMEM across the loop ----
        whs = [layer_refs[l][1][...] for l in range(L)]
        wxs = [None] + [layer_refs[l][0][...] for l in range(1, L)]
        bs = [None] + [layer_refs[l][2][...] for l in range(1, L)]

        # Lane mask selecting the g (tanh) block of the packed pre-activation.
        lane = jax.lax.broadcasted_iota(jnp.int32, (B, 4 * H), 1)
        g_mask = (lane >= 2 * H) & (lane < 3 * H)

        def cell(pre, c_prev):
            # Nonlinearities computed over the full (B, 4H) lane-dense tile;
            # the g block is selected with the precomputed lane mask.
            act = jnp.where(g_mask, jnp.tanh(pre), jax.nn.sigmoid(pre))
            i_t = act[:, 0:H]
            f_t = act[:, H:2 * H]
            g_t = act[:, 2 * H:3 * H]
            o_t = act[:, 3 * H:4 * H]
            c_new = f_t * c_prev + i_t * g_t
            h_new = o_t * jnp.tanh(c_new)
            return h_new, c_new

        h = [jnp.zeros((B, H), jnp.float32) for _ in range(L)]
        c = [jnp.zeros((B, H), jnp.float32) for _ in range(L)]

        outs = []
        for t in range(S):  # static unroll: S is small and known at trace time
            # layer 0: x-side matmul already done (xproj); only h @ Wh here.
            pre0 = xproj[t * B:(t + 1) * B, :] + jnp.dot(
                h[0], whs[0], preferred_element_type=jnp.float32)
            h[0], c[0] = cell(pre0, c[0])
            # deeper layers: input is previous layer's fresh h_t.
            for l in range(1, L):
                pre = (jnp.dot(h[l - 1], wxs[l],
                               preferred_element_type=jnp.float32)
                       + jnp.dot(h[l], whs[l],
                                 preferred_element_type=jnp.float32)
                       + bs[l])
                h[l], c[l] = cell(pre, c[l])
            outs.append(h[L - 1])

        # Single lane-dense writeback: (B, S*H) with S*H = 256.
        out_ref[...] = jnp.concatenate(outs, axis=-1)

    return kernel


def my_lstm_forward(X, params):
    """Fused multi-layer forward.

    X: (S, B=hidden, IN). Returns (S, B, H) = last layer's h per timestep.
    """
    S, B, IN = X.shape
    H = params[0][1].shape[0]          # wh: (H, 4H)
    L = len(params)

    x_flat = X.reshape(S * B, IN).astype(jnp.float32)

    flat_weights = []
    in_specs = [pl.BlockSpec((S * B, IN), lambda i: (0, 0))]
    for (wx, wh, b) in params:
        flat_weights += [wx, wh, b]
        in_specs += [
            pl.BlockSpec(wx.shape, lambda i: (0, 0)),
            pl.BlockSpec(wh.shape, lambda i: (0, 0)),
            pl.BlockSpec(b.shape, lambda i: (0, 0)),
        ]

    out = pl.pallas_call(
        make_fused_kernel(S, B, H, L),
        out_shape=jax.ShapeDtypeStruct((B, S * H), jnp.float32),
        grid_spec=pltpu.PrefetchScalarGridSpec(
            num_scalar_prefetch=0,
            grid=(1,),                              # single VMEM-resident step
            in_specs=in_specs,
            out_specs=pl.BlockSpec((B, S * H), lambda i: (0, 0)),
        ),
        compiler_params=pltpu.CompilerParams(
            dimension_semantics=("arbitrary",)),
    )(x_flat, *flat_weights)

    # (B, S*H) -> (B, S, H) -> (S, B, H)
    return out.reshape(B, S, H).transpose(1, 0, 2)


# ---------------- deterministic parameter construction ----------------

def make_params(key, input_size, hidden_size, layers):
    """Packed gate order [i, f, g, o]: Wx:(IN_l, 4H), Wh:(H, 4H), b:(1, 4H).
    The *_i / *_h Linear biases are fused (mathematically identical)."""
    params = []
    for l in range(layers):
        in_dim = input_size if l == 0 else hidden_size
        key, k1, k2, k3 = jax.random.split(key, 4)
        bound_x = 1.0 / jnp.sqrt(in_dim)
        bound_h = 1.0 / jnp.sqrt(hidden_size)
        wx = jax.random.uniform(k1, (in_dim, 4 * hidden_size), jnp.float32,
                                -bound_x, bound_x)
        wh = jax.random.uniform(k2, (hidden_size, 4 * hidden_size), jnp.float32,
                                -bound_h, bound_h)
        b = jax.random.uniform(k3, (1, 4 * hidden_size), jnp.float32,
                               -bound_x, bound_x)
        params.append((wx, wh, b))
    return params


# ---------------- pure-JAX reference (mirrors the PyTorch loop order) -------

def reference_forward(X, params):
    S, B, _ = X.shape
    L = len(params)
    H = params[0][1].shape[0]
    h = [jnp.zeros((B, H), jnp.float32) for _ in range(L)]
    c = [jnp.zeros((B, H), jnp.float32) for _ in range(L)]
    outs = []
    for t in range(S):
        x = X[t]
        for l, (wx, wh, b) in enumerate(params):
            pre = x @ wx + h[l] @ wh + b            # (B, 4H)
            i_t = jax.nn.sigmoid(pre[:, 0:H])
            f_t = jax.nn.sigmoid(pre[:, H:2 * H])
            g_t = jnp.tanh(pre[:, 2 * H:3 * H])
            o_t = jax.nn.sigmoid(pre[:, 3 * H:4 * H])
            c[l] = f_t * c[l] + i_t * g_t
            h[l] = o_t * jnp.tanh(c[l])
            x = h[l]
        outs.append(h[-1])
    return jnp.stack(outs)


if __name__ == "__main__":
    input_size = 16
    hidden_size = 32   # also the row ("batch") dim, as forced by the PyTorch code
    seq = 8
    layers = 2

    key = jax.random.PRNGKey(0)
    key, kx = jax.random.split(key)
    # X: (seq, hidden_size, input_size) — iterating X in PyTorch yields
    # (hidden_size, input_size) matrices.
    X = jax.random.normal(kx, (seq, hidden_size, input_size), jnp.float32)
    params = make_params(key, input_size, hidden_size, layers)

    out = my_lstm_forward(X, params)
    out = jax.block_until_ready(out)

    ref = reference_forward(X, params)
    assert out.shape == (seq, hidden_size, hidden_size)
    assert jnp.allclose(out, ref, rtol=1e-5, atol=1e-5), "mismatch vs reference"

    print("KERNEL_OK")
</pallas_src>

<mosaic_0001>
module attributes {stable_mosaic.version = 11 : i64} {
  func.func @kernel(%arg0: i32, %arg1: memref<256x16xf32, #tpu.memory_space<vmem>>, %arg2: memref<16x128xf32, #tpu.memory_space<vmem>>, %arg3: memref<32x128xf32, #tpu.memory_space<vmem>>, %arg4: memref<1x128xf32, #tpu.memory_space<vmem>>, %arg5: memref<32x128xf32, #tpu.memory_space<vmem>>, %arg6: memref<32x128xf32, #tpu.memory_space<vmem>>, %arg7: memref<1x128xf32, #tpu.memory_space<vmem>>, %arg8: memref<32x256xf32, #tpu.memory_space<vmem>>) attributes {dimension_semantics = [#tpu.dimension_semantics<arbitrary>], iteration_bounds = array<i64: 1>, scalar_prefetch = 0 : i64, scratch_operands = 0 : i64, tpu.core_type = #tpu.core_type<tc>, window_params = [{pipeline_mode = #tpu.pipeline_mode<synchronous>, transform_indices = @transform_0, window_bounds = array<i64: 256, 16>}, {pipeline_mode = #tpu.pipeline_mode<synchronous>, transform_indices = @transform_1, window_bounds = array<i64: 16, 128>}, {pipeline_mode = #tpu.pipeline_mode<synchronous>, transform_indices = @transform_2, window_bounds = array<i64: 32, 128>}, {pipeline_mode = #tpu.pipeline_mode<synchronous>, transform_indices = @transform_3, window_bounds = array<i64: 1, 128>}, {pipeline_mode = #tpu.pipeline_mode<synchronous>, transform_indices = @transform_4, window_bounds = array<i64: 32, 128>}, {pipeline_mode = #tpu.pipeline_mode<synchronous>, transform_indices = @transform_5, window_bounds = array<i64: 32, 128>}, {pipeline_mode = #tpu.pipeline_mode<synchronous>, transform_indices = @transform_6, window_bounds = array<i64: 1, 128>}, {pipeline_mode = #tpu.pipeline_mode<synchronous>, transform_indices = @transform_7, window_bounds = array<i64: 32, 256>}]} {
    %c0 = arith.constant 0 : index
    %c0_0 = arith.constant 0 : index
    %0 = vector.load %arg1[%c0, %c0_0] : memref<256x16xf32, #tpu.memory_space<vmem>>, vector<256x16xf32>
    %c0_1 = arith.constant 0 : index
    %c0_2 = arith.constant 0 : index
    %1 = vector.load %arg2[%c0_1, %c0_2] : memref<16x128xf32, #tpu.memory_space<vmem>>, vector<16x128xf32>
    %cst = arith.constant dense<0.000000e+00> : vector<256x128xf32>
    %2 = tpu.matmul %0, %1, %cst {dimension_numbers = #tpu.dot_dimension_numbers<[1], [0], [0], [1], [0, 0, 1, 1], [], []>} : vector<256x16xf32>, vector<16x128xf32>, vector<256x128xf32> -> vector<256x128xf32>
    %c0_3 = arith.constant 0 : index
    %c0_4 = arith.constant 0 : index
    %3 = vector.load %arg4[%c0_3, %c0_4] : memref<1x128xf32, #tpu.memory_space<vmem>>, vector<1x128xf32>
    %4 = vector.broadcast %3 : vector<1x128xf32> to vector<256x128xf32>
    %5 = arith.addf %2, %4 : vector<256x128xf32>
    %c0_5 = arith.constant 0 : index
    %c0_6 = arith.constant 0 : index
    %6 = vector.load %arg3[%c0_5, %c0_6] : memref<32x128xf32, #tpu.memory_space<vmem>>, vector<32x128xf32>
    %c0_7 = arith.constant 0 : index
    %c0_8 = arith.constant 0 : index
    %7 = vector.load %arg6[%c0_7, %c0_8] : memref<32x128xf32, #tpu.memory_space<vmem>>, vector<32x128xf32>
    %c0_9 = arith.constant 0 : index
    %c0_10 = arith.constant 0 : index
    %8 = vector.load %arg5[%c0_9, %c0_10] : memref<32x128xf32, #tpu.memory_space<vmem>>, vector<32x128xf32>
    %c0_11 = arith.constant 0 : index
    %c0_12 = arith.constant 0 : index
    %9 = vector.load %arg7[%c0_11, %c0_12] : memref<1x128xf32, #tpu.memory_space<vmem>>, vector<1x128xf32>
    %10 = tpu.iota {dimensions = array<i32: 1>} : vector<32x128xi32>
    %c64_i32 = arith.constant 64 : i32
    %11 = vector.broadcast %c64_i32 : i32 to vector<32x128xi32>
    %12 = arith.cmpi sge, %10, %11 : vector<32x128xi32>
    %c96_i32 = arith.constant 96 : i32
    %13 = vector.broadcast %c96_i32 : i32 to vector<32x128xi32>
    %14 = arith.cmpi slt, %10, %13 : vector<32x128xi32>
    %15 = arith.andi %12, %14 : vector<32x128xi1>
    %cst_13 = arith.constant 0.000000e+00 : f32
    %16 = vector.broadcast %cst_13 : f32 to vector<32x32xf32>
    %cst_14 = arith.constant 0.000000e+00 : f32
    %17 = vector.broadcast %cst_14 : f32 to vector<32x32xf32>
    %cst_15 = arith.constant 0.000000e+00 : f32
    %18 = vector.broadcast %cst_15 : f32 to vector<32x32xf32>
    %cst_16 = arith.constant 0.000000e+00 : f32
    %19 = vector.broadcast %cst_16 : f32 to vector<32x32xf32>
    %20 = vector.extract_strided_slice %5 {offsets = [0, 0], sizes = [32, 128], strides = [1, 1]} : vector<256x128xf32> to vector<32x128xf32>
    %cst_17 = arith.constant dense<0.000000e+00> : vector<32x128xf32>
    %21 = tpu.matmul %16, %6, %cst_17 {dimension_numbers = #tpu.dot_dimension_numbers<[1], [0], [0], [1], [0, 0, 1, 1], [], []>} : vector<32x32xf32>, vector<32x128xf32>, vector<32x128xf32> -> vector<32x128xf32>
    %22 = arith.addf %20, %21 : vector<32x128xf32>
    %23 = math.tanh %22 : vector<32x128xf32>
    %24 = arith.negf %22 : vector<32x128xf32>
    %25 = math.exp %24 : vector<32x128xf32>
    %cst_18 = arith.constant 1.000000e+00 : f32
    %26 = vector.broadcast %cst_18 : f32 to vector<32x128xf32>
    %27 = arith.addf %26, %25 : vector<32x128xf32>
    %28 = arith.divf %26, %27 : vector<32x128xf32>
    %29 = arith.select %15, %23, %28 : vector<32x128xi1>, vector<32x128xf32>
    %30 = vector.extract_strided_slice %29 {offsets = [0, 0], sizes = [32, 32], strides = [1, 1]} : vector<32x128xf32> to vector<32x32xf32>
    %31 = vector.extract_strided_slice %29 {offsets = [0, 32], sizes = [32, 32], strides = [1, 1]} : vector<32x128xf32> to vector<32x32xf32>
    %32 = vector.extract_strided_slice %29 {offsets = [0, 64], sizes = [32, 32], strides = [1, 1]} : vector<32x128xf32> to vector<32x32xf32>
    %33 = vector.extract_strided_slice %29 {offsets = [0, 96], sizes = [32, 32], strides = [1, 1]} : vector<32x128xf32> to vector<32x32xf32>
    %34 = arith.mulf %31, %18 : vector<32x32xf32>
    %35 = arith.mulf %30, %32 : vector<32x32xf32>
    %36 = arith.addf %34, %35 : vector<32x32xf32>
    %37 = math.tanh %36 : vector<32x32xf32>
    %38 = arith.mulf %33, %37 : vector<32x32xf32>
    %cst_19 = arith.constant dense<0.000000e+00> : vector<32x128xf32>
    %39 = tpu.matmul %38, %8, %cst_19 {dimension_numbers = #tpu.dot_dimension_numbers<[1], [0], [0], [1], [0, 0, 1, 1], [], []>} : vector<32x32xf32>, vector<32x128xf32>, vector<32x128xf32> -> vector<32x128xf32>
    %cst_20 = arith.constant dense<0.000000e+00> : vector<32x128xf32>
    %40 = tpu.matmul %17, %7, %cst_20 {dimension_numbers = #tpu.dot_dimension_numbers<[1], [0], [0], [1], [0, 0, 1, 1], [], []>} : vector<32x32xf32>, vector<32x128xf32>, vector<32x128xf32> -> vector<32x128xf32>
    %41 = arith.addf %39, %40 : vector<32x128xf32>
    %42 = vector.broadcast %9 : vector<1x128xf32> to vector<32x128xf32>
    %43 = arith.addf %41, %42 : vector<32x128xf32>
    %44 = math.tanh %43 : vector<32x128xf32>
    %45 = arith.negf %43 : vector<32x128xf32>
    %46 = math.exp %45 : vector<32x128xf32>
    %cst_21 = arith.constant 1.000000e+00 : f32
    %47 = vector.broadcast %cst_21 : f32 to vector<32x128xf32>
    %48 = arith.addf %47, %46 : vector<32x128xf32>
    %49 = arith.divf %47, %48 : vector<32x128xf32>
    %50 = arith.select %15, %44, %49 : vector<32x128xi1>, vector<32x128xf32>
    %51 = vector.extract_strided_slice %50 {offsets = [0, 0], sizes = [32, 32], strides = [1, 1]} : vector<32x128xf32> to vector<32x32xf32>
    %52 = vector.extract_strided_slice %50 {offsets = [0, 32], sizes = [32, 32], strides = [1, 1]} : vector<32x128xf32> to vector<32x32xf32>
    %53 = vector.extract_strided_slice %50 {offsets = [0, 64], sizes = [32, 32], strides = [1, 1]} : vector<32x128xf32> to vector<32x32xf32>
    %54 = vector.extract_strided_slice %50 {offsets = [0, 96], sizes = [32, 32], strides = [1, 1]} : vector<32x128xf32> to vector<32x32xf32>
    %55 = arith.mulf %52, %19 : vector<32x32xf32>
    %56 = arith.mulf %51, %53 : vector<32x32xf32>
    %57 = arith.addf %55, %56 : vector<32x32xf32>
    %58 = math.tanh %57 : vector<32x32xf32>
    %59 = arith.mulf %54, %58 : vector<32x32xf32>
    %60 = vector.extract_strided_slice %5 {offsets = [32, 0], sizes = [32, 128], strides = [1, 1]} : vector<256x128xf32> to vector<32x128xf32>
    %cst_22 = arith.constant dense<0.000000e+00> : vector<32x128xf32>
    %61 = tpu.matmul %38, %6, %cst_22 {dimension_numbers = #tpu.dot_dimension_numbers<[1], [0], [0], [1], [0, 0, 1, 1], [], []>} : vector<32x32xf32>, vector<32x128xf32>, vector<32x128xf32> -> vector<32x128xf32>
    %62 = arith.addf %60, %61 : vector<32x128xf32>
    %63 = math.tanh %62 : vector<32x128xf32>
    %64 = arith.negf %62 : vector<32x128xf32>
    %65 = math.exp %64 : vector<32x128xf32>
    %cst_23 = arith.constant 1.000000e+00 : f32
    %66 = vector.broadcast %cst_23 : f32 to vector<32x128xf32>
    %67 = arith.addf %66, %65 : vector<32x128xf32>
    %68 = arith.divf %66, %67 : vector<32x128xf32>
    %69 = arith.select %15, %63, %68 : vector<32x128xi1>, vector<32x128xf32>
    %70 = vector.extract_strided_slice %69 {offsets = [0, 0], sizes = [32, 32], strides = [1, 1]} : vector<32x128xf32> to vector<32x32xf32>
    %71 = vector.extract_strided_slice %69 {offsets = [0, 32], sizes = [32, 32], strides = [1, 1]} : vector<32x128xf32> to vector<32x32xf32>
    %72 = vector.extract_strided_slice %69 {offsets = [0, 64], sizes = [32, 32], strides = [1, 1]} : vector<32x128xf32> to vector<32x32xf32>
    %73 = vector.extract_strided_slice %69 {offsets = [0, 96], sizes = [32, 32], strides = [1, 1]} : vector<32x128xf32> to vector<32x32xf32>
    %74 = arith.mulf %71, %36 : vector<32x32xf32>
    %75 = arith.mulf %70, %72 : vector<32x32xf32>
    %76 = arith.addf %74, %75 : vector<32x32xf32>
    %77 = math.tanh %76 : vector<32x32xf32>
    %78 = arith.mulf %73, %77 : vector<32x32xf32>
    %cst_24 = arith.constant dense<0.000000e+00> : vector<32x128xf32>
    %79 = tpu.matmul %78, %8, %cst_24 {dimension_numbers = #tpu.dot_dimension_numbers<[1], [0], [0], [1], [0, 0, 1, 1], [], []>} : vector<32x32xf32>, vector<32x128xf32>, vector<32x128xf32> -> vector<32x128xf32>
    %cst_25 = arith.constant dense<0.000000e+00> : vector<32x128xf32>
    %80 = tpu.matmul %59, %7, %cst_25 {dimension_numbers = #tpu.dot_dimension_numbers<[1], [0], [0], [1], [0, 0, 1, 1], [], []>} : vector<32x32xf32>, vector<32x128xf32>, vector<32x128xf32> -> vector<32x128xf32>
    %81 = arith.addf %79, %80 : vector<32x128xf32>
    %82 = vector.broadcast %9 : vector<1x128xf32> to vector<32x128xf32>
    %83 = arith.addf %81, %82 : vector<32x128xf32>
    %84 = math.tanh %83 : vector<32x128xf32>
    %85 = arith.negf %83 : vector<32x128xf32>
    %86 = math.exp %85 : vector<32x128xf32>
    %cst_26 = arith.constant 1.000000e+00 : f32
    %87 = vector.broadcast %cst_26 : f32 to vector<32x128xf32>
    %88 = arith.addf %87, %86 : vector<32x128xf32>
    %89 = arith.divf %87, %88 : vector<32x128xf32>
    %90 = arith.select %15, %84, %89 : vector<32x128xi1>, vector<32x128xf32>
    %91 = vector.extract_strided_slice %90 {offsets = [0, 0], sizes = [32, 32], strides = [1, 1]} : vector<32x128xf32> to vector<32x32xf32>
    %92 = vector.extract_strided_slice %90 {offsets = [0, 32], sizes = [32, 32], strides = [1, 1]} : vector<32x128xf32> to vector<32x32xf32>
    %93 = vector.extract_strided_slice %90 {offsets = [0, 64], sizes = [32, 32], strides = [1, 1]} : vector<32x128xf32> to vector<32x32xf32>
    %94 = vector.extract_strided_slice %90 {offsets = [0, 96], sizes = [32, 32], strides = [1, 1]} : vector<32x128xf32> to vector<32x32xf32>
    %95 = arith.mulf %92, %57 : vector<32x32xf32>
    %96 = arith.mulf %91, %93 : vector<32x32xf32>
    %97 = arith.addf %95, %96 : vector<32x32xf32>
    %98 = math.tanh %97 : vector<32x32xf32>
    %99 = arith.mulf %94, %98 : vector<32x32xf32>
    %100 = vector.extract_strided_slice %5 {offsets = [64, 0], sizes = [32, 128], strides = [1, 1]} : vector<256x128xf32> to vector<32x128xf32>
    %cst_27 = arith.constant dense<0.000000e+00> : vector<32x128xf32>
    %101 = tpu.matmul %78, %6, %cst_27 {dimension_numbers = #tpu.dot_dimension_numbers<[1], [0], [0], [1], [0, 0, 1, 1], [], []>} : vector<32x32xf32>, vector<32x128xf32>, vector<32x128xf32> -> vector<32x128xf32>
    %102 = arith.addf %100, %101 : vector<32x128xf32>
    %103 = math.tanh %102 : vector<32x128xf32>
    %104 = arith.negf %102 : vector<32x128xf32>
    %105 = math.exp %104 : vector<32x128xf32>
    %cst_28 = arith.constant 1.000000e+00 : f32
    %106 = vector.broadcast %cst_28 : f32 to vector<32x128xf32>
    %107 = arith.addf %106, %105 : vector<32x128xf32>
    %108 = arith.divf %106, %107 : vector<32x128xf32>
    %109 = arith.select %15, %103, %108 : vector<32x128xi1>, vector<32x128xf32>
    %110 = vector.extract_strided_slice %109 {offsets = [0, 0], sizes = [32, 32], strides = [1, 1]} : vector<32x128xf32> to vector<32x32xf32>
    %111 = vector.extract_strided_slice %109 {offsets = [0, 32], sizes = [32, 32], strides = [1, 1]} : vector<32x128xf32> to vector<32x32xf32>
    %112 = vector.extract_strided_slice %109 {offsets = [0, 64], sizes = [32, 32], strides = [1, 1]} : vector<32x128xf32> to vector<32x32xf32>
    %113 = vector.extract_strided_slice %109 {offsets = [0, 96], sizes = [32, 32], strides = [1, 1]} : vector<32x128xf32> to vector<32x32xf32>
    %114 = arith.mulf %111, %76 : vector<32x32xf32>
    %115 = arith.mulf %110, %112 : vector<32x32xf32>
    %116 = arith.addf %114, %115 : vector<32x32xf32>
    %117 = math.tanh %116 : vector<32x32xf32>
    %118 = arith.mulf %113, %117 : vector<32x32xf32>
    %cst_29 = arith.constant dense<0.000000e+00> : vector<32x128xf32>
    %119 = tpu.matmul %118, %8, %cst_29 {dimension_numbers = #tpu.dot_dimension_numbers<[1], [0], [0], [1], [0, 0, 1, 1], [], []>} : vector<32x32xf32>, vector<32x128xf32>, vector<32x128xf32> -> vector<32x128xf32>
    %cst_30 = arith.constant dense<0.000000e+00> : vector<32x128xf32>
    %120 = tpu.matmul %99, %7, %cst_30 {dimension_numbers = #tpu.dot_dimension_numbers<[1], [0], [0], [1], [0, 0, 1, 1], [], []>} : vector<32x32xf32>, vector<32x128xf32>, vector<32x128xf32> -> vector<32x128xf32>
    %121 = arith.addf %119, %120 : vector<32x128xf32>
    %122 = vector.broadcast %9 : vector<1x128xf32> to vector<32x128xf32>
    %123 = arith.addf %121, %122 : vector<32x128xf32>
    %124 = math.tanh %123 : vector<32x128xf32>
    %125 = arith.negf %123 : vector<32x128xf32>
    %126 = math.exp %125 : vector<32x128xf32>
    %cst_31 = arith.constant 1.000000e+00 : f32
    %127 = vector.broadcast %cst_31 : f32 to vector<32x128xf32>
    %128 = arith.addf %127, %126 : vector<32x128xf32>
    %129 = arith.divf %127, %128 : vector<32x128xf32>
    %130 = arith.select %15, %124, %129 : vector<32x128xi1>, vector<32x128xf32>
    %131 = vector.extract_strided_slice %130 {offsets = [0, 0], sizes = [32, 32], strides = [1, 1]} : vector<32x128xf32> to vector<32x32xf32>
    %132 = vector.extract_strided_slice %130 {offsets = [0, 32], sizes = [32, 32], strides = [1, 1]} : vector<32x128xf32> to vector<32x32xf32>
    %133 = vector.extract_strided_slice %130 {offsets = [0, 64], sizes = [32, 32], strides = [1, 1]} : vector<32x128xf32> to vector<32x32xf32>
    %134 = vector.extract_strided_slice %130 {offsets = [0, 96], sizes = [32, 32], strides = [1, 1]} : vector<32x128xf32> to vector<32x32xf32>
    %135 = arith.mulf %132, %97 : vector<32x32xf32>
    %136 = arith.mulf %131, %133 : vector<32x32xf32>
    %137 = arith.addf %135, %136 : vector<32x32xf32>
    %138 = math.tanh %137 : vector<32x32xf32>
    %139 = arith.mulf %134, %138 : vector<32x32xf32>
    %140 = vector.extract_strided_slice %5 {offsets = [96, 0], sizes = [32, 128], strides = [1, 1]} : vector<256x128xf32> to vector<32x128xf32>
    %cst_32 = arith.constant dense<0.000000e+00> : vector<32x128xf32>
    %141 = tpu.matmul %118, %6, %cst_32 {dimension_numbers = #tpu.dot_dimension_numbers<[1], [0], [0], [1], [0, 0, 1, 1], [], []>} : vector<32x32xf32>, vector<32x128xf32>, vector<32x128xf32> -> vector<32x128xf32>
    %142 = arith.addf %140, %141 : vector<32x128xf32>
    %143 = math.tanh %142 : vector<32x128xf32>
    %144 = arith.negf %142 : vector<32x128xf32>
    %145 = math.exp %144 : vector<32x128xf32>
    %cst_33 = arith.constant 1.000000e+00 : f32
    %146 = vector.broadcast %cst_33 : f32 to vector<32x128xf32>
    %147 = arith.addf %146, %145 : vector<32x128xf32>
    %148 = arith.divf %146, %147 : vector<32x128xf32>
    %149 = arith.select %15, %143, %148 : vector<32x128xi1>, vector<32x128xf32>
    %150 = vector.extract_strided_slice %149 {offsets = [0, 0], sizes = [32, 32], strides = [1, 1]} : vector<32x128xf32> to vector<32x32xf32>
    %151 = vector.extract_strided_slice %149 {offsets = [0, 32], sizes = [32, 32], strides = [1, 1]} : vector<32x128xf32> to vector<32x32xf32>
    %152 = vector.extract_strided_slice %149 {offsets = [0, 64], sizes = [32, 32], strides = [1, 1]} : vector<32x128xf32> to vector<32x32xf32>
    %153 = vector.extract_strided_slice %149 {offsets = [0, 96], sizes = [32, 32], strides = [1, 1]} : vector<32x128xf32> to vector<32x32xf32>
    %154 = arith.mulf %151, %116 : vector<32x32xf32>
    %155 = arith.mulf %150, %152 : vector<32x32xf32>
    %156 = arith.addf %154, %155 : vector<32x32xf32>
    %157 = math.tanh %156 : vector<32x32xf32>
    %158 = arith.mulf %153, %157 : vector<32x32xf32>
    %cst_34 = arith.constant dense<0.000000e+00> : vector<32x128xf32>
    %159 = tpu.matmul %158, %8, %cst_34 {dimension_numbers = #tpu.dot_dimension_numbers<[1], [0], [0], [1], [0, 0, 1, 1], [], []>} : vector<32x32xf32>, vector<32x128xf32>, vector<32x128xf32> -> vector<32x128xf32>
    %cst_35 = arith.constant dense<0.000000e+00> : vector<32x128xf32>
    %160 = tpu.matmul %139, %7, %cst_35 {dimension_numbers = #tpu.dot_dimension_numbers<[1], [0], [0], [1], [0, 0, 1, 1], [], []>} : vector<32x32xf32>, vector<32x128xf32>, vector<32x128xf32> -> vector<32x128xf32>
    %161 = arith.addf %159, %160 : vector<32x128xf32>
    %162 = vector.broadcast %9 : vector<1x128xf32> to vector<32x128xf32>
    %163 = arith.addf %161, %162 : vector<32x128xf32>
    %164 = math.tanh %163 : vector<32x128xf32>
    %165 = arith.negf %163 : vector<32x128xf32>
    %166 = math.exp %165 : vector<32x128xf32>
    %cst_36 = arith.constant 1.000000e+00 : f32
    %167 = vector.broadcast %cst_36 : f32 to vector<32x128xf32>
    %168 = arith.addf %167, %166 : vector<32x128xf32>
    %169 = arith.divf %167, %168 : vector<32x128xf32>
    %170 = arith.select %15, %164, %169 : vector<32x128xi1>, vector<32x128xf32>
    %171 = vector.extract_strided_slice %170 {offsets = [0, 0], sizes = [32, 32], strides = [1, 1]} : vector<32x128xf32> to vector<32x32xf32>
    %172 = vector.extract_strided_slice %170 {offsets = [0, 32], sizes = [32, 32], strides = [1, 1]} : vector<32x128xf32> to vector<32x32xf32>
    %173 = vector.extract_strided_slice %170 {offsets = [0, 64], sizes = [32, 32], strides = [1, 1]} : vector<32x128xf32> to vector<32x32xf32>
    %174 = vector.extract_strided_slice %170 {offsets = [0, 96], sizes = [32, 32], strides = [1, 1]} : vector<32x128xf32> to vector<32x32xf32>
    %175 = arith.mulf %172, %137 : vector<32x32xf32>
    %176 = arith.mulf %171, %173 : vector<32x32xf32>
    %177 = arith.addf %175, %176 : vector<32x32xf32>
    %178 = math.tanh %177 : vector<32x32xf32>
    %179 = arith.mulf %174, %178 : vector<32x32xf32>
    %180 = vector.extract_strided_slice %5 {offsets = [128, 0], sizes = [32, 128], strides = [1, 1]} : vector<256x128xf32> to vector<32x128xf32>
    %cst_37 = arith.constant dense<0.000000e+00> : vector<32x128xf32>
    %181 = tpu.matmul %158, %6, %cst_37 {dimension_numbers = #tpu.dot_dimension_numbers<[1], [0], [0], [1], [0, 0, 1, 1], [], []>} : vector<32x32xf32>, vector<32x128xf32>, vector<32x128xf32> -> vector<32x128xf32>
    %182 = arith.addf %180, %181 : vector<32x128xf32>
    %183 = math.tanh %182 : vector<32x128xf32>
    %184 = arith.negf %182 : vector<32x128xf32>
    %185 = math.exp %184 : vector<32x128xf32>
    %cst_38 = arith.constant 1.000000e+00 : f32
    %186 = vector.broadcast %cst_38 : f32 to vector<32x128xf32>
    %187 = arith.addf %186, %185 : vector<32x128xf32>
    %188 = arith.divf %186, %187 : vector<32x128xf32>
    %189 = arith.select %15, %183, %188 : vector<32x128xi1>, vector<32x128xf32>
    %190 = vector.extract_strided_slice %189 {offsets = [0, 0], sizes = [32, 32], strides = [1, 1]} : vector<32x128xf32> to vector<32x32xf32>
    %191 = vector.extract_strided_slice %189 {offsets = [0, 32], sizes = [32, 32], strides = [1, 1]} : vector<32x128xf32> to vector<32x32xf32>
    %192 = vector.extract_strided_slice %189 {offsets = [0, 64], sizes = [32, 32], strides = [1, 1]} : vector<32x128xf32> to vector<32x32xf32>
    %193 = vector.extract_strided_slice %189 {offsets = [0, 96], sizes = [32, 32], strides = [1, 1]} : vector<32x128xf32> to vector<32x32xf32>
    %194 = arith.mulf %191, %156 : vector<32x32xf32>
    %195 = arith.mulf %190, %192 : vector<32x32xf32>
    %196 = arith.addf %194, %195 : vector<32x32xf32>
    %197 = math.tanh %196 : vector<32x32xf32>
    %198 = arith.mulf %193, %197 : vector<32x32xf32>
    %cst_39 = arith.constant dense<0.000000e+00> : vector<32x128xf32>
    %199 = tpu.matmul %198, %8, %cst_39 {dimension_numbers = #tpu.dot_dimension_numbers<[1], [0], [0], [1], [0, 0, 1, 1], [], []>} : vector<32x32xf32>, vector<32x128xf32>, vector<32x128xf32> -> vector<32x128xf32>
    %cst_40 = arith.constant dense<0.000000e+00> : vector<32x128xf32>
    %200 = tpu.matmul %179, %7, %cst_40 {dimension_numbers = #tpu.dot_dimension_numbers<[1], [0], [0], [1], [0, 0, 1, 1], [], []>} : vector<32x32xf32>, vector<32x128xf32>, vector<32x128xf32> -> vector<32x128xf32>
    %201 = arith.addf %199, %200 : vector<32x128xf32>
    %202 = vector.broadcast %9 : vector<1x128xf32> to vector<32x128xf32>
    %203 = arith.addf %201, %202 : vector<32x128xf32>
    %204 = math.tanh %203 : vector<32x128xf32>
    %205 = arith.negf %203 : vector<32x128xf32>
    %206 = math.exp %205 : vector<32x128xf32>
    %cst_41 = arith.constant 1.000000e+00 : f32
    %207 = vector.broadcast %cst_41 : f32 to vector<32x128xf32>
    %208 = arith.addf %207, %206 : vector<32x128xf32>
    %209 = arith.divf %207, %208 : vector<32x128xf32>
    %210 = arith.select %15, %204, %209 : vector<32x128xi1>, vector<32x128xf32>
    %211 = vector.extract_strided_slice %210 {offsets = [0, 0], sizes = [32, 32], strides = [1, 1]} : vector<32x128xf32> to vector<32x32xf32>
    %212 = vector.extract_strided_slice %210 {offsets = [0, 32], sizes = [32, 32], strides = [1, 1]} : vector<32x128xf32> to vector<32x32xf32>
    %213 = vector.extract_strided_slice %210 {offsets = [0, 64], sizes = [32, 32], strides = [1, 1]} : vector<32x128xf32> to vector<32x32xf32>
    %214 = vector.extract_strided_slice %210 {offsets = [0, 96], sizes = [32, 32], strides = [1, 1]} : vector<32x128xf32> to vector<32x32xf32>
    %215 = arith.mulf %212, %177 : vector<32x32xf32>
    %216 = arith.mulf %211, %213 : vector<32x32xf32>
    %217 = arith.addf %215, %216 : vector<32x32xf32>
    %218 = math.tanh %217 : vector<32x32xf32>
    %219 = arith.mulf %214, %218 : vector<32x32xf32>
    %220 = vector.extract_strided_slice %5 {offsets = [160, 0], sizes = [32, 128], strides = [1, 1]} : vector<256x128xf32> to vector<32x128xf32>
    %cst_42 = arith.constant dense<0.000000e+00> : vector<32x128xf32>
    %221 = tpu.matmul %198, %6, %cst_42 {dimension_numbers = #tpu.dot_dimension_numbers<[1], [0], [0], [1], [0, 0, 1, 1], [], []>} : vector<32x32xf32>, vector<32x128xf32>, vector<32x128xf32> -> vector<32x128xf32>
    %222 = arith.addf %220, %221 : vector<32x128xf32>
    %223 = math.tanh %222 : vector<32x128xf32>
    %224 = arith.negf %222 : vector<32x128xf32>
    %225 = math.exp %224 : vector<32x128xf32>
    %cst_43 = arith.constant 1.000000e+00 : f32
    %226 = vector.broadcast %cst_43 : f32 to vector<32x128xf32>
    %227 = arith.addf %226, %225 : vector<32x128xf32>
    %228 = arith.divf %226, %227 : vector<32x128xf32>
    %229 = arith.select %15, %223, %228 : vector<32x128xi1>, vector<32x128xf32>
    %230 = vector.extract_strided_slice %229 {offsets = [0, 0], sizes = [32, 32], strides = [1, 1]} : vector<32x128xf32> to vector<32x32xf32>
    %231 = vector.extract_strided_slice %229 {offsets = [0, 32], sizes = [32, 32], strides = [1, 1]} : vector<32x128xf32> to vector<32x32xf32>
    %232 = vector.extract_strided_slice %229 {offsets = [0, 64], sizes = [32, 32], strides = [1, 1]} : vector<32x128xf32> to vector<32x32xf32>
    %233 = vector.extract_strided_slice %229 {offsets = [0, 96], sizes = [32, 32], strides = [1, 1]} : vector<32x128xf32> to vector<32x32xf32>
    %234 = arith.mulf %231, %196 : vector<32x32xf32>
    %235 = arith.mulf %230, %232 : vector<32x32xf32>
    %236 = arith.addf %234, %235 : vector<32x32xf32>
    %237 = math.tanh %236 : vector<32x32xf32>
    %238 = arith.mulf %233, %237 : vector<32x32xf32>
    %cst_44 = arith.constant dense<0.000000e+00> : vector<32x128xf32>
    %239 = tpu.matmul %238, %8, %cst_44 {dimension_numbers = #tpu.dot_dimension_numbers<[1], [0], [0], [1], [0, 0, 1, 1], [], []>} : vector<32x32xf32>, vector<32x128xf32>, vector<32x128xf32> -> vector<32x128xf32>
    %cst_45 = arith.constant dense<0.000000e+00> : vector<32x128xf32>
    %240 = tpu.matmul %219, %7, %cst_45 {dimension_numbers = #tpu.dot_dimension_numbers<[1], [0], [0], [1], [0, 0, 1, 1], [], []>} : vector<32x32xf32>, vector<32x128xf32>, vector<32x128xf32> -> vector<32x128xf32>
    %241 = arith.addf %239, %240 : vector<32x128xf32>
    %242 = vector.broadcast %9 : vector<1x128xf32> to vector<32x128xf32>
    %243 = arith.addf %241, %242 : vector<32x128xf32>
    %244 = math.tanh %243 : vector<32x128xf32>
    %245 = arith.negf %243 : vector<32x128xf32>
    %246 = math.exp %245 : vector<32x128xf32>
    %cst_46 = arith.constant 1.000000e+00 : f32
    %247 = vector.broadcast %cst_46 : f32 to vector<32x128xf32>
    %248 = arith.addf %247, %246 : vector<32x128xf32>
    %249 = arith.divf %247, %248 : vector<32x128xf32>
    %250 = arith.select %15, %244, %249 : vector<32x128xi1>, vector<32x128xf32>
    %251 = vector.extract_strided_slice %250 {offsets = [0, 0], sizes = [32, 32], strides = [1, 1]} : vector<32x128xf32> to vector<32x32xf32>
    %252 = vector.extract_strided_slice %250 {offsets = [0, 32], sizes = [32, 32], strides = [1, 1]} : vector<32x128xf32> to vector<32x32xf32>
    %253 = vector.extract_strided_slice %250 {offsets = [0, 64], sizes = [32, 32], strides = [1, 1]} : vector<32x128xf32> to vector<32x32xf32>
    %254 = vector.extract_strided_slice %250 {offsets = [0, 96], sizes = [32, 32], strides = [1, 1]} : vector<32x128xf32> to vector<32x32xf32>
    %255 = arith.mulf %252, %217 : vector<32x32xf32>
    %256 = arith.mulf %251, %253 : vector<32x32xf32>
    %257 = arith.addf %255, %256 : vector<32x32xf32>
    %258 = math.tanh %257 : vector<32x32xf32>
    %259 = arith.mulf %254, %258 : vector<32x32xf32>
    %260 = vector.extract_strided_slice %5 {offsets = [192, 0], sizes = [32, 128], strides = [1, 1]} : vector<256x128xf32> to vector<32x128xf32>
    %cst_47 = arith.constant dense<0.000000e+00> : vector<32x128xf32>
    %261 = tpu.matmul %238, %6, %cst_47 {dimension_numbers = #tpu.dot_dimension_numbers<[1], [0], [0], [1], [0, 0, 1, 1], [], []>} : vector<32x32xf32>, vector<32x128xf32>, vector<32x128xf32> -> vector<32x128xf32>
    %262 = arith.addf %260, %261 : vector<32x128xf32>
    %263 = math.tanh %262 : vector<32x128xf32>
    %264 = arith.negf %262 : vector<32x128xf32>
    %265 = math.exp %264 : vector<32x128xf32>
    %cst_48 = arith.constant 1.000000e+00 : f32
    %266 = vector.broadcast %cst_48 : f32 to vector<32x128xf32>
    %267 = arith.addf %266, %265 : vector<32x128xf32>
    %268 = arith.divf %266, %267 : vector<32x128xf32>
    %269 = arith.select %15, %263, %268 : vector<32x128xi1>, vector<32x128xf32>
    %270 = vector.extract_strided_slice %269 {offsets = [0, 0], sizes = [32, 32], strides = [1, 1]} : vector<32x128xf32> to vector<32x32xf32>
    %271 = vector.extract_strided_slice %269 {offsets = [0, 32], sizes = [32, 32], strides = [1, 1]} : vector<32x128xf32> to vector<32x32xf32>
    %272 = vector.extract_strided_slice %269 {offsets = [0, 64], sizes = [32, 32], strides = [1, 1]} : vector<32x128xf32> to vector<32x32xf32>
    %273 = vector.extract_strided_slice %269 {offsets = [0, 96], sizes = [32, 32], strides = [1, 1]} : vector<32x128xf32> to vector<32x32xf32>
    %274 = arith.mulf %271, %236 : vector<32x32xf32>
    %275 = arith.mulf %270, %272 : vector<32x32xf32>
    %276 = arith.addf %274, %275 : vector<32x32xf32>
    %277 = math.tanh %276 : vector<32x32xf32>
    %278 = arith.mulf %273, %277 : vector<32x32xf32>
    %cst_49 = arith.constant dense<0.000000e+00> : vector<32x128xf32>
    %279 = tpu.matmul %278, %8, %cst_49 {dimension_numbers = #tpu.dot_dimension_numbers<[1], [0], [0], [1], [0, 0, 1, 1], [], []>} : vector<32x32xf32>, vector<32x128xf32>, vector<32x128xf32> -> vector<32x128xf32>
    %cst_50 = arith.constant dense<0.000000e+00> : vector<32x128xf32>
    %280 = tpu.matmul %259, %7, %cst_50 {dimension_numbers = #tpu.dot_dimension_numbers<[1], [0], [0], [1], [0, 0, 1, 1], [], []>} : vector<32x32xf32>, vector<32x128xf32>, vector<32x128xf32> -> vector<32x128xf32>
    %281 = arith.addf %279, %280 : vector<32x128xf32>
    %282 = vector.broadcast %9 : vector<1x128xf32> to vector<32x128xf32>
    %283 = arith.addf %281, %282 : vector<32x128xf32>
    %284 = math.tanh %283 : vector<32x128xf32>
    %285 = arith.negf %283 : vector<32x128xf32>
    %286 = math.exp %285 : vector<32x128xf32>
    %cst_51 = arith.constant 1.000000e+00 : f32
    %287 = vector.broadcast %cst_51 : f32 to vector<32x128xf32>
    %288 = arith.addf %287, %286 : vector<32x128xf32>
    %289 = arith.divf %287, %288 : vector<32x128xf32>
    %290 = arith.select %15, %284, %289 : vector<32x128xi1>, vector<32x128xf32>
    %291 = vector.extract_strided_slice %290 {offsets = [0, 0], sizes = [32, 32], strides = [1, 1]} : vector<32x128xf32> to vector<32x32xf32>
    %292 = vector.extract_strided_slice %290 {offsets = [0, 32], sizes = [32, 32], strides = [1, 1]} : vector<32x128xf32> to vector<32x32xf32>
    %293 = vector.extract_strided_slice %290 {offsets = [0, 64], sizes = [32, 32], strides = [1, 1]} : vector<32x128xf32> to vector<32x32xf32>
    %294 = vector.extract_strided_slice %290 {offsets = [0, 96], sizes = [32, 32], strides = [1, 1]} : vector<32x128xf32> to vector<32x32xf32>
    %295 = arith.mulf %292, %257 : vector<32x32xf32>
    %296 = arith.mulf %291, %293 : vector<32x32xf32>
    %297 = arith.addf %295, %296 : vector<32x32xf32>
    %298 = math.tanh %297 : vector<32x32xf32>
    %299 = arith.mulf %294, %298 : vector<32x32xf32>
    %300 = vector.extract_strided_slice %5 {offsets = [224, 0], sizes = [32, 128], strides = [1, 1]} : vector<256x128xf32> to vector<32x128xf32>
    %cst_52 = arith.constant dense<0.000000e+00> : vector<32x128xf32>
    %301 = tpu.matmul %278, %6, %cst_52 {dimension_numbers = #tpu.dot_dimension_numbers<[1], [0], [0], [1], [0, 0, 1, 1], [], []>} : vector<32x32xf32>, vector<32x128xf32>, vector<32x128xf32> -> vector<32x128xf32>
    %302 = arith.addf %300, %301 : vector<32x128xf32>
    %303 = math.tanh %302 : vector<32x128xf32>
    %304 = arith.negf %302 : vector<32x128xf32>
    %305 = math.exp %304 : vector<32x128xf32>
    %cst_53 = arith.constant 1.000000e+00 : f32
    %306 = vector.broadcast %cst_53 : f32 to vector<32x128xf32>
    %307 = arith.addf %306, %305 : vector<32x128xf32>
    %308 = arith.divf %306, %307 : vector<32x128xf32>
    %309 = arith.select %15, %303, %308 : vector<32x128xi1>, vector<32x128xf32>
    %310 = vector.extract_strided_slice %309 {offsets = [0, 0], sizes = [32, 32], strides = [1, 1]} : vector<32x128xf32> to vector<32x32xf32>
    %311 = vector.extract_strided_slice %309 {offsets = [0, 32], sizes = [32, 32], strides = [1, 1]} : vector<32x128xf32> to vector<32x32xf32>
    %312 = vector.extract_strided_slice %309 {offsets = [0, 64], sizes = [32, 32], strides = [1, 1]} : vector<32x128xf32> to vector<32x32xf32>
    %313 = vector.extract_strided_slice %309 {offsets = [0, 96], sizes = [32, 32], strides = [1, 1]} : vector<32x128xf32> to vector<32x32xf32>
    %314 = arith.mulf %311, %276 : vector<32x32xf32>
    %315 = arith.mulf %310, %312 : vector<32x32xf32>
    %316 = arith.addf %314, %315 : vector<32x32xf32>
    %317 = math.tanh %316 : vector<32x32xf32>
    %318 = arith.mulf %313, %317 : vector<32x32xf32>
    %cst_54 = arith.constant dense<0.000000e+00> : vector<32x128xf32>
    %319 = tpu.matmul %318, %8, %cst_54 {dimension_numbers = #tpu.dot_dimension_numbers<[1], [0], [0], [1], [0, 0, 1, 1], [], []>} : vector<32x32xf32>, vector<32x128xf32>, vector<32x128xf32> -> vector<32x128xf32>
    %cst_55 = arith.constant dense<0.000000e+00> : vector<32x128xf32>
    %320 = tpu.matmul %299, %7, %cst_55 {dimension_numbers = #tpu.dot_dimension_numbers<[1], [0], [0], [1], [0, 0, 1, 1], [], []>} : vector<32x32xf32>, vector<32x128xf32>, vector<32x128xf32> -> vector<32x128xf32>
    %321 = arith.addf %319, %320 : vector<32x128xf32>
    %322 = vector.broadcast %9 : vector<1x128xf32> to vector<32x128xf32>
    %323 = arith.addf %321, %322 : vector<32x128xf32>
    %324 = math.tanh %323 : vector<32x128xf32>
    %325 = arith.negf %323 : vector<32x128xf32>
    %326 = math.exp %325 : vector<32x128xf32>
    %cst_56 = arith.constant 1.000000e+00 : f32
    %327 = vector.broadcast %cst_56 : f32 to vector<32x128xf32>
    %328 = arith.addf %327, %326 : vector<32x128xf32>
    %329 = arith.divf %327, %328 : vector<32x128xf32>
    %330 = arith.select %15, %324, %329 : vector<32x128xi1>, vector<32x128xf32>
    %331 = vector.extract_strided_slice %330 {offsets = [0, 0], sizes = [32, 32], strides = [1, 1]} : vector<32x128xf32> to vector<32x32xf32>
    %332 = vector.extract_strided_slice %330 {offsets = [0, 32], sizes = [32, 32], strides = [1, 1]} : vector<32x128xf32> to vector<32x32xf32>
    %333 = vector.extract_strided_slice %330 {offsets = [0, 64], sizes = [32, 32], strides = [1, 1]} : vector<32x128xf32> to vector<32x32xf32>
    %334 = vector.extract_strided_slice %330 {offsets = [0, 96], sizes = [32, 32], strides = [1, 1]} : vector<32x128xf32> to vector<32x32xf32>
    %335 = arith.mulf %332, %297 : vector<32x32xf32>
    %336 = arith.mulf %331, %333 : vector<32x32xf32>
    %337 = arith.addf %335, %336 : vector<32x32xf32>
    %338 = math.tanh %337 : vector<32x32xf32>
    %339 = arith.mulf %334, %338 : vector<32x32xf32>
    %340 = tpu.concatenate %59, %99, %139, %179, %219, %259, %299, %339 in 1 : vector<32x32xf32>, vector<32x32xf32>, vector<32x32xf32>, vector<32x32xf32>, vector<32x32xf32>, vector<32x32xf32>, vector<32x32xf32>, vector<32x32xf32> -> vector<32x256xf32>
    %c0_57 = arith.constant 0 : index
    %c0_58 = arith.constant 0 : index
    %341 = vector.load %arg8[%c0_57, %c0_58] : memref<32x256xf32, #tpu.memory_space<vmem>>, vector<32x256xf32>
    tpu.vector_store %arg8[%c0_57, %c0_58], %340 {strides = array<i32>} : memref<32x256xf32, #tpu.memory_space<vmem>>, vector<32x256xf32>,
    return
  }
  func.func @transform_0(%arg0: i32) -> (i32, i32) {
    %c0_i32 = arith.constant 0 : i32
    %c0_i32_0 = arith.constant 0 : i32
    %c0_i32_1 = arith.constant 0 : i32
    return %c0_i32, %c0_i32_0 : i32, i32
  }
  func.func @transform_1(%arg0: i32) -> (i32, i32) {
    %c0_i32 = arith.constant 0 : i32
    %c0_i32_0 = arith.constant 0 : i32
    %c0_i32_1 = arith.constant 0 : i32
    return %c0_i32, %c0_i32_0 : i32, i32
  }
  func.func @transform_2(%arg0: i32) -> (i32, i32) {
    %c0_i32 = arith.constant 0 : i32
    %c0_i32_0 = arith.constant 0 : i32
    %c0_i32_1 = arith.constant 0 : i32
    return %c0_i32, %c0_i32_0 : i32, i32
  }
  func.func @transform_3(%arg0: i32) -> (i32, i32) {
    %c0_i32 = arith.constant 0 : i32
    %c0_i32_0 = arith.constant 0 : i32
    %c0_i32_1 = arith.constant 0 : i32
    return %c0_i32, %c0_i32_0 : i32, i32
  }
  func.func @transform_4(%arg0: i32) -> (i32, i32) {
    %c0_i32 = arith.constant 0 : i32
    %c0_i32_0 = arith.constant 0 : i32
    %c0_i32_1 = arith.constant 0 : i32
    return %c0_i32, %c0_i32_0 : i32, i32
  }
  func.func @transform_5(%arg0: i32) -> (i32, i32) {
    %c0_i32 = arith.constant 0 : i32
    %c0_i32_0 = arith.constant 0 : i32
    %c0_i32_1 = arith.constant 0 : i32
    return %c0_i32, %c0_i32_0 : i32, i32
  }
  func.func @transform_6(%arg0: i32) -> (i32, i32) {
    %c0_i32 = arith.constant 0 : i32
    %c0_i32_0 = arith.constant 0 : i32
    %c0_i32_1 = arith.constant 0 : i32
    return %c0_i32, %c0_i32_0 : i32, i32
  }
  func.func @transform_7(%arg0: i32) -> (i32, i32) {
    %c0_i32 = arith.constant 0 : i32
    %c0_i32_0 = arith.constant 0 : i32
    %c0_i32_1 = arith.constant 0 : i32
    return %c0_i32, %c0_i32_0 : i32, i32
  }
}

</mosaic_0001>

<bundles_post_ra>
// kernel: tpu_custom_call.1
= control target key start
LH: loop header
LB: loop body
LE: loop exit
PB: predicated region body
PF: predicated region fallthrough
CT: control target
= control target key end

     0   :  { %vm65_vm0 = vcmask 130048   ;;  %s6597_s0 = inlined_call_operand.vmem [shape: f32[256,16], index: 0, kind: input, shape index: {}]   ;;  %s6598_s1 = inlined_call_operand.vmem [shape: f32[16,128], index: 1, kind: input, shape index: {}]   ;;  %s6599_s2 = inlined_call_operand.vmem [shape: f32[32,128], index: 2, kind: input, shape index: {}]   ;;  %s6600_s3 = inlined_call_operand.vmem [shape: f32[1,128], index: 3, kind: input, shape index: {}]   ;;  %s6601_s4 = inlined_call_operand.vmem [shape: f32[32,128], index: 4, kind: input, shape index: {}]   ;;  %s6602_s5 = inlined_call_operand.vmem [shape: f32[32,128], index: 5, kind: input, shape index: {}]   ;;  %s6603_s6 = inlined_call_operand.vmem [shape: f32[1,128], index: 6, kind: input, shape index: {}]   ;;  %s6604_s7 = inlined_call_operand.hbm [shape: f32[32,256], index: 7, kind: output, shape index: {}]  }
   0x1   :  { %v4711_v0 = vld [vmem:[%s6599_s2 + $0x18] sm:$0xff]  ;;  %v60_v1 = vld [vmem:[%s6598_s1 + $0x8] sm:$0xff]  ;;  %v4719_v2 = vld [vmem:[%s6599_s2 + $0x10] sm:$0xff] }
   0x2   :  { %309 = vmatpush.msra.mxu1 %v4711_v0  ;;  %176 = vmatpush.msra.mxu0 %v60_v1  ;;  %v59_v3 = vld [vmem:[%s6598_s1] sm:$0xff]  ;;  %v4731_v5 = vld [vmem:[%s6599_s2 + $0x8] sm:$0xff] }
   0x3   :  { %v27_v4 = vld [vmem:[%s6597_s0] sm:$0xff] }
   0x4   :  { %310 = vmatpush.msra.mxu1 %v4719_v2  ;;  %177 = vmatpush.msra.mxu0 %v59_v3  ;;  %v4738_v6 = vld [vmem:[%s6599_s2] sm:$0xff] }
   0x5   :  { %3900 = vmatmul.msk.f32.vlgmr.msra.gmra.mxu0 %vm65_vm0, %v27_v4 }
   0x6   :  { %12 = vsyncpa [#allocation3], 0  ;;  %311 = vmatpush.msra.mxu1 %v4731_v5  ;;  %v4661_v7 = vmov 0.0   ;;  %v28_v8 = vld [vmem:[%s6597_s0 + $0x8] sm:$0xff]  ;;  %v29_v9 = vld [vmem:[%s6597_s0 + $0x10] sm:$0xff]  ;;  %v288_v27 = vlaneseq  ;;  %s4662_s22 = smov 64  }
   0x7   :  { %v30_v10 = vld [vmem:[%s6597_s0 + $0x18] sm:$0xff]  ;;  %v4769_v11 = vld [vmem:[%s6600_s3] ss:$0 sm:$0xff]  ;;  %s4663_s23 = smov 32   ;;  %s3888_s18 = sshll.u32 %s6604_s7, 4  ;;  %s3889_s18 = int_to_ptr.hbm [resolvable:$true] %s3888_s18 }
   0x8   :  { %312 = vmatpush.msra.mxu1 %v4738_v6  ;;  %v289_v34 = vand.u32 127, %v288_v27  ;;  %s4666_s19 = smov 256   ;;  %s4667_s20 = smov 16  }
   0x9   :  { %313 = vmatmul.f32.vlgmr.msra.gmra.mxu1 %v4661_v7 }
   0xa   :  { %731 = vmatpush.msrb.mxu1 %v4711_v0  ;;  %vm290_vm1 = vcmp.ge.s32.totalorder %v289_v34, 64  ;;  %vm291_vm2 = vcmp.lt.s32.totalorder %v289_v34, 96 }
   0xb   :  { %vm4778_vm4 = vmand %vm290_vm1, %vm291_vm2 }
   0xc   :  { %732 = vmatpush.msrb.mxu1 %v4719_v2 }
   0xd   :  { %3901 = vmatmul.msk.f32.gmra.mxu0 %vm65_vm0, %v28_v8 }
   0xe   :  { %733 = vmatpush.msrb.mxu1 %v4731_v5 }
  0x10   :  { %734 = vmatpush.msrb.mxu1 %v4738_v6 }
  0x11   :  { %316 = vmatmul.f32.gmra.mxu1 %v4661_v7 }
  0x12   :  { %1170 = vmatpush.msra.mxu1 %v4711_v0 }
  0x14   :  { %1171 = vmatpush.msra.mxu1 %v4719_v2 }
  0x15   :  { %3902 = vmatmul.msk.f32.gmra.mxu0 %vm65_vm0, %v29_v9 }
  0x16   :  { %1172 = vmatpush.msra.mxu1 %v4731_v5 }
  0x18   :  { %1173 = vmatpush.msra.mxu1 %v4738_v6 }
  0x19   :  { %319 = vmatmul.f32.gmra.mxu1 %v4661_v7 }
  0x1d   :  { %3903 = vmatmul.msk.f32.gmra.mxu0 %vm65_vm0, %v30_v10 }
  0x21   :  { %322 = vmatmul.f32.gmra.mxu1 %v4661_v7 }
  0x82   :  { %v179_v12 = vpop.f32.mrf.mxu0 }
  0x83   :  { %v180_v13 = vadd.f32 %v4769_v11, %v179_v12 }
  0x86   :  { %v314_v14 = vpop.f32.mrf.mxu1 }
  0x87   :  { %v326_v15 = vadd.f32 %v314_v14, %v180_v13 }
  0x89   :  { %v3932_v16 = vmul.f32 -1.442695, %v326_v15 }
  0x8a   :  { %v182_v17 = vpop.f32.mrf.mxu0 }
  0x8b   :  { %4093 = vpow2.f32 %v3932_v16  ;;  %v183_v18 = vadd.f32 %v4769_v11, %v182_v17 }
  0x8e   :  { %v317_v19 = vpop.f32.mrf.mxu1 }
  0x8f   :  { %v327_v20 = vadd.f32 %v317_v19, %v183_v18 }
  0x91   :  { %v4094_v21 = vpop.eup %4093  ;;  %v3933_v22 = vmul.f32 -1.442695, %v327_v20 }
  0x92   :  { %v346_v23 = vadd.f32 1.0, %v4094_v21  ;;  %v185_v24 = vpop.f32.mrf.mxu0 }
  0x93   :  { %4095 = vpow2.f32 %v3933_v22  ;;  %v186_v25 = vadd.f32 %v4769_v11, %v185_v24 }
  0x94   :  { %4097 = vrcp.f32 %v346_v23  ;;  %v361_v39 = vand.u32 2147483648, %v346_v23  ;;  %v359_v42 = vand.u32 2147483647, %v346_v23  ;;  %vm355_vm5 = vweird.f32 %v346_v23 }
  0x96   :  { %v320_v26 = vpop.f32.mrf.mxu1  ;;  %v362_v49 = vor.u32 1.1754944e-38, %v361_v39  ;;  %vm360_vm7 = vcmp.eq.f32.partialorder %v359_v42, 8.507059e+37 }
  0x97   :  { %v4774_v28 = vadd.f32 %v320_v26, %v186_v25 }
  0x99   :  { %v4096_v29 = vpop.eup %4095  ;;  %v3934_v30 = vmul.f32 -1.442695, %v4774_v28 }
  0x9a   :  { %v4098_v31 = vpop.eup %4097  ;;  %v347_v32 = vadd.f32 1.0, %v4096_v29  ;;  %v188_v33 = vpop.f32.mrf.mxu0 }
  0x9b   :  { %4099 = vpow2.f32 %v3934_v30  ;;  %v189_v35 = vadd.f32 %v4769_v11, %v188_v33  ;;  %v351_v36 = vmul.f32 %v4098_v31, %v346_v23  ;;  %vm356_vm3 = vweird.f32 %v4098_v31 }
  0x9c   :  { %4101 = vrcp.f32 %v347_v32  ;;  %vm357_vm6 = vmor %vm355_vm5, %vm356_vm3  ;;  %v376_v56 = vand.u32 2147483648, %v347_v32  ;;  %v374_v58 = vand.u32 2147483647, %v347_v32  ;;  %vm370_vm9 = vweird.f32 %v347_v32 }
  0x9d   :  { %v352_v37 = vsub.f32 1.0, %v351_v36  ;;  %4103 = vtanh.f32 %v326_v15 }
  0x9e   :  { %v323_v38 = vpop.f32.mrf.mxu1  ;;  %v377_v63 = vor.u32 1.1754944e-38, %v376_v56  ;;  %vm375_vm11 = vcmp.eq.f32.partialorder %v374_v58, 8.507059e+37 }
  0x9f   :  { %v329_v40 = vadd.f32 %v323_v38, %v189_v35  ;;  %v353_v41 = vmul.f32 %v4098_v31, %v352_v37 }
  0xa1   :  { %v4100_v43 = vpop.eup %4099  ;;  %v3935_v44 = vmul.f32 -1.442695, %v329_v40  ;;  %v354_v46 = vadd.f32 %v4098_v31, %v353_v41 }
  0xa2   :  { %v4102_v47 = vpop.eup %4101  ;;  %v348_v48 = vadd.f32 1.0, %v4100_v43 }
  0xa3   :  { %4105 = vpow2.f32 %v3935_v44  ;;  %v358_v50 = vsel %vm357_vm6, %v4098_v31, %v354_v46  ;;  %v366_v51 = vmul.f32 %v4102_v47, %v347_v32  ;;  %v4104_v52 = vpop.eup %4103  ;;  %vm371_vm8 = vweird.f32 %v4102_v47 }
  0xa4   :  { %4107 = vrcp.f32 %v348_v48  ;;  %v363_v53 = vsel %vm360_vm7, %v362_v49, %v358_v50  ;;  %vm372_vm10 = vmor %vm370_vm9, %vm371_vm8  ;;  %vm385_vm12 = vweird.f32 %v348_v48  ;;  %v391_v9 = vand.u32 2147483648, %v348_v48 }
  0xa5   :  { %v4784_v54 = vsel %vm4778_vm4, %v4104_v52, %v363_v53  ;;  %v367_v55 = vsub.f32 1.0, %v366_v51  ;;  %4109 = vtanh.f32 %v327_v20  ;;  %v389_v13 = vand.u32 2147483647, %v348_v48 }
  0xa6   :  { %422 = vrot.lane.b32.xlu0 %v4784_v54, %s4662_s22  ;;  %v392_v15 = vor.u32 1.1754944e-38, %v391_v9  ;;  %v414_v41 = vmul.f32 0.0, %v4784_v54  ;;  %v31_v9 = vld [vmem:[%s6597_s0 + $0x20] sm:$0xff]  ;;  %vm293_vm6 = vcmask 261120  }
  0xa7   :  { %v368_v57 = vmul.f32 %v4102_v47, %v367_v55  ;;  %vm390_vm15 = vcmp.eq.f32.partialorder %v389_v13, 8.507059e+37  ;;  %3904 = vmatmul.msk.f32.gmra.mxu0 %vm65_vm0, %v31_v9 }
  0xa9   :  { %v4106_v59 = vpop.eup %4105  ;;  %v369_v60 = vadd.f32 %v4102_v47, %v368_v57 }
  0xaa   :  { %v4108_v61 = vpop.eup %4107  ;;  %v349_v62 = vadd.f32 1.0, %v4106_v59 }
  0xab   :  { %v373_v1 = vsel %vm372_vm10, %v4102_v47, %v369_v60  ;;  %v381_v3 = vmul.f32 %v4108_v61, %v348_v48  ;;  %v4110_v4 = vpop.eup %4109  ;;  %vm386_vm13 = vweird.f32 %v4108_v61 }
  0xac   :  { %4111 = vrcp.f32 %v349_v62  ;;  %v378_v8 = vsel %vm375_vm11, %v377_v63, %v373_v1  ;;  %vm387_vm14 = vmor %vm385_vm12, %vm386_vm13  ;;  %vm400_vm1 = vweird.f32 %v349_v62  ;;  %v406_v22 = vand.u32 2147483648, %v349_v62  ;;  %v4842_v63 = vld [vmem:[%s6602_s5 + $0x18] sm:$0xff] }
  0xad   :  { %v4790_v10 = vsel %vm4778_vm4, %v4110_v4, %v378_v8  ;;  %v382_v12 = vsub.f32 1.0, %v381_v3  ;;  %4113 = vtanh.f32 %v4774_v28  ;;  %v404_v25 = vand.u32 2147483647, %v349_v62  ;;  %v4847_v1 = vld [vmem:[%s6601_s4 + $0x18] sm:$0xff]  ;;  %494 = vmatpush.msra.mxu2 %v4842_v63  ;;  %v4859_v3 = vld [vmem:[%s6601_s4 + $0x10] sm:$0xff]  ;;  %v4864_v4 = vld [vmem:[%s6602_s5 + $0x8] sm:$0xff] }
  0xae   :  { %424 = vrot.lane.b32.xlu0 %v4790_v10, %s4662_s22  ;;  %4115 = vtanh.f32 %v329_v40  ;;  %v407_v27 = vor.u32 1.1754944e-38, %v406_v22  ;;  %v415_v44 = vmul.f32 0.0, %v4790_v10  ;;  %543 = vmatpush.msra.mxu3 %v4847_v1  ;;  %v4869_v8 = vld [vmem:[%s6601_s4 + $0x8] sm:$0xff] }
  0xaf   :  { %v383_v14 = vmul.f32 %v4108_v61, %v382_v12  ;;  %vm405_vm5 = vcmp.eq.f32.partialorder %v404_v25, 8.507059e+37  ;;  %v4885_v12 = vld [vmem:[%s6601_s4] sm:$0xff] }
  0xb0   :  { %544 = vmatpush.msra.mxu3 %v4859_v3  ;;  %v4943_v25 = vld [vmem:[%s6603_s6] ss:$0 sm:$0xff] }
  0xb1   :  { %v384_v16 = vadd.f32 %v4108_v61, %v383_v14 }
  0xb2   :  { %v4112_v17 = vpop.eup %4111  ;;  %545 = vmatpush.msra.mxu3 %v4869_v8 }
  0xb3   :  { %v388_v18 = vsel %vm387_vm14, %v4108_v61, %v384_v16  ;;  %v396_v19 = vmul.f32 %v4112_v17, %v349_v62  ;;  %v4114_v20 = vpop.eup %4113  ;;  %vm401_vm2 = vweird.f32 %v4112_v17 }
  0xb4   :  { %v393_v21 = vsel %vm390_vm15, %v392_v15, %v388_v18  ;;  %vm402_vm3 = vmor %vm400_vm1, %vm401_vm2  ;;  %v4116_v29 = vpop.eup %4115  ;;  %546 = vmatpush.msra.mxu3 %v4885_v12 }
  0xb5   :  { %v4797_v23 = vsel %vm4778_vm4, %v4114_v20, %v393_v21  ;;  %v397_v24 = vsub.f32 1.0, %v396_v19  ;;  %v33_v19 = vld [vmem:[%s6597_s0 + $0x30] sm:$0xff] }
  0xb6   :  { %426 = vrot.lane.b32.xlu1 %v4797_v23, %s4662_s22  ;;  %v416_v50 = vmul.f32 0.0, %v4797_v23  ;;  %985 = vmatpush.msrb.mxu3 %v4847_v1 }
  0xb7   :  { %v398_v26 = vmul.f32 %v4112_v17, %v397_v24 }
  0xb8   :  { %986 = vmatpush.msrb.mxu3 %v4859_v3 }
  0xb9   :  { %v399_v28 = vadd.f32 %v4112_v17, %v398_v26 }
  0xba   :  { %987 = vmatpush.msrb.mxu3 %v4869_v8 }
  0xbb   :  { %v403_v30 = vsel %vm402_vm3, %v4112_v17, %v399_v28  ;;  %v32_v17 = vld [vmem:[%s6597_s0 + $0x28] sm:$0xff] }
  0xbc   :  { %v408_v31 = vsel %vm405_vm5, %v407_v27, %v403_v30  ;;  %988 = vmatpush.msrb.mxu3 %v4885_v12  ;;  %3905 = vmatmul.msk.f32.gmra.mxu0 %vm65_vm0, %v32_v17 }
  0xbd   :  { %v4803_v32 = vsel %vm4778_vm4, %v4116_v29, %v408_v31 }
  0xbe   :  { %428 = vrot.lane.b32.xlu1 %v4803_v32, %s4662_s22  ;;  %v417_v53 = vmul.f32 0.0, %v4803_v32 }
  0xc4   :  { %3906 = vmatmul.msk.f32.gmra.mxu0 %vm65_vm0, %v33_v19 }
 0x118   :  { %v423_v33 = vpop.permute.xlu0 %422 }
 0x119   :  { %v434_v34 = vmul.f32 %v423_v33, %v4784_v54 }
 0x11b   :  { %442 = vrot.lane.b32.xlu2 %v434_v34, %s4663_s23 }
 0x120   :  { %v425_v35 = vpop.permute.xlu0 %424 }
 0x121   :  { %v435_v36 = vmul.f32 %v425_v35, %v4790_v10 }
 0x123   :  { %444 = vrot.lane.b32.xlu2 %v435_v36, %s4663_s23 }
 0x128   :  { %v427_v37 = vpop.permute.xlu1 %426 }
 0x129   :  { %v436_v38 = vmul.f32 %v427_v37, %v4797_v23 }
 0x12b   :  { %446 = vrot.lane.b32.xlu0 %v436_v38, %s4663_s23 }
 0x130   :  { %v429_v39 = vpop.permute.xlu1 %428 }
 0x131   :  { %v437_v40 = vmul.f32 %v429_v39, %v4803_v32 }
 0x133   :  { %448 = vrot.lane.b32.xlu1 %v437_v40, %s4663_s23 }
 0x175   :  { %v443_v42 = vpop.permute.xlu2 %442 }
 0x176   :  { %v4816_v43 = vadd.f32 %v443_v42, %v414_v41 }
 0x178   :  { %4117 = vtanh.f32 %v4816_v43 }
 0x17d   :  { %v445_v46 = vpop.permute.xlu2 %444 }
 0x17e   :  { %v4118_v47 = vpop.eup %4117  ;;  %v4820_v48 = vadd.f32 %v445_v46, %v415_v44 }
 0x17f   :  { %466 = vrot.lane.b32.xlu2 %v4118_v47, %s4662_s22 }
 0x180   :  { %4119 = vtanh.f32 %v4820_v48 }
 0x186   :  { %v4120_v49 = vpop.eup %4119 }
 0x187   :  { %468 = vrot.lane.b32.xlu0 %v4120_v49, %s4662_s22 }
 0x19d   :  { %v447_v51 = vpop.permute.xlu0 %446 }
 0x19e   :  { %v4826_v52 = vadd.f32 %v447_v51, %v416_v50 }
 0x1a0   :  { %4121 = vtanh.f32 %v4826_v52 }
 0x1a5   :  { %v449_v55 = vpop.permute.xlu1 %448 }
 0x1a6   :  { %v4122_v56 = vpop.eup %4121  ;;  %v4830_v57 = vadd.f32 %v449_v55, %v417_v53 }
 0x1a7   :  { %470 = vrot.lane.b32.xlu1 %v4122_v56, %s4662_s22 }
 0x1a8   :  { %4123 = vtanh.f32 %v4830_v57 }
 0x1ae   :  { %v4124_v58 = vpop.eup %4123 }
 0x1af   :  { %472 = vrot.lane.b32.xlu2 %v4124_v58, %s4662_s22 }
 0x1d9   :  { %v467_v59 = vpop.permute.xlu2 %466 }
 0x1da   :  { %v478_v60 = vmul.f32 %v467_v59, %v4784_v54  ;;  %v4852_v54 = vld [vmem:[%s6602_s5 + $0x10] sm:$0xff] }
 0x1db   :  { %495 = vmatpush.msra.mxu2 %v4852_v54 }
 0x1dc   :  { %515 = vrot.lane.b32.xlu0 %v478_v60, %s4663_s23 }
 0x1dd   :  { %496 = vmatpush.msra.mxu2 %v4864_v4 }
 0x1f9   :  { %v469_v61 = vpop.permute.xlu0 %468 }
 0x1fa   :  { %v479_v62 = vmul.f32 %v469_v61, %v4790_v10  ;;  %v4880_v10 = vld [vmem:[%s6602_s5] sm:$0xff] }
 0x1fb   :  { %497 = vmatpush.msra.mxu2 %v4880_v10 }
 0x1fc   :  { %517 = vrot.lane.b32.xlu1 %v479_v62, %s4663_s23  ;;  %498 = vmatmul.f32.vlgmr.msra.gmra.mxu2 %v4661_v7 }
 0x1fd   :  { %936 = vmatpush.msrb.mxu2 %v4842_v63 }
 0x1ff   :  { %937 = vmatpush.msrb.mxu2 %v4852_v54 }
 0x201   :  { %938 = vmatpush.msrb.mxu2 %v4864_v4 }
 0x203   :  { %939 = vmatpush.msrb.mxu2 %v4880_v10 }
 0x204   :  { %501 = vmatmul.f32.gmra.mxu2 %v4661_v7 }
 0x205   :  { %1375 = vmatpush.msra.mxu2 %v4842_v63 }
 0x207   :  { %1376 = vmatpush.msra.mxu2 %v4852_v54 }
 0x209   :  { %v473_v13 = vpop.permute.xlu2 %472  ;;  %1377 = vmatpush.msra.mxu2 %v4864_v4 }
 0x20a   :  { %v481_v14 = vmul.f32 %v473_v13, %v4803_v32 }
 0x20b   :  { %1378 = vmatpush.msra.mxu2 %v4880_v10 }
 0x20c   :  { %521 = vrot.lane.b32.xlu0 %v481_v14, %s4663_s23  ;;  %504 = vmatmul.f32.gmra.mxu2 %v4661_v7 }
 0x214   :  { %507 = vmatmul.f32.gmra.mxu2 %v4661_v7  ;;  %v34_v7 = vld [vmem:[%s6597_s0 + $0x38] sm:$0xff] }
 0x215   :  { %3907 = vmatmul.msk.f32.gmra.mxu0 %vm65_vm0, %v34_v7 }
 0x219   :  { %v471_v15 = vpop.permute.xlu1 %470 }
 0x21a   :  { %v480_v16 = vmul.f32 %v471_v15, %v4797_v23 }
 0x21c   :  { %519 = vrot.lane.b32.xlu2 %v480_v16, %s4663_s23 }
 0x24e   :  { %v516_v18 = vpop.permute.xlu0 %515 }
 0x24f   :  { %3936 = vmatmul.msk.f32.vlgmr.msra.gmra.mxu3 %vm293_vm6, %v516_v18  ;;  %3944 = vmatmul.msk.f32.vlgmr.msrb.gmra.mxu1 %vm293_vm6, %v516_v18 }
 0x250   :  { %1424 = vmatpush.msra.mxu3 %v4847_v1  ;;  %1609 = vmatpush.msrb.mxu1 %v4711_v0 }
 0x252   :  { %1425 = vmatpush.msra.mxu3 %v4859_v3  ;;  %1610 = vmatpush.msrb.mxu1 %v4719_v2 }
 0x254   :  { %1426 = vmatpush.msra.mxu3 %v4869_v8  ;;  %1611 = vmatpush.msrb.mxu1 %v4731_v5  ;;  %v191_v5 = vpop.f32.mrf.mxu0 }
 0x256   :  { %1427 = vmatpush.msra.mxu3 %v4885_v12  ;;  %1612 = vmatpush.msrb.mxu1 %v4738_v6  ;;  %v192_v6 = vadd.f32 %v4769_v11, %v191_v5 }
 0x25c   :  { %v194_v35 = vpop.f32.mrf.mxu0 }
 0x25d   :  { %v195_v46 = vadd.f32 %v4769_v11, %v194_v35 }
 0x264   :  { %v197_v55 = vpop.f32.mrf.mxu0 }
 0x265   :  { %v198_v16 = vadd.f32 %v4769_v11, %v197_v55 }
 0x26e   :  { %v518_v20 = vpop.permute.xlu1 %517 }
 0x26f   :  { %3937 = vmatmul.msk.f32.gmra.mxu3 %vm293_vm6, %v518_v20  ;;  %3945 = vmatmul.msk.f32.gmra.mxu1 %vm293_vm6, %v518_v20 }
 0x276   :  { %v520_v0 = vpop.permute.xlu2 %519 }
 0x277   :  { %3938 = vmatmul.msk.f32.gmra.mxu3 %vm293_vm6, %v520_v0  ;;  %3946 = vmatmul.msk.f32.gmra.mxu1 %vm293_vm6, %v520_v0 }
 0x27e   :  { %v522_v2 = vpop.permute.xlu0 %521 }
 0x27f   :  { %3939 = vmatmul.msk.f32.gmra.mxu3 %vm293_vm6, %v522_v2  ;;  %3947 = vmatmul.msk.f32.gmra.mxu1 %vm293_vm6, %v522_v2  ;;  %v499_v24 = vpop.f32.mrf.mxu2 }
 0x287   :  { %v502_v59 = vpop.f32.mrf.mxu2 }
 0x2cc   :  { %v736_v21 = vpop.f32.mrf.mxu1 }
 0x2cd   :  { %v748_v22 = vadd.f32 %v736_v21, %v192_v6  ;;  %v200_v21 = vpop.f32.mrf.mxu0 }
 0x2cf   :  { %v3948_v23 = vmul.f32 -1.442695, %v748_v22 }
 0x2d1   :  { %4125 = vpow2.f32 %v3948_v23 }
 0x2d2   :  { %v548_v26 = vpop.f32.mrf.mxu3 }
 0x2d3   :  { %v549_v27 = vadd.f32 %v548_v26, %v499_v24 }
 0x2d5   :  { %v563_v28 = vadd.f32 %v4943_v25, %v549_v27 }
 0x2d7   :  { %v4126_v29 = vpop.eup %4125  ;;  %v3940_v30 = vmul.f32 -1.442695, %v563_v28 }
 0x2d8   :  { %v768_v31 = vadd.f32 1.0, %v4126_v29 }
 0x2d9   :  { %4127 = vpow2.f32 %v3940_v30 }
 0x2da   :  { %4129 = vrcp.f32 %v768_v31  ;;  %v783_v38 = vand.u32 2147483648, %v768_v31  ;;  %v781_v40 = vand.u32 2147483647, %v768_v31  ;;  %vm777_vm8 = vweird.f32 %v768_v31 }
 0x2dc   :  { %v784_v44 = vor.u32 1.1754944e-38, %v783_v38  ;;  %vm782_vm10 = vcmp.eq.f32.partialorder %v781_v40, 8.507059e+37 }
 0x2df   :  { %v4128_v32 = vpop.eup %4127 }
 0x2e0   :  { %v4130_v33 = vpop.eup %4129  ;;  %v583_v34 = vadd.f32 1.0, %v4128_v32 }
 0x2e1   :  { %v773_v36 = vmul.f32 %v4130_v33, %v768_v31  ;;  %vm778_vm7 = vweird.f32 %v4130_v33 }
 0x2e2   :  { %4131 = vrcp.f32 %v583_v34  ;;  %vm779_vm9 = vmor %vm777_vm8, %vm778_vm7  ;;  %v598_v60 = vand.u32 2147483648, %v583_v34  ;;  %v596_v9 = vand.u32 2147483647, %v583_v34  ;;  %vm592_vm12 = vweird.f32 %v583_v34 }
 0x2e3   :  { %v774_v37 = vsub.f32 1.0, %v773_v36  ;;  %4133 = vtanh.f32 %v748_v22  ;;  %v505_v22 = vpop.f32.mrf.mxu2 }
 0x2e4   :  { %4135 = vtanh.f32 %v563_v28  ;;  %v599_v15 = vor.u32 1.1754944e-38, %v598_v60  ;;  %vm597_vm14 = vcmp.eq.f32.partialorder %v596_v9, 8.507059e+37  ;;  %v201_v28 = vadd.f32 %v4769_v11, %v200_v21 }
 0x2e5   :  { %v775_v39 = vmul.f32 %v4130_v33, %v774_v37 }
 0x2e7   :  { %v776_v41 = vadd.f32 %v4130_v33, %v775_v39 }
 0x2e8   :  { %v4132_v42 = vpop.eup %4131 }
 0x2e9   :  { %v780_v47 = vsel %vm779_vm9, %v4130_v33, %v776_v41  ;;  %v588_v49 = vmul.f32 %v4132_v42, %v583_v34  ;;  %v4134_v50 = vpop.eup %4133  ;;  %vm593_vm11 = vweird.f32 %v4132_v42 }
 0x2ea   :  { %v785_v51 = vsel %vm782_vm10, %v784_v44, %v780_v47  ;;  %vm594_vm13 = vmor %vm592_vm12, %vm593_vm11  ;;  %v4136_v18 = vpop.eup %4135 }
 0x2eb   :  { %v4949_v53 = vsel %vm4778_vm4, %v4134_v50, %v785_v51  ;;  %v589_v56 = vsub.f32 1.0, %v588_v49  ;;  %v508_v39 = vpop.f32.mrf.mxu2 }
 0x2ec   :  { %844 = vrot.lane.b32.xlu2 %v4949_v53, %s4662_s22  ;;  %v739_v58 = vpop.f32.mrf.mxu1 }
 0x2ed   :  { %v749_v61 = vadd.f32 %v739_v58, %v195_v46  ;;  %v590_v62 = vmul.f32 %v4132_v42, %v589_v56 }
 0x2ef   :  { %v3949_v13 = vmul.f32 -1.442695, %v749_v61  ;;  %v591_v14 = vadd.f32 %v4132_v42, %v590_v62 }
 0x2f1   :  { %4137 = vpow2.f32 %v3949_v13  ;;  %v595_v17 = vsel %vm594_vm13, %v4132_v42, %v591_v14 }
 0x2f2   :  { %v551_v19 = vpop.f32.mrf.mxu3  ;;  %v600_v7 = vsel %vm597_vm14, %v599_v15, %v595_v17 }
 0x2f3   :  { %v552_v20 = vadd.f32 %v551_v19, %v502_v59  ;;  %v4956_v0 = vsel %vm4778_vm4, %v4136_v18, %v600_v7 }
 0x2f4   :  { %659 = vrot.lane.b32.xlu1 %v4956_v0, %s4662_s22  ;;  %v742_v2 = vpop.f32.mrf.mxu1 }
 0x2f5   :  { %v564_v5 = vadd.f32 %v4943_v25, %v552_v20  ;;  %v4961_v6 = vadd.f32 %v742_v2, %v198_v16 }
 0x2f7   :  { %v4138_v23 = vpop.eup %4137  ;;  %v3941_v24 = vmul.f32 -1.442695, %v564_v5  ;;  %v3950_v26 = vmul.f32 -1.442695, %v4961_v6 }
 0x2f8   :  { %v769_v27 = vadd.f32 1.0, %v4138_v23 }
 0x2f9   :  { %4139 = vpow2.f32 %v3941_v24 }
 0x2fa   :  { %4141 = vrcp.f32 %v769_v27  ;;  %v554_v29 = vpop.f32.mrf.mxu3  ;;  %v798_v47 = vand.u32 2147483648, %v769_v27  ;;  %v796_v51 = vand.u32 2147483647, %v769_v27  ;;  %vm792_vm1 = vweird.f32 %v769_v27 }
 0x2fb   :  { %4143 = vpow2.f32 %v3950_v26  ;;  %v555_v30 = vadd.f32 %v554_v29, %v505_v22 }
 0x2fc   :  { %v745_v31 = vpop.f32.mrf.mxu1  ;;  %4145 = vtanh.f32 %v749_v61  ;;  %v799_v62 = vor.u32 1.1754944e-38, %v798_v47  ;;  %vm797_vm3 = vcmp.eq.f32.partialorder %v796_v51, 8.507059e+37 }
 0x2fd   :  { %v4966_v32 = vadd.f32 %v4943_v25, %v555_v30  ;;  %v4968_v33 = vadd.f32 %v745_v31, %v201_v28 }
 0x2ff   :  { %v4140_v34 = vpop.eup %4139  ;;  %v3942_v35 = vmul.f32 -1.442695, %v4966_v32  ;;  %v3951_v36 = vmul.f32 -1.442695, %v4968_v33 }
 0x300   :  { %v4142_v37 = vpop.eup %4141  ;;  %v584_v38 = vadd.f32 1.0, %v4140_v34 }
 0x301   :  { %v4144_v11 = vpop.eup %4143  ;;  %4147 = vpow2.f32 %v3942_v35  ;;  %v788_v40 = vmul.f32 %v4142_v37, %v769_v27  ;;  %vm793_vm15 = vweird.f32 %v4142_v37 }
 0x302   :  { %4149 = vrcp.f32 %v584_v38  ;;  %v4972_v41 = vadd.f32 1.0, %v4144_v11  ;;  %v557_v42 = vpop.f32.mrf.mxu3  ;;  %v4146_v55 = vpop.eup %4145  ;;  %vm794_vm2 = vmor %vm792_vm1, %vm793_vm15  ;;  %v611_v20 = vand.u32 2147483647, %v584_v38  ;;  %v613_v2 = vand.u32 2147483648, %v584_v38 }
 0x303   :  { %4151 = vpow2.f32 %v3951_v36  ;;  %v558_v44 = vadd.f32 %v557_v42, %v508_v39  ;;  %v789_v46 = vsub.f32 1.0, %v788_v40  ;;  %vm607_vm7 = vweird.f32 %v584_v38 }
 0x304   :  { %4153 = vrcp.f32 %v4972_v41  ;;  %vm612_vm9 = vcmp.eq.f32.partialorder %v611_v20, 8.507059e+37  ;;  %v614_v28 = vor.u32 1.1754944e-38, %v613_v2  ;;  %vm807_vm11 = vweird.f32 %v4972_v41 }
 0x305   :  { %v4976_v49 = vadd.f32 %v4943_v25, %v558_v44  ;;  %v790_v50 = vmul.f32 %v4142_v37, %v789_v46 }
 0x307   :  { %v4148_v56 = vpop.eup %4147  ;;  %v3943_v58 = vmul.f32 -1.442695, %v4976_v49  ;;  %v791_v59 = vadd.f32 %v4142_v37, %v790_v50 }
 0x308   :  { %v4150_v60 = vpop.eup %4149  ;;  %v4979_v61 = vadd.f32 1.0, %v4148_v56 }
 0x309   :  { %v4152_v9 = vpop.eup %4151  ;;  %4155 = vpow2.f32 %v3943_v58  ;;  %v795_v13 = vsel %vm794_vm2, %v4142_v37, %v791_v59  ;;  %v603_v14 = vmul.f32 %v4150_v60, %v584_v38  ;;  %vm608_vm5 = vweird.f32 %v4150_v60 }
 0x30a   :  { %v4154_v15 = vpop.eup %4153  ;;  %4157 = vrcp.f32 %v4979_v61  ;;  %v4982_v16 = vadd.f32 1.0, %v4152_v9  ;;  %v800_v17 = vsel %vm797_vm3, %v799_v62, %v795_v13  ;;  %vm609_vm8 = vmor %vm607_vm7, %vm608_vm5  ;;  %v813_v37 = vand.u32 2147483648, %v4972_v41 }
 0x30b   :  { %4159 = vtanh.f32 %v564_v5  ;;  %v4986_v18 = vsel %vm4778_vm4, %v4146_v55, %v800_v17  ;;  %v604_v19 = vsub.f32 1.0, %v603_v14  ;;  %v803_v7 = vmul.f32 %v4154_v15, %v4972_v41 }
 0x30c   :  { %4161 = vrcp.f32 %v4982_v16  ;;  %846 = vrot.lane.b32.xlu1 %v4986_v18, %s4662_s22  ;;  %vm808_vm10 = vweird.f32 %v4154_v15  ;;  %v811_v38 = vand.u32 2147483647, %v4972_v41  ;;  %v628_v40 = vand.u32 2147483648, %v4979_v61 }
 0x30d   :  { %v605_v21 = vmul.f32 %v4150_v60, %v604_v19  ;;  %v804_v22 = vsub.f32 1.0, %v803_v7  ;;  %4163 = vtanh.f32 %v4961_v6  ;;  %vm5007_vm12 = vmor %vm807_vm11, %vm808_vm10  ;;  %v626_v41 = vand.u32 2147483647, %v4979_v61 }
 0x30e   :  { %vm812_vm14 = vcmp.eq.f32.partialorder %v811_v38, 8.507059e+37  ;;  %vm622_vm15 = vweird.f32 %v4979_v61  ;;  %v629_v58 = vor.u32 1.1754944e-38, %v628_v40  ;;  %vm822_vm5 = vweird.f32 %v4982_v16 }
 0x30f   :  { %v4156_v23 = vpop.eup %4155  ;;  %v606_v24 = vadd.f32 %v4150_v60, %v605_v21  ;;  %v805_v5 = vmul.f32 %v4154_v15, %v804_v22  ;;  %vm627_vm2 = vcmp.eq.f32.partialorder %v626_v41, 8.507059e+37  ;;  %v826_v19 = vand.u32 2147483647, %v4982_v16 }
 0x310   :  { %v4158_v26 = vpop.eup %4157  ;;  %v4993_v27 = vadd.f32 1.0, %v4156_v23 }
 0x311   :  { %v4160_v29 = vpop.eup %4159  ;;  %v610_v30 = vsel %vm609_vm8, %v4150_v60, %v606_v24  ;;  %v806_v31 = vadd.f32 %v4154_v15, %v805_v5  ;;  %v618_v34 = vmul.f32 %v4158_v26, %v4979_v61  ;;  %vm623_vm13 = vweird.f32 %v4158_v26 }
 0x312   :  { %v4162_v35 = vpop.eup %4161  ;;  %4165 = vrcp.f32 %v4993_v27  ;;  %v615_v36 = vsel %vm612_vm9, %v614_v28, %v610_v30  ;;  %vm624_vm1 = vmor %vm622_vm15, %vm623_vm13  ;;  %v643_v7 = vand.u32 2147483648, %v4993_v27  ;;  %v641_v2 = vand.u32 2147483647, %v4993_v27 }
 0x313   :  { %v5000_v6 = vsel %vm4778_vm4, %v4160_v29, %v615_v36  ;;  %v619_v39 = vsub.f32 1.0, %v618_v34  ;;  %4167 = vtanh.f32 %v4966_v32  ;;  %v818_v42 = vmul.f32 %v4162_v35, %v4982_v16  ;;  %v4164_v47 = vpop.eup %4163 }
 0x314   :  { %661 = vrot.lane.b32.xlu0 %v5000_v6, %s4662_s22  ;;  %v810_v44 = vsel %vm5007_vm12, %v4154_v15, %v806_v31  ;;  %v814_v32 = vor.u32 1.1754944e-38, %v813_v37  ;;  %4169 = vtanh.f32 %v4968_v33  ;;  %vm823_vm3 = vweird.f32 %v4162_v35 }
 0x315   :  { %v620_v46 = vmul.f32 %v4158_v26, %v619_v39  ;;  %v819_v50 = vsub.f32 1.0, %v818_v42  ;;  %v828_v15 = vand.u32 2147483648, %v4982_v16  ;;  %4171 = vtanh.f32 %v4976_v49  ;;  %vm824_vm7 = vmor %vm822_vm5, %vm823_vm3 }
 0x316   :  { %v815_v56 = vsel %vm812_vm14, %v814_v32, %v810_v44  ;;  %vm637_vm9 = vweird.f32 %v4993_v27  ;;  %vm827_vm10 = vcmp.eq.f32.partialorder %v826_v19, 8.507059e+37  ;;  %v644_v49 = vor.u32 1.1754944e-38, %v643_v7 }
 0x317   :  { %v621_v51 = vadd.f32 %v4158_v26, %v620_v46  ;;  %v820_v59 = vmul.f32 %v4162_v35, %v819_v50  ;;  %v5023_v61 = vsel %vm4778_vm4, %v4164_v47, %v815_v56  ;;  %v829_v23 = vor.u32 1.1754944e-38, %v828_v15 }
 0x318   :  { %v4166_v55 = vpop.eup %4165  ;;  %vm642_vm12 = vcmp.eq.f32.partialorder %v641_v2, 8.507059e+37  ;;  %v836_v50 = vmul.f32 %v4949_v53, %v4816_v43  ;;  %v838_v15 = vmul.f32 %v5023_v61, %v4826_v52 }
 0x319   :  { %v625_v60 = vsel %vm624_vm1, %v4158_v26, %v621_v51  ;;  %v633_v62 = vmul.f32 %v4166_v55, %v4993_v27  ;;  %v4168_v9 = vpop.eup %4167  ;;  %v821_v14 = vadd.f32 %v4162_v35, %v820_v59  ;;  %vm638_vm8 = vweird.f32 %v4166_v55 }
 0x31a   :  { %v630_v13 = vsel %vm627_vm2, %v629_v58, %v625_v60  ;;  %v4170_v22 = vpop.eup %4169  ;;  %vm639_vm11 = vmor %vm637_vm9, %vm638_vm8  ;;  %v651_v58 = vmul.f32 0.0, %v4956_v0 }
 0x31b   :  { %v5027_v33 = vsel %vm4778_vm4, %v4168_v9, %v630_v13  ;;  %v634_v17 = vsub.f32 1.0, %v633_v62  ;;  %v825_v21 = vsel %vm824_vm7, %v4162_v35, %v821_v14  ;;  %v4172_v26 = vpop.eup %4171  ;;  %v652_v62 = vmul.f32 0.0, %v5000_v6 }
 0x31c   :  { %848 = vrot.lane.b32.xlu0 %v5023_v61, %s4662_s22  ;;  %663 = vrot.lane.b32.xlu2 %v5027_v33, %s4662_s22  ;;  %v830_v16 = vsel %vm827_vm10, %v829_v23, %v825_v21  ;;  %v653_v14 = vmul.f32 0.0, %v5027_v33  ;;  %v837_v21 = vmul.f32 %v4986_v18, %v4820_v48 }
 0x31d   :  { %v635_v20 = vmul.f32 %v4166_v55, %v634_v17  ;;  %v5044_v30 = vsel %vm4778_vm4, %v4170_v22, %v830_v16 }
 0x31e   :  { %v839_v22 = vmul.f32 %v5044_v30, %v4830_v57 }
 0x31f   :  { %v636_v24 = vadd.f32 %v4166_v55, %v635_v20 }
 0x321   :  { %v640_v5 = vsel %vm639_vm11, %v4166_v55, %v636_v24 }
 0x322   :  { %v645_v28 = vsel %vm642_vm12, %v644_v49, %v640_v5 }
 0x323   :  { %v5040_v29 = vsel %vm4778_vm4, %v4172_v26, %v645_v28 }
 0x324   :  { %665 = vrot.lane.b32.xlu1 %v5040_v29, %s4662_s22  ;;  %850 = vrot.lane.b32.xlu2 %v5044_v30, %s4662_s22  ;;  %v654_v57 = vmul.f32 0.0, %v5040_v29 }
 0x346   :  { %v845_v27 = vpop.permute.xlu2 %844 }
 0x347   :  { %v856_v31 = vmul.f32 %v845_v27, %v4949_v53 }
 0x349   :  { %864 = vrot.lane.b32.xlu1 %v856_v31, %s4663_s23 }
 0x366   :  { %v660_v34 = vpop.permute.xlu1 %659 }
 0x367   :  { %v671_v35 = vmul.f32 %v660_v34, %v4956_v0 }
 0x369   :  { %679 = vrot.lane.b32.xlu0 %v671_v35, %s4663_s23 }
 0x376   :  { %v664_v36 = vpop.permute.xlu2 %663 }
 0x377   :  { %v673_v37 = vmul.f32 %v664_v36, %v5027_v33 }
 0x379   :  { %683 = vrot.lane.b32.xlu1 %v673_v37, %s4663_s23 }
 0x37e   :  { %v847_v38 = vpop.permute.xlu1 %846  ;;  %v851_v39 = vpop.permute.xlu2 %850 }
 0x37f   :  { %v857_v11 = vmul.f32 %v847_v38, %v4986_v18  ;;  %v859_v40 = vmul.f32 %v851_v39, %v5044_v30  ;;  %v35_v38 = vld [vmem:[%s6597_s0 + $0x40] sm:$0xff] }
 0x380   :  { %3908 = vmatmul.msk.f32.gmra.mxu0 %vm65_vm0, %v35_v38 }
 0x381   :  { %866 = vrot.lane.b32.xlu0 %v857_v11, %s4663_s23  ;;  %870 = vrot.lane.b32.xlu1 %v859_v40, %s4663_s23 }
 0x386   :  { %v662_v42 = vpop.permute.xlu0 %661 }
 0x387   :  { %v672_v44 = vmul.f32 %v662_v42, %v5000_v6 }
 0x389   :  { %681 = vrot.lane.b32.xlu2 %v672_v44, %s4663_s23 }
 0x38e   :  { %v849_v46 = vpop.permute.xlu0 %848 }
 0x38f   :  { %v858_v41 = vmul.f32 %v849_v46, %v5023_v61 }
 0x391   :  { %868 = vrot.lane.b32.xlu2 %v858_v41, %s4663_s23 }
 0x396   :  { %v666_v47 = vpop.permute.xlu1 %665 }
 0x397   :  { %v674_v32 = vmul.f32 %v666_v47, %v5040_v29 }
 0x399   :  { %685 = vrot.lane.b32.xlu0 %v674_v32, %s4663_s23 }
 0x3bb   :  { %v865_v51 = vpop.permute.xlu1 %864 }
 0x3bc   :  { %v5068_v55 = vadd.f32 %v865_v51, %v836_v50 }
 0x3be   :  { %4173 = vtanh.f32 %v5068_v55 }
 0x3c4   :  { %v4174_v56 = vpop.eup %4173 }
 0x3c5   :  { %888 = vrot.lane.b32.xlu0 %v4174_v56, %s4662_s22 }
 0x3db   :  { %v680_v59 = vpop.permute.xlu0 %679 }
 0x3dc   :  { %v5073_v60 = vadd.f32 %v680_v59, %v651_v58  ;;  %v5201_v58 = vld [vmem:[%s6600_s3] ss:$0 sm:$0xff] }
 0x3de   :  { %4175 = vtanh.f32 %v5073_v60 }
 0x3e3   :  { %v682_v9 = vpop.permute.xlu2 %681 }
 0x3e4   :  { %v4176_v13 = vpop.eup %4175  ;;  %v5077_v43 = vadd.f32 %v682_v9, %v652_v62 }
 0x3e5   :  { %703 = vrot.lane.b32.xlu2 %v4176_v13, %s4662_s22 }
 0x3e6   :  { %4177 = vtanh.f32 %v5077_v43 }
 0x3eb   :  { %v684_v17 = vpop.permute.xlu1 %683  ;;  %v869_v19 = vpop.permute.xlu2 %868 }
 0x3ec   :  { %v4178_v7 = vpop.eup %4177  ;;  %v5084_v20 = vadd.f32 %v684_v17, %v653_v14  ;;  %v5086_v2 = vadd.f32 %v869_v19, %v838_v15 }
 0x3ed   :  { %705 = vrot.lane.b32.xlu1 %v4178_v7, %s4662_s22 }
 0x3ee   :  { %4179 = vtanh.f32 %v5084_v20 }
 0x3ef   :  { %4181 = vtanh.f32 %v5086_v2 }
 0x3f3   :  { %v867_v52 = vpop.permute.xlu0 %866  ;;  %v871_v23 = vpop.permute.xlu1 %870 }
 0x3f4   :  { %v4180_v24 = vpop.eup %4179  ;;  %v5095_v49 = vadd.f32 %v867_v52, %v837_v21  ;;  %v5097_v16 = vadd.f32 %v871_v23, %v839_v22 }
 0x3f5   :  { %v4182_v5 = vpop.eup %4181  ;;  %707 = vrot.lane.b32.xlu0 %v4180_v24, %s4662_s22 }
 0x3f6   :  { %4183 = vtanh.f32 %v5095_v49  ;;  %892 = vrot.lane.b32.xlu1 %v4182_v5, %s4662_s22 }
 0x3f7   :  { %4185 = vtanh.f32 %v5097_v16 }
 0x3fc   :  { %v4184_v48 = vpop.eup %4183 }
 0x3fd   :  { %v4186_v26 = vpop.eup %4185  ;;  %890 = vrot.lane.b32.xlu2 %v4184_v48, %s4662_s22  ;;  %v203_v56 = vpop.f32.mrf.mxu0 }
 0x3fe   :  { %894 = vrot.lane.b32.xlu0 %v4186_v26, %s4662_s22  ;;  %v204_v59 = vadd.f32 %v5201_v58, %v203_v56 }
 0x40b   :  { %v686_v28 = vpop.permute.xlu0 %685 }
 0x40c   :  { %v5106_v27 = vadd.f32 %v686_v28, %v654_v57 }
 0x40e   :  { %4187 = vtanh.f32 %v5106_v27 }
 0x414   :  { %v4188_v31 = vpop.eup %4187 }
 0x415   :  { %709 = vrot.lane.b32.xlu2 %v4188_v31, %s4662_s22 }
 0x437   :  { %v889_v34 = vpop.permute.xlu0 %888 }
 0x438   :  { %v900_v35 = vmul.f32 %v889_v34, %v4949_v53 }
 0x43a   :  { %957 = vrot.lane.b32.xlu2 %v900_v35, %s4663_s23 }
 0x43f   :  { %v704_v36 = vpop.permute.xlu2 %703 }
 0x440   :  { %v715_v37 = vmul.f32 %v704_v36, %v4956_v0 }
 0x442   :  { %908 = vrot.lane.b32.xlu1 %v715_v37, %s4663_s23 }
 0x457   :  { %v891_v39 = vpop.permute.xlu2 %890 }
 0x458   :  { %v901_v11 = vmul.f32 %v891_v39, %v4986_v18 }
 0x45a   :  { %959 = vrot.lane.b32.xlu1 %v901_v11, %s4663_s23 }
 0x45f   :  { %v706_v40 = vpop.permute.xlu1 %705 }
 0x460   :  { %v716_v53 = vmul.f32 %v706_v40, %v5000_v6 }
 0x462   :  { %910 = vrot.lane.b32.xlu0 %v716_v53, %s4663_s23 }
 0x467   :  { %v708_v42 = vpop.permute.xlu0 %707 }
 0x468   :  { %v717_v0 = vmul.f32 %v708_v42, %v5027_v33  ;;  %v893_v44 = vpop.permute.xlu1 %892  ;;  %v5143_v33 = vld [vmem:[%s6599_s2 + $0x10] sm:$0xff] }
 0x469   :  { %v902_v46 = vmul.f32 %v893_v44, %v5023_v61  ;;  %v5136_v61 = vld [vmem:[%s6599_s2 + $0x18] sm:$0xff] }
 0x46a   :  { %912 = vrot.lane.b32.xlu2 %v717_v0, %s4663_s23 }
 0x46b   :  { %961 = vrot.lane.b32.xlu0 %v902_v46, %s4663_s23 }
 0x46f   :  { %v710_v41 = vpop.permute.xlu2 %709 }
 0x470   :  { %v895_v47 = vpop.permute.xlu0 %894  ;;  %v718_v18 = vmul.f32 %v710_v41, %v5040_v29 }
 0x471   :  { %v903_v32 = vmul.f32 %v895_v47, %v5044_v30  ;;  %v38_v30 = vld [vmem:[%s6597_s0 + $0x58] sm:$0xff] }
 0x472   :  { %914 = vrot.lane.b32.xlu1 %v718_v18, %s4663_s23 }
 0x473   :  { %963 = vrot.lane.b32.xlu2 %v903_v32, %s4663_s23 }
 0x494   :  { %v958_v6 = vpop.permute.xlu2 %957 }
 0x495   :  { %3956 = vmatmul.msk.f32.vlgmr.msrb.gmra.mxu3 %vm293_vm6, %v958_v6  ;;  %3964 = vmatmul.msk.f32.vlgmr.msra.gmra.mxu1 %vm293_vm6, %v958_v6 }
 0x496   :  { %1863 = vmatpush.msrb.mxu3 %v4847_v1  ;;  %2048 = vmatpush.msra.mxu1 %v5136_v61  ;;  %v5150_v1 = vld [vmem:[%s6599_s2 + $0x8] sm:$0xff] }
 0x498   :  { %1864 = vmatpush.msrb.mxu3 %v4859_v3  ;;  %2049 = vmatpush.msra.mxu1 %v5143_v33  ;;  %v5157_v3 = vld [vmem:[%s6599_s2] sm:$0xff] }
 0x49a   :  { %1865 = vmatpush.msrb.mxu3 %v4869_v8  ;;  %2050 = vmatpush.msra.mxu1 %v5150_v1  ;;  %v36_v8 = vld [vmem:[%s6597_s0 + $0x48] sm:$0xff] }
 0x49b   :  { %3909 = vmatmul.msk.f32.gmra.mxu0 %vm65_vm0, %v36_v8 }
 0x49c   :  { %1866 = vmatpush.msrb.mxu3 %v4885_v12  ;;  %2051 = vmatpush.msra.mxu1 %v5157_v3  ;;  %v37_v12 = vld [vmem:[%s6597_s0 + $0x50] sm:$0xff] }
 0x4a3   :  { %3910 = vmatmul.msk.f32.gmra.mxu0 %vm65_vm0, %v37_v12 }
 0x4ab   :  { %3911 = vmatmul.msk.f32.gmra.mxu0 %vm65_vm0, %v38_v30 }
 0x4b4   :  { %v5164_v29 = vpop.permute.xlu1 %908 }
 0x4b5   :  { %3952 = vmatmul.msk.f32.vlgmr.msrb.gmra.mxu2 %vm293_vm6, %v5164_v29 }
 0x4b6   :  { %1814 = vmatpush.msrb.mxu2 %v4842_v63 }
 0x4b8   :  { %1815 = vmatpush.msrb.mxu2 %v4852_v54 }
 0x4ba   :  { %1816 = vmatpush.msrb.mxu2 %v4864_v4 }
 0x4bc   :  { %1817 = vmatpush.msrb.mxu2 %v4880_v10 }
 0x4c4   :  { %v5186_v63 = vpop.permute.xlu2 %912 }
 0x4cc   :  { %v960_v50 = vpop.permute.xlu1 %959 }
 0x4cd   :  { %3957 = vmatmul.msk.f32.gmra.mxu3 %vm293_vm6, %v960_v50  ;;  %3965 = vmatmul.msk.f32.gmra.mxu1 %vm293_vm6, %v960_v50  ;;  %v964_v10 = vpop.permute.xlu2 %963 }
 0x4d4   :  { %v5182_v51 = vpop.permute.xlu0 %910 }
 0x4d5   :  { %3953 = vmatmul.msk.f32.gmra.mxu2 %vm293_vm6, %v5182_v51 }
 0x4dd   :  { %v962_v54 = vpop.permute.xlu0 %961  ;;  %3954 = vmatmul.msk.f32.gmra.mxu2 %vm293_vm6, %v5186_v63 }
 0x4de   :  { %3958 = vmatmul.msk.f32.gmra.mxu3 %vm293_vm6, %v962_v54  ;;  %3966 = vmatmul.msk.f32.gmra.mxu1 %vm293_vm6, %v962_v54 }
 0x4e4   :  { %v5192_v4 = vpop.permute.xlu1 %914 }
 0x4e5   :  { %3955 = vmatmul.msk.f32.gmra.mxu2 %vm293_vm6, %v5192_v4 }
 0x4e6   :  { %3959 = vmatmul.msk.f32.gmra.mxu3 %vm293_vm6, %v964_v10  ;;  %3967 = vmatmul.msk.f32.gmra.mxu1 %vm293_vm6, %v964_v10 }
 0x512   :  { %v1175_v62 = vpop.f32.mrf.mxu1 }
 0x513   :  { %v1187_v9 = vadd.f32 %v1175_v62, %v204_v59 }
 0x515   :  { %v3968_v13 = vmul.f32 -1.442695, %v1187_v9 }
 0x517   :  { %4189 = vpow2.f32 %v3968_v13 }
 0x518   :  { %v990_v28 = vpop.f32.mrf.mxu3  ;;  %v206_v37 = vpop.f32.mrf.mxu0 }
 0x519   :  { %v207_v11 = vadd.f32 %v5201_v58, %v206_v37 }
 0x51d   :  { %v4190_v14 = vpop.eup %4189 }
 0x51e   :  { %v1207_v15 = vadd.f32 1.0, %v4190_v14 }
 0x520   :  { %4191 = vrcp.f32 %v1207_v15  ;;  %v1222_v21 = vand.u32 2147483648, %v1207_v15  ;;  %v1220_v52 = vand.u32 2147483647, %v1207_v15  ;;  %vm1216_vm14 = vweird.f32 %v1207_v15  ;;  %v209_v47 = vpop.f32.mrf.mxu0 }
 0x521   :  { %4193 = vtanh.f32 %v1187_v9  ;;  %v210_v56 = vadd.f32 %v5201_v58, %v209_v47 }
 0x522   :  { %v1223_v24 = vor.u32 1.1754944e-38, %v1222_v21  ;;  %vm1221_vm1 = vcmp.eq.f32.partialorder %v1220_v52, 8.507059e+37 }
 0x526   :  { %v4192_v17 = vpop.eup %4191 }
 0x527   :  { %v1212_v19 = vmul.f32 %v4192_v17, %v1207_v15  ;;  %vm1217_vm13 = vweird.f32 %v4192_v17  ;;  %v4194_v48 = vpop.eup %4193 }
 0x528   :  { %vm1218_vm15 = vmor %vm1216_vm14, %vm1217_vm13 }
 0x529   :  { %v1213_v7 = vsub.f32 1.0, %v1212_v19 }
 0x52b   :  { %v1214_v22 = vmul.f32 %v4192_v17, %v1213_v7  ;;  %v212_v7 = vpop.f32.mrf.mxu0 }
 0x52d   :  { %v1215_v23 = vadd.f32 %v4192_v17, %v1214_v22 }
 0x52f   :  { %v1219_v5 = vsel %vm1218_vm15, %v4192_v17, %v1215_v23  ;;  %v213_v23 = vadd.f32 %v5201_v58, %v212_v7 }
 0x530   :  { %v1224_v26 = vsel %vm1221_vm1, %v1223_v24, %v1219_v5 }
 0x531   :  { %v5206_v57 = vsel %vm4778_vm4, %v4194_v48, %v1224_v26 }
 0x532   :  { %1283 = vrot.lane.b32.xlu1 %v5206_v57, %s4662_s22 }
 0x538   :  { %v941_v31 = vpop.f32.mrf.mxu2 }
 0x539   :  { %v991_v34 = vadd.f32 %v990_v28, %v941_v31 }
 0x53b   :  { %v1002_v35 = vadd.f32 %v4943_v25, %v991_v34 }
 0x53d   :  { %v3960_v36 = vmul.f32 -1.442695, %v1002_v35 }
 0x53f   :  { %4195 = vpow2.f32 %v3960_v36 }
 0x545   :  { %v4196_v38 = vpop.eup %4195 }
 0x546   :  { %v1022_v39 = vadd.f32 1.0, %v4196_v38 }
 0x548   :  { %4197 = vrcp.f32 %v1022_v39  ;;  %v1037_v41 = vand.u32 2147483648, %v1022_v39  ;;  %v1035_v32 = vand.u32 2147483647, %v1022_v39  ;;  %vm1031_vm3 = vweird.f32 %v1022_v39 }
 0x54a   :  { %v1178_v40 = vpop.f32.mrf.mxu1  ;;  %v1038_v30 = vor.u32 1.1754944e-38, %v1037_v41  ;;  %vm1036_vm7 = vcmp.eq.f32.partialorder %v1035_v32, 8.507059e+37 }
 0x54b   :  { %v1188_v53 = vadd.f32 %v1178_v40, %v207_v11 }
 0x54d   :  { %v3969_v42 = vmul.f32 -1.442695, %v1188_v53 }
 0x54e   :  { %v4198_v0 = vpop.eup %4197 }
 0x54f   :  { %4199 = vpow2.f32 %v3969_v42  ;;  %v1027_v44 = vmul.f32 %v4198_v0, %v1022_v39  ;;  %vm1032_vm2 = vweird.f32 %v4198_v0 }
 0x550   :  { %4201 = vtanh.f32 %v1002_v35  ;;  %vm1033_vm5 = vmor %vm1031_vm3, %vm1032_vm2  ;;  %v993_v10 = vpop.f32.mrf.mxu3 }
 0x551   :  { %v1028_v46 = vsub.f32 1.0, %v1027_v44 }
 0x553   :  { %v1029_v18 = vmul.f32 %v4198_v0, %v1028_v46 }
 0x555   :  { %v4200_v6 = vpop.eup %4199  ;;  %v1030_v8 = vadd.f32 %v4198_v0, %v1029_v18 }
 0x556   :  { %v1208_v12 = vadd.f32 1.0, %v4200_v6  ;;  %v4202_v54 = vpop.eup %4201 }
 0x557   :  { %v1034_v50 = vsel %vm1033_vm5, %v4198_v0, %v1030_v8 }
 0x558   :  { %4203 = vrcp.f32 %v1208_v12  ;;  %v944_v59 = vpop.f32.mrf.mxu2  ;;  %v1039_v62 = vsel %vm1036_vm7, %v1038_v30, %v1034_v50  ;;  %v1237_v28 = vand.u32 2147483648, %v1208_v12  ;;  %v1235_v35 = vand.u32 2147483647, %v1208_v12 }
 0x559   :  { %v994_v9 = vadd.f32 %v993_v10, %v944_v59  ;;  %v5215_v13 = vsel %vm4778_vm4, %v4202_v54, %v1039_v62  ;;  %vm1231_vm9 = vweird.f32 %v1208_v12 }
 0x55a   :  { %1098 = vrot.lane.b32.xlu0 %v5215_v13, %s4662_s22  ;;  %vm1236_vm11 = vcmp.eq.f32.partialorder %v1235_v35, 8.507059e+37 }
 0x55b   :  { %v1003_v14 = vadd.f32 %v4943_v25, %v994_v9  ;;  %v1181_v15 = vpop.f32.mrf.mxu1 }
 0x55c   :  { %v5220_v17 = vadd.f32 %v1181_v15, %v210_v56 }
 0x55d   :  { %v3961_v19 = vmul.f32 -1.442695, %v1003_v14 }
 0x55e   :  { %v4204_v21 = vpop.eup %4203  ;;  %v3970_v22 = vmul.f32 -1.442695, %v5220_v17 }
 0x55f   :  { %4205 = vpow2.f32 %v3961_v19  ;;  %v1227_v52 = vmul.f32 %v4204_v21, %v1208_v12  ;;  %vm1232_vm8 = vweird.f32 %v4204_v21 }
 0x560   :  { %4207 = vpow2.f32 %v3970_v22  ;;  %v947_v24 = vpop.f32.mrf.mxu2  ;;  %vm1233_vm10 = vmor %vm1231_vm9, %vm1232_vm8 }
 0x561   :  { %v996_v5 = vpop.f32.mrf.mxu3  ;;  %v1228_v48 = vsub.f32 1.0, %v1227_v52  ;;  %4209 = vtanh.f32 %v1188_v53  ;;  %v1238_v53 = vor.u32 1.1754944e-38, %v1237_v28 }
 0x562   :  { %v997_v26 = vadd.f32 %v996_v5, %v947_v24 }
 0x563   :  { %v1184_v31 = vpop.f32.mrf.mxu1  ;;  %v1229_v34 = vmul.f32 %v4204_v21, %v1228_v48 }
 0x564   :  { %v5225_v36 = vadd.f32 %v4943_v25, %v997_v26  ;;  %v5227_v37 = vadd.f32 %v1184_v31, %v213_v23 }
 0x565   :  { %v4206_v38 = vpop.eup %4205  ;;  %v1230_v39 = vadd.f32 %v4204_v21, %v1229_v34 }
 0x566   :  { %v4208_v11 = vpop.eup %4207  ;;  %v1023_v40 = vadd.f32 1.0, %v4206_v38  ;;  %v3962_v42 = vmul.f32 -1.442695, %v5225_v36  ;;  %v3971_v44 = vmul.f32 -1.442695, %v5227_v37 }
 0x567   :  { %v5230_v0 = vadd.f32 1.0, %v4208_v11  ;;  %v1234_v46 = vsel %vm1233_vm10, %v4204_v21, %v1230_v39  ;;  %v4210_v41 = vpop.eup %4209 }
 0x568   :  { %4211 = vrcp.f32 %v1023_v40  ;;  %v950_v47 = vpop.f32.mrf.mxu2  ;;  %v1239_v18 = vsel %vm1236_vm11, %v1238_v53, %v1234_v46  ;;  %v1050_v7 = vand.u32 2147483647, %v1023_v40  ;;  %v1052_v21 = vand.u32 2147483648, %v1023_v40 }
 0x569   :  { %4213 = vrcp.f32 %v5230_v0  ;;  %v999_v32 = vpop.f32.mrf.mxu3  ;;  %v5236_v6 = vsel %vm4778_vm4, %v4210_v41, %v1239_v18  ;;  %vm1046_vm13 = vweird.f32 %v1023_v40  ;;  %v1252_v34 = vand.u32 2147483648, %v5230_v0 }
 0x56a   :  { %4215 = vpow2.f32 %v3962_v42  ;;  %v1000_v8 = vadd.f32 %v999_v32, %v950_v47  ;;  %1285 = vrot.lane.b32.xlu0 %v5236_v6, %s4662_s22  ;;  %vm1051_vm15 = vcmp.eq.f32.partialorder %v1050_v7, 8.507059e+37  ;;  %v1053_v5 = vor.u32 1.1754944e-38, %v1052_v21 }
 0x56b   :  { %4217 = vpow2.f32 %v3971_v44  ;;  %vm1246_vm2 = vweird.f32 %v5230_v0  ;;  %v1250_v39 = vand.u32 2147483647, %v5230_v0  ;;  %v1253_v44 = vor.u32 1.1754944e-38, %v1252_v34 }
 0x56c   :  { %v1005_v12 = vadd.f32 %v4943_v25, %v1000_v8 }
 0x56d   :  { %vm1251_vm5 = vcmp.eq.f32.partialorder %v1250_v39, 8.507059e+37 }
 0x56e   :  { %v4212_v30 = vpop.eup %4211  ;;  %v3963_v50 = vmul.f32 -1.442695, %v1005_v12 }
 0x56f   :  { %v4214_v54 = vpop.eup %4213  ;;  %v1042_v10 = vmul.f32 %v4212_v30, %v1023_v40  ;;  %vm1047_vm12 = vweird.f32 %v4212_v30 }
 0x570   :  { %v4216_v56 = vpop.eup %4215  ;;  %4219 = vpow2.f32 %v3963_v50  ;;  %v1242_v59 = vmul.f32 %v4214_v54, %v5230_v0  ;;  %vm1048_vm14 = vmor %vm1046_vm13, %vm1047_vm12  ;;  %vm1247_vm1 = vweird.f32 %v4214_v54 }
 0x571   :  { %v4218_v62 = vpop.eup %4217  ;;  %4221 = vtanh.f32 %v1003_v14  ;;  %v1024_v9 = vadd.f32 1.0, %v4216_v56  ;;  %v1043_v15 = vsub.f32 1.0, %v1042_v10  ;;  %vm1248_vm3 = vmor %vm1246_vm2, %vm1247_vm1 }
 0x572   :  { %v5242_v19 = vadd.f32 1.0, %v4218_v62  ;;  %v1243_v22 = vsub.f32 1.0, %v1242_v59 }
 0x573   :  { %4223 = vrcp.f32 %v1024_v9  ;;  %v1044_v52 = vmul.f32 %v4212_v30, %v1043_v15  ;;  %v1065_v41 = vand.u32 2147483647, %v1024_v9  ;;  %v1067_v47 = vand.u32 2147483648, %v1024_v9 }
 0x574   :  { %4225 = vrcp.f32 %v5242_v19  ;;  %v1244_v25 = vmul.f32 %v4214_v54, %v1243_v22  ;;  %vm1061_vm8 = vweird.f32 %v1024_v9  ;;  %vm1261_vm11 = vweird.f32 %v5242_v19 }
 0x575   :  { %v1045_v23 = vadd.f32 %v4212_v30, %v1044_v52  ;;  %vm1066_vm10 = vcmp.eq.f32.partialorder %v1065_v41, 8.507059e+37  ;;  %v1068_v10 = vor.u32 1.1754944e-38, %v1067_v47  ;;  %v1265_v15 = vand.u32 2147483647, %v5242_v19 }
 0x576   :  { %v4220_v24 = vpop.eup %4219  ;;  %v1245_v28 = vadd.f32 %v4214_v54, %v1244_v25  ;;  %v1267_v7 = vand.u32 2147483648, %v5242_v19 }
 0x577   :  { %v4222_v14 = vpop.eup %4221  ;;  %v5245_v48 = vadd.f32 1.0, %v4220_v24  ;;  %v1049_v26 = vsel %vm1048_vm14, %v4212_v30, %v1045_v23  ;;  %vm1266_vm2 = vcmp.eq.f32.partialorder %v1265_v15, 8.507059e+37 }
 0x578   :  { %v1054_v31 = vsel %vm1051_vm15, %v1053_v5, %v1049_v26  ;;  %v1249_v42 = vsel %vm1248_vm3, %v4214_v54, %v1245_v28 }
 0x579   :  { %v4224_v35 = vpop.eup %4223  ;;  %4227 = vrcp.f32 %v5245_v48  ;;  %v5251_v38 = vsel %vm4778_vm4, %v4222_v14, %v1054_v31  ;;  %v1254_v0 = vsel %vm1251_vm5, %v1253_v44, %v1249_v42  ;;  %v1082_v21 = vand.u32 2147483648, %v5245_v48 }
 0x57a   :  { %v4226_v11 = vpop.eup %4225  ;;  %4229 = vtanh.f32 %v5220_v17  ;;  %1100 = vrot.lane.b32.xlu2 %v5251_v38, %s4662_s22  ;;  %v1057_v40 = vmul.f32 %v4224_v35, %v1024_v9  ;;  %vm1062_vm7 = vweird.f32 %v4224_v35  ;;  %v1080_v25 = vand.u32 2147483647, %v5245_v48 }
 0x57b   :  { %v1257_v53 = vmul.f32 %v4226_v11, %v5242_v19  ;;  %4231 = vtanh.f32 %v5225_v36  ;;  %vm1063_vm9 = vmor %vm1061_vm8, %vm1062_vm7  ;;  %vm1262_vm12 = vweird.f32 %v4226_v11  ;;  %vm1076_vm15 = vweird.f32 %v5245_v48 }
 0x57c   :  { %v1058_v46 = vsub.f32 1.0, %v1057_v40  ;;  %4233 = vtanh.f32 %v1005_v12  ;;  %vm1263_vm14 = vmor %vm1261_vm11, %vm1262_vm12  ;;  %v1268_v14 = vor.u32 1.1754944e-38, %v1267_v7  ;;  %v1083_v26 = vor.u32 1.1754944e-38, %v1082_v21 }
 0x57d   :  { %v1258_v18 = vsub.f32 1.0, %v1257_v53  ;;  %4235 = vtanh.f32 %v5227_v37  ;;  %vm1081_vm3 = vcmp.eq.f32.partialorder %v1080_v25, 8.507059e+37 }
 0x57e   :  { %v1059_v32 = vmul.f32 %v4224_v35, %v1058_v46 }
 0x57f   :  { %v4228_v17 = vpop.eup %4227  ;;  %v1259_v8 = vmul.f32 %v4226_v11, %v1258_v18 }
 0x580   :  { %v4230_v30 = vpop.eup %4229  ;;  %v1060_v50 = vadd.f32 %v4224_v35, %v1059_v32  ;;  %v1072_v54 = vmul.f32 %v4228_v17, %v5245_v48  ;;  %vm1077_vm13 = vweird.f32 %v4228_v17 }
 0x581   :  { %v5263_v36 = vsel %vm4778_vm4, %v4230_v30, %v1254_v0  ;;  %v4232_v56 = vpop.eup %4231  ;;  %v1260_v62 = vadd.f32 %v4226_v11, %v1259_v8  ;;  %vm1078_vm1 = vmor %vm1076_vm15, %vm1077_vm13 }
 0x582   :  { %1287 = vrot.lane.b32.xlu2 %v5263_v36, %s4662_s22  ;;  %v1064_v59 = vsel %vm1063_vm9, %v4224_v35, %v1060_v50  ;;  %v1073_v12 = vsub.f32 1.0, %v1072_v54  ;;  %v4234_v23 = vpop.eup %4233  ;;  %v1275_v50 = vmul.f32 %v5206_v57, %v5068_v55  ;;  %v1276_v55 = vmul.f32 %v5236_v6, %v5095_v49 }
 0x583   :  { %v1069_v9 = vsel %vm1066_vm10, %v1068_v10, %v1064_v59  ;;  %v1264_v24 = vsel %vm1263_vm14, %v4226_v11, %v1260_v62  ;;  %v4236_v35 = vpop.eup %4235  ;;  %v1090_v59 = vmul.f32 %v5215_v13, %v5073_v60  ;;  %v1091_v60 = vmul.f32 %v5251_v38, %v5077_v43 }
 0x584   :  { %v5273_v22 = vsel %vm4778_vm4, %v4232_v56, %v1069_v9  ;;  %v1074_v52 = vmul.f32 %v4228_v17, %v1073_v12  ;;  %v1269_v31 = vsel %vm1266_vm2, %v1268_v14, %v1264_v24 }
 0x585   :  { %1102 = vrot.lane.b32.xlu1 %v5273_v22, %s4662_s22  ;;  %v5290_v19 = vsel %vm4778_vm4, %v4236_v35, %v1269_v31  ;;  %v1092_v31 = vmul.f32 %v5273_v22, %v5084_v20 }
 0x586   :  { %v1075_v5 = vadd.f32 %v4228_v17, %v1074_v52 }
 0x588   :  { %v1079_v28 = vsel %vm1078_vm1, %v4228_v17, %v1075_v5 }
 0x589   :  { %v1084_v34 = vsel %vm1081_vm3, %v1083_v26, %v1079_v28 }
 0x58a   :  { %v5284_v37 = vsel %vm4778_vm4, %v4234_v23, %v1084_v34  ;;  %v1277_v23 = vmul.f32 %v5263_v36, %v5086_v2 }
 0x58b   :  { %1104 = vrot.lane.b32.xlu0 %v5284_v37, %s4662_s22  ;;  %v1093_v14 = vmul.f32 %v5284_v37, %v5106_v27  ;;  %v1278_v27 = vmul.f32 %v5290_v19, %v5097_v16 }
 0x58d   :  { %1289 = vrot.lane.b32.xlu1 %v5290_v19, %s4662_s22 }
 0x5a4   :  { %v1284_v48 = vpop.permute.xlu1 %1283 }
 0x5a5   :  { %v1295_v39 = vmul.f32 %v1284_v48, %v5206_v57 }
 0x5a7   :  { %1303 = vrot.lane.b32.xlu0 %v1295_v39, %s4663_s23 }
 0x5cc   :  { %v1099_v11 = vpop.permute.xlu0 %1098 }
 0x5cd   :  { %v1110_v40 = vmul.f32 %v1099_v11, %v5215_v13 }
 0x5cf   :  { %1118 = vrot.lane.b32.xlu2 %v1110_v40, %s4663_s23 }
 0x5d4   :  { %v1101_v42 = vpop.permute.xlu2 %1100 }
 0x5d5   :  { %v1111_v53 = vmul.f32 %v1101_v42, %v5251_v38 }
 0x5d7   :  { %1120 = vrot.lane.b32.xlu1 %v1111_v53, %s4663_s23 }
 0x5dc   :  { %v1286_v44 = vpop.permute.xlu0 %1285  ;;  %v1288_v46 = vpop.permute.xlu2 %1287 }
 0x5dd   :  { %v1296_v41 = vmul.f32 %v1286_v44, %v5236_v6  ;;  %v1297_v47 = vmul.f32 %v1288_v46, %v5263_v36 }
 0x5df   :  { %1305 = vrot.lane.b32.xlu2 %v1296_v41, %s4663_s23  ;;  %1307 = vrot.lane.b32.xlu1 %v1297_v47, %s4663_s23  ;;  %v39_v41 = vld [vmem:[%s6597_s0 + $0x60] sm:$0xff] }
 0x5e0   :  { %3912 = vmatmul.msk.f32.gmra.mxu0 %vm65_vm0, %v39_v41 }
 0x5f7   :  { %v1103_v18 = vpop.permute.xlu1 %1102 }
 0x5f8   :  { %v1112_v0 = vmul.f32 %v1103_v18, %v5273_v22 }
 0x5fa   :  { %1122 = vrot.lane.b32.xlu0 %v1112_v0, %s4663_s23 }
 0x5fd   :  { %v1105_v32 = vpop.permute.xlu0 %1104 }
 0x5fe   :  { %v1113_v17 = vmul.f32 %v1105_v32, %v5284_v37 }
 0x5ff   :  { %v1290_v8 = vpop.permute.xlu1 %1289 }
 0x600   :  { %v1298_v30 = vmul.f32 %v1290_v8, %v5290_v19  ;;  %1124 = vrot.lane.b32.xlu2 %v1113_v17, %s4663_s23 }
 0x602   :  { %1309 = vrot.lane.b32.xlu0 %v1298_v30, %s4663_s23  ;;  %v41_v30 = vld [vmem:[%s6597_s0 + $0x70] sm:$0xff] }
 0x619   :  { %v1304_v54 = vpop.permute.xlu0 %1303 }
 0x61a   :  { %v5312_v10 = vadd.f32 %v1304_v54, %v1275_v50  ;;  %v5432_v50 = vld [vmem:[%s6602_s5 + $0x18] sm:$0xff]  ;;  %v5444_v54 = vld [vmem:[%s6602_s5 + $0x8] sm:$0xff] }
 0x61c   :  { %4237 = vtanh.f32 %v5312_v10 }
 0x622   :  { %v4238_v56 = vpop.eup %4237 }
 0x623   :  { %1327 = vrot.lane.b32.xlu2 %v4238_v56, %s4662_s22 }
 0x629   :  { %v1119_v62 = vpop.permute.xlu2 %1118 }
 0x62a   :  { %v5318_v12 = vadd.f32 %v1119_v62, %v1090_v59  ;;  %v5450_v59 = vld [vmem:[%s6602_s5] sm:$0xff]  ;;  %v42_v62 = vld [vmem:[%s6597_s0 + $0x78] sm:$0xff] }
 0x62c   :  { %4239 = vtanh.f32 %v5318_v12 }
 0x632   :  { %v4240_v9 = vpop.eup %4239 }
 0x633   :  { %1142 = vrot.lane.b32.xlu1 %v4240_v9, %s4662_s22 }
 0x639   :  { %v1306_v15 = vpop.permute.xlu2 %1305 }
 0x63a   :  { %v5324_v7 = vadd.f32 %v1306_v15, %v1276_v55 }
 0x63c   :  { %4241 = vtanh.f32 %v5324_v7 }
 0x642   :  { %v4242_v21 = vpop.eup %4241 }
 0x643   :  { %1329 = vrot.lane.b32.xlu1 %v4242_v21, %s4662_s22 }
 0x649   :  { %v1121_v52 = vpop.permute.xlu1 %1120 }
 0x64a   :  { %v5330_v25 = vadd.f32 %v1121_v52, %v1091_v60 }
 0x64c   :  { %4243 = vtanh.f32 %v5330_v25 }
 0x651   :  { %v1308_v49 = vpop.permute.xlu1 %1307 }
 0x652   :  { %v4244_v24 = vpop.eup %4243  ;;  %v5335_v5 = vadd.f32 %v1308_v49, %v1277_v23 }
 0x653   :  { %1144 = vrot.lane.b32.xlu0 %v4244_v24, %s4662_s22 }
 0x654   :  { %4245 = vtanh.f32 %v5335_v5 }
 0x65a   :  { %v4246_v43 = vpop.eup %4245  ;;  %v1125_v26 = vpop.permute.xlu2 %1124 }
 0x65b   :  { %v5341_v28 = vadd.f32 %v1125_v26, %v1093_v14  ;;  %1331 = vrot.lane.b32.xlu0 %v4246_v43, %s4662_s22 }
 0x65d   :  { %4247 = vtanh.f32 %v5341_v28  ;;  %v215_v52 = vpop.f32.mrf.mxu0 }
 0x65e   :  { %v216_v23 = vadd.f32 %v5201_v58, %v215_v52 }
 0x663   :  { %v4248_v2 = vpop.eup %4247 }
 0x664   :  { %1148 = vrot.lane.b32.xlu1 %v4248_v2, %s4662_s22 }
 0x66c   :  { %v1123_v34 = vpop.permute.xlu0 %1122 }
 0x66d   :  { %v5348_v35 = vadd.f32 %v1123_v34, %v1092_v31 }
 0x66f   :  { %4249 = vtanh.f32 %v5348_v35 }
 0x674   :  { %v1310_v48 = vpop.permute.xlu0 %1309 }
 0x675   :  { %v4250_v39 = vpop.eup %4249  ;;  %v5353_v11 = vadd.f32 %v1310_v48, %v1278_v27 }
 0x676   :  { %1146 = vrot.lane.b32.xlu2 %v4250_v39, %s4662_s22 }
 0x677   :  { %4251 = vtanh.f32 %v5353_v11 }
 0x67d   :  { %v4252_v40 = vpop.eup %4251  ;;  %v1328_v42 = vpop.permute.xlu2 %1327 }
 0x67e   :  { %1333 = vrot.lane.b32.xlu2 %v4252_v40, %s4662_s22  ;;  %v1339_v20 = vmul.f32 %v1328_v42, %v5206_v57 }
 0x680   :  { %1396 = vrot.lane.b32.xlu1 %v1339_v20, %s4663_s23 }
 0x6a5   :  { %v1143_v53 = vpop.permute.xlu1 %1142 }
 0x6a6   :  { %v5361_v44 = vmul.f32 %v1143_v53, %v5215_v13 }
 0x6a8   :  { %1347 = vrot.lane.b32.xlu0 %v5361_v44, %s4663_s23 }
 0x6b5   :  { %v1330_v16 = vpop.permute.xlu1 %1329 }
 0x6b6   :  { %v1340_v46 = vmul.f32 %v1330_v16, %v5236_v6 }
 0x6b8   :  { %1398 = vrot.lane.b32.xlu0 %v1340_v46, %s4663_s23 }
 0x6c5   :  { %v1145_v57 = vpop.permute.xlu0 %1144 }
 0x6c6   :  { %v5372_v47 = vmul.f32 %v1145_v57, %v5251_v38 }
 0x6c8   :  { %1349 = vrot.lane.b32.xlu2 %v5372_v47, %s4663_s23 }
 0x6cd   :  { %v1332_v13 = vpop.permute.xlu0 %1331 }
 0x6ce   :  { %v1341_v18 = vmul.f32 %v1332_v13, %v5263_v36 }
 0x6d0   :  { %v1147_v0 = vpop.permute.xlu2 %1146  ;;  %1400 = vrot.lane.b32.xlu2 %v1341_v18, %s4663_s23 }
 0x6d1   :  { %v5379_v6 = vmul.f32 %v1147_v0, %v5273_v22  ;;  %v5395_v22 = vld [vmem:[%s6601_s4 + $0x18] sm:$0xff]  ;;  %v5476_v0 = vld [vmem:[%s6603_s6] ss:$0 sm:$0xff] }
 0x6d3   :  { %1351 = vrot.lane.b32.xlu1 %v5379_v6, %s4663_s23 }
 0x6d6   :  { %v1149_v32 = vpop.permute.xlu1 %1148 }
 0x6d7   :  { %v5384_v17 = vmul.f32 %v1149_v32, %v5284_v37  ;;  %v5402_v37 = vld [vmem:[%s6601_s4 + $0x10] sm:$0xff] }
 0x6d8   :  { %v1334_v38 = vpop.permute.xlu2 %1333 }
 0x6d9   :  { %v1342_v8 = vmul.f32 %v1334_v38, %v5290_v19  ;;  %1353 = vrot.lane.b32.xlu0 %v5384_v17, %s4663_s23  ;;  %v5409_v19 = vld [vmem:[%s6601_s4 + $0x8] sm:$0xff] }
 0x6db   :  { %1402 = vrot.lane.b32.xlu1 %v1342_v8, %s4663_s23 }
 0x6f2   :  { %v1397_v36 = vpop.permute.xlu1 %1396 }
 0x6f3   :  { %3976 = vmatmul.msk.f32.vlgmr.msra.gmra.mxu3 %vm293_vm6, %v1397_v36  ;;  %3984 = vmatmul.msk.f32.vlgmr.msrb.gmra.mxu1 %vm293_vm6, %v1397_v36 }
 0x6f4   :  { %2302 = vmatpush.msra.mxu3 %v5395_v22  ;;  %2487 = vmatpush.msrb.mxu1 %v5136_v61  ;;  %v5416_v61 = vld [vmem:[%s6601_s4] sm:$0xff] }
 0x6f6   :  { %2303 = vmatpush.msra.mxu3 %v5402_v37  ;;  %2488 = vmatpush.msrb.mxu1 %v5143_v33  ;;  %v40_v33 = vld [vmem:[%s6597_s0 + $0x68] sm:$0xff] }
 0x6f7   :  { %3913 = vmatmul.msk.f32.gmra.mxu0 %vm65_vm0, %v40_v33 }
 0x6f8   :  { %2304 = vmatpush.msra.mxu3 %v5409_v19  ;;  %2489 = vmatpush.msrb.mxu1 %v5150_v1 }
 0x6fa   :  { %2305 = vmatpush.msra.mxu3 %v5416_v61  ;;  %2490 = vmatpush.msrb.mxu1 %v5157_v3  ;;  %v5438_v3 = vld [vmem:[%s6602_s5 + $0x10] sm:$0xff] }
 0x6ff   :  { %3914 = vmatmul.msk.f32.gmra.mxu0 %vm65_vm0, %v41_v30 }
 0x707   :  { %3915 = vmatmul.msk.f32.gmra.mxu0 %vm65_vm0, %v42_v62 }
 0x71a   :  { %v1348_v1 = vpop.permute.xlu0 %1347 }
 0x71b   :  { %3972 = vmatmul.msk.f32.vlgmr.msra.gmra.mxu2 %vm293_vm6, %v1348_v1 }
 0x71c   :  { %2253 = vmatpush.msra.mxu2 %v5432_v50 }
 0x71e   :  { %2254 = vmatpush.msra.mxu2 %v5438_v3 }
 0x720   :  { %2255 = vmatpush.msra.mxu2 %v5444_v54 }
 0x722   :  { %v1350_v56 = vpop.permute.xlu2 %1349  ;;  %2256 = vmatpush.msra.mxu2 %v5450_v59 }
 0x723   :  { %3973 = vmatmul.msk.f32.gmra.mxu2 %vm293_vm6, %v1350_v56 }
 0x72a   :  { %v1399_v9 = vpop.permute.xlu0 %1398  ;;  %v1401_v55 = vpop.permute.xlu2 %1400 }
 0x72b   :  { %3977 = vmatmul.msk.f32.gmra.mxu3 %vm293_vm6, %v1399_v9  ;;  %3985 = vmatmul.msk.f32.gmra.mxu1 %vm293_vm6, %v1399_v9 }
 0x733   :  { %3978 = vmatmul.msk.f32.gmra.mxu3 %vm293_vm6, %v1401_v55  ;;  %3986 = vmatmul.msk.f32.gmra.mxu1 %vm293_vm6, %v1401_v55 }
 0x745   :  { %v1352_v15 = vpop.permute.xlu1 %1351 }
 0x746   :  { %3974 = vmatmul.msk.f32.gmra.mxu2 %vm293_vm6, %v1352_v15 }
 0x74b   :  { %v1354_v21 = vpop.permute.xlu0 %1353 }
 0x74d   :  { %v1403_v60 = vpop.permute.xlu1 %1402 }
 0x74e   :  { %3975 = vmatmul.msk.f32.gmra.mxu2 %vm293_vm6, %v1354_v21  ;;  %3979 = vmatmul.msk.f32.gmra.mxu3 %vm293_vm6, %v1403_v60 }
 0x74f   :  { %3987 = vmatmul.msk.f32.gmra.mxu1 %vm293_vm6, %v1403_v60 }
 0x770   :  { %v1614_v49 = vpop.f32.mrf.mxu1 }
 0x771   :  { %v1626_v24 = vadd.f32 %v1614_v49, %v216_v23 }
 0x773   :  { %v3988_v14 = vmul.f32 -1.442695, %v1626_v24 }
 0x774   :  { %v218_v18 = vpop.f32.mrf.mxu0 }
 0x775   :  { %4253 = vpow2.f32 %v3988_v14  ;;  %v219_v8 = vadd.f32 %v5201_v58, %v218_v18 }
 0x776   :  { %v1429_v41 = vpop.f32.mrf.mxu3 }
 0x77b   :  { %v4254_v43 = vpop.eup %4253 }
 0x77c   :  { %v1646_v26 = vadd.f32 1.0, %v4254_v43  ;;  %v221_v30 = vpop.f32.mrf.mxu0 }
 0x77d   :  { %v222_v9 = vadd.f32 %v5201_v58, %v221_v30 }
 0x77e   :  { %4255 = vrcp.f32 %v1646_v26  ;;  %v1661_v27 = vand.u32 2147483648, %v1646_v26  ;;  %v1659_v39 = vand.u32 2147483647, %v1646_v26  ;;  %vm1655_vm7 = vweird.f32 %v1646_v26 }
 0x77f   :  { %4257 = vtanh.f32 %v1626_v24 }
 0x780   :  { %v1662_v42 = vor.u32 1.1754944e-38, %v1661_v27  ;;  %vm1660_vm9 = vcmp.eq.f32.partialorder %v1659_v39, 8.507059e+37 }
 0x784   :  { %v4256_v2 = vpop.eup %4255 }
 0x785   :  { %v1651_v31 = vmul.f32 %v4256_v2, %v1646_v26  ;;  %vm1656_vm5 = vweird.f32 %v4256_v2  ;;  %v4258_v53 = vpop.eup %4257 }
 0x786   :  { %vm1657_vm8 = vmor %vm1655_vm7, %vm1656_vm5 }
 0x787   :  { %v1652_v34 = vsub.f32 1.0, %v1651_v31 }
 0x789   :  { %v1653_v48 = vmul.f32 %v4256_v2, %v1652_v34 }
 0x78b   :  { %v1654_v40 = vadd.f32 %v4256_v2, %v1653_v48 }
 0x78d   :  { %v1658_v20 = vsel %vm1657_vm8, %v4256_v2, %v1654_v40 }
 0x78e   :  { %v1663_v16 = vsel %vm1660_vm9, %v1662_v42, %v1658_v20 }
 0x78f   :  { %v5469_v46 = vsel %vm4778_vm4, %v4258_v53, %v1663_v16 }
 0x790   :  { %1722 = vrot.lane.b32.xlu0 %v5469_v46, %s4662_s22 }
 0x79e   :  { %v1380_v57 = vpop.f32.mrf.mxu2 }
 0x79f   :  { %v1430_v13 = vadd.f32 %v1429_v41, %v1380_v57 }
 0x7a1   :  { %v1441_v32 = vadd.f32 %v5476_v0, %v1430_v13 }
 0x7a3   :  { %v3980_v38 = vmul.f32 -1.442695, %v1441_v32 }
 0x7a5   :  { %4259 = vpow2.f32 %v3980_v38 }
 0x7a6   :  { %v1383_v55 = vpop.f32.mrf.mxu2 }
 0x7a8   :  { %v1617_v36 = vpop.f32.mrf.mxu1 }
 0x7a9   :  { %v1627_v33 = vadd.f32 %v1617_v36, %v219_v8 }
 0x7ab   :  { %v4260_v1 = vpop.eup %4259  ;;  %v3989_v56 = vmul.f32 -1.442695, %v1627_v33 }
 0x7ac   :  { %v1461_v62 = vadd.f32 1.0, %v4260_v1 }
 0x7ad   :  { %4261 = vpow2.f32 %v3989_v56 }
 0x7ae   :  { %4263 = vrcp.f32 %v1461_v62  ;;  %v1432_v15 = vpop.f32.mrf.mxu3  ;;  %v1476_v34 = vand.u32 2147483648, %v1461_v62  ;;  %v1474_v48 = vand.u32 2147483647, %v1461_v62  ;;  %vm1470_vm11 = vweird.f32 %v1461_v62 }
 0x7af   :  { %v1433_v21 = vadd.f32 %v1432_v15, %v1383_v55 }
 0x7b0   :  { %v1620_v60 = vpop.f32.mrf.mxu1  ;;  %v1477_v53 = vor.u32 1.1754944e-38, %v1476_v34  ;;  %vm1475_vm13 = vcmp.eq.f32.partialorder %v1474_v48, 8.507059e+37 }
 0x7b1   :  { %v1442_v52 = vadd.f32 %v5476_v0, %v1433_v21  ;;  %v5482_v23 = vadd.f32 %v1620_v60, %v222_v9  ;;  %v224_v60 = vpop.f32.mrf.mxu0 }
 0x7b2   :  { %v225_v34 = vadd.f32 %v5201_v58, %v224_v60 }
 0x7b3   :  { %v4262_v49 = vpop.eup %4261  ;;  %v3981_v24 = vmul.f32 -1.442695, %v1442_v52  ;;  %v3990_v14 = vmul.f32 -1.442695, %v5482_v23 }
 0x7b4   :  { %v4264_v43 = vpop.eup %4263  ;;  %v1647_v26 = vadd.f32 1.0, %v4262_v49 }
 0x7b5   :  { %4265 = vpow2.f32 %v3981_v24  ;;  %v1466_v2 = vmul.f32 %v4264_v43, %v1461_v62  ;;  %vm1471_vm10 = vweird.f32 %v4264_v43 }
 0x7b6   :  { %4267 = vrcp.f32 %v1647_v26  ;;  %vm1472_vm12 = vmor %vm1470_vm11, %vm1471_vm10  ;;  %v1676_v36 = vand.u32 2147483648, %v1647_v26  ;;  %v1674_v1 = vand.u32 2147483647, %v1647_v26  ;;  %vm1670_vm15 = vweird.f32 %v1647_v26 }
 0x7b7   :  { %4269 = vpow2.f32 %v3990_v14  ;;  %v1467_v31 = vsub.f32 1.0, %v1466_v2 }
 0x7b8   :  { %4271 = vtanh.f32 %v1441_v32  ;;  %v1677_v9 = vor.u32 1.1754944e-38, %v1676_v36  ;;  %vm1675_vm2 = vcmp.eq.f32.partialorder %v1674_v1, 8.507059e+37 }
 0x7b9   :  { %v1468_v27 = vmul.f32 %v4264_v43, %v1467_v31  ;;  %v1435_v31 = vpop.f32.mrf.mxu3 }
 0x7bb   :  { %v4266_v39 = vpop.eup %4265  ;;  %v1469_v40 = vadd.f32 %v4264_v43, %v1468_v27 }
 0x7bc   :  { %v4268_v42 = vpop.eup %4267  ;;  %v1462_v20 = vadd.f32 1.0, %v4266_v39 }
 0x7bd   :  { %v4270_v16 = vpop.eup %4269  ;;  %v1473_v41 = vsel %vm1472_vm12, %v4264_v43, %v1469_v40  ;;  %v1666_v57 = vmul.f32 %v4268_v42, %v1647_v26  ;;  %vm1671_vm14 = vweird.f32 %v4268_v42 }
 0x7be   :  { %v4272_v13 = vpop.eup %4271  ;;  %4273 = vrcp.f32 %v1462_v20  ;;  %v5485_v18 = vadd.f32 1.0, %v4270_v16  ;;  %v1478_v32 = vsel %vm1475_vm13, %v1477_v53, %v1473_v41  ;;  %vm1672_vm1 = vmor %vm1670_vm15, %vm1671_vm14  ;;  %v1489_v26 = vand.u32 2147483647, %v1462_v20 }
 0x7bf   :  { %4275 = vtanh.f32 %v1627_v33  ;;  %v5489_v38 = vsel %vm4778_vm4, %v4272_v13, %v1478_v32  ;;  %v1667_v8 = vsub.f32 1.0, %v1666_v57  ;;  %v1491_v2 = vand.u32 2147483648, %v1462_v20 }
 0x7c0   :  { %4277 = vrcp.f32 %v5485_v18  ;;  %1537 = vrot.lane.b32.xlu2 %v5489_v38, %s4662_s22  ;;  %vm1485_vm5 = vweird.f32 %v1462_v20  ;;  %vm1490_vm8 = vcmp.eq.f32.partialorder %v1489_v26, 8.507059e+37  ;;  %vm1685_vm10 = vweird.f32 %v5485_v18 }
 0x7c1   :  { %v1668_v30 = vmul.f32 %v4268_v42, %v1667_v8  ;;  %4279 = vtanh.f32 %v1442_v52  ;;  %v1492_v52 = vor.u32 1.1754944e-38, %v1491_v2 }
 0x7c2   :  { %4281 = vtanh.f32 %v5482_v23 }
 0x7c3   :  { %v1669_v56 = vadd.f32 %v4268_v42, %v1668_v30  ;;  %v1691_v30 = vand.u32 2147483648, %v5485_v18 }
 0x7c4   :  { %v4274_v62 = vpop.eup %4273 }
 0x7c5   :  { %v4276_v33 = vpop.eup %4275  ;;  %v1673_v55 = vsel %vm1672_vm1, %v4268_v42, %v1669_v56  ;;  %v1481_v15 = vmul.f32 %v4274_v62, %v1462_v20  ;;  %vm1486_vm3 = vweird.f32 %v4274_v62  ;;  %v1689_v56 = vand.u32 2147483647, %v5485_v18 }
 0x7c6   :  { %v4278_v21 = vpop.eup %4277  ;;  %v1678_v49 = vsel %vm1675_vm2, %v1677_v9, %v1673_v55  ;;  %vm1487_vm7 = vmor %vm1485_vm5, %vm1486_vm3  ;;  %v1692_v55 = vor.u32 1.1754944e-38, %v1691_v30 }
 0x7c7   :  { %v5496_v24 = vsel %vm4778_vm4, %v4276_v33, %v1678_v49  ;;  %v1482_v14 = vsub.f32 1.0, %v1481_v15  ;;  %v1681_v43 = vmul.f32 %v4278_v21, %v5485_v18  ;;  %vm1686_vm9 = vweird.f32 %v4278_v21  ;;  %v4280_v8 = vpop.eup %4279 }
 0x7c8   :  { %1724 = vrot.lane.b32.xlu2 %v5496_v24, %s4662_s22  ;;  %vm1687_vm11 = vmor %vm1685_vm10, %vm1686_vm9  ;;  %vm1690_vm12 = vcmp.eq.f32.partialorder %v1689_v56, 8.507059e+37  ;;  %v4282_v15 = vpop.eup %4281 }
 0x7c9   :  { %v1386_v27 = vpop.f32.mrf.mxu2  ;;  %v1483_v48 = vmul.f32 %v4274_v62, %v1482_v14  ;;  %v1682_v39 = vsub.f32 1.0, %v1681_v43 }
 0x7ca   :  { %v1436_v40 = vadd.f32 %v1435_v31, %v1386_v27 }
 0x7cb   :  { %v1484_v42 = vadd.f32 %v4274_v62, %v1483_v48  ;;  %v1683_v53 = vmul.f32 %v4278_v21, %v1682_v39 }
 0x7cc   :  { %v1443_v16 = vadd.f32 %v5476_v0, %v1436_v40  ;;  %v1623_v41 = vpop.f32.mrf.mxu1 }
 0x7cd   :  { %v1629_v57 = vadd.f32 %v1623_v41, %v225_v34  ;;  %v1488_v13 = vsel %vm1487_vm7, %v4274_v62, %v1484_v42  ;;  %v1684_v32 = vadd.f32 %v4278_v21, %v1683_v53 }
 0x7ce   :  { %v3982_v58 = vmul.f32 -1.442695, %v1443_v16  ;;  %v1493_v36 = vsel %vm1490_vm8, %v1492_v52, %v1488_v13 }
 0x7cf   :  { %v3991_v1 = vmul.f32 -1.442695, %v1629_v57  ;;  %v5507_v20 = vsel %vm4778_vm4, %v4280_v8, %v1493_v36  ;;  %v1688_v9 = vsel %vm1687_vm11, %v4278_v21, %v1684_v32 }
 0x7d0   :  { %4283 = vpow2.f32 %v3982_v58  ;;  %1539 = vrot.lane.b32.xlu1 %v5507_v20, %s4662_s22  ;;  %v1693_v49 = vsel %vm1690_vm12, %v1692_v55, %v1688_v9 }
 0x7d1   :  { %4285 = vpow2.f32 %v3991_v1  ;;  %v1389_v23 = vpop.f32.mrf.mxu2  ;;  %v1438_v62 = vpop.f32.mrf.mxu3  ;;  %v5516_v2 = vsel %vm4778_vm4, %v4282_v15, %v1693_v49 }
 0x7d2   :  { %v1439_v33 = vadd.f32 %v1438_v62, %v1389_v23 }
 0x7d4   :  { %v1444_v60 = vadd.f32 %v5476_v0, %v1439_v33 }
 0x7d6   :  { %v4284_v14 = vpop.eup %4283  ;;  %v3983_v43 = vmul.f32 -1.442695, %v1444_v60 }
 0x7d7   :  { %v4286_v26 = vpop.eup %4285  ;;  %v1463_v18 = vadd.f32 1.0, %v4284_v14 }
 0x7d8   :  { %v1649_v31 = vadd.f32 1.0, %v4286_v26  ;;  %4287 = vpow2.f32 %v3983_v43  ;;  %1726 = vrot.lane.b32.xlu1 %v5516_v2, %s4662_s22 }
 0x7d9   :  { %4289 = vrcp.f32 %v1463_v18  ;;  %v1504_v53 = vand.u32 2147483647, %v1463_v18  ;;  %v1506_v41 = vand.u32 2147483648, %v1463_v18  ;;  %vm1500_vm14 = vweird.f32 %v1463_v18 }
 0x7da   :  { %4291 = vrcp.f32 %v1649_v31  ;;  %vm1700_vm3 = vweird.f32 %v1649_v31  ;;  %v1704_v55 = vand.u32 2147483647, %v1649_v31 }
 0x7db   :  { %vm1505_vm1 = vcmp.eq.f32.partialorder %v1504_v53, 8.507059e+37  ;;  %v1507_v36 = vor.u32 1.1754944e-38, %v1506_v41 }
 0x7dc   :  { %vm1705_vm9 = vcmp.eq.f32.partialorder %v1704_v55, 8.507059e+37 }
 0x7de   :  { %v4288_v21 = vpop.eup %4287 }
 0x7df   :  { %v4290_v34 = vpop.eup %4289  ;;  %v1464_v27 = vadd.f32 1.0, %v4288_v21 }
 0x7e0   :  { %v4292_v48 = vpop.eup %4291  ;;  %v1496_v39 = vmul.f32 %v4290_v34, %v1463_v18  ;;  %vm1501_vm13 = vweird.f32 %v4290_v34 }
 0x7e1   :  { %4293 = vrcp.f32 %v1464_v27  ;;  %v1696_v42 = vmul.f32 %v4292_v48, %v1649_v31  ;;  %vm1502_vm15 = vmor %vm1500_vm14, %vm1501_vm13  ;;  %vm1701_vm2 = vweird.f32 %v4292_v48  ;;  %v1521_v15 = vand.u32 2147483648, %v1464_v27 }
 0x7e2   :  { %v1497_v40 = vsub.f32 1.0, %v1496_v39  ;;  %4295 = vtanh.f32 %v1443_v16  ;;  %v1706_v16 = vand.u32 2147483648, %v1649_v31  ;;  %vm1702_vm5 = vmor %vm1700_vm3, %vm1701_vm2  ;;  %v1519_v14 = vand.u32 2147483647, %v1464_v27 }
 0x7e3   :  { %v1697_v13 = vsub.f32 1.0, %v1696_v42  ;;  %4297 = vtanh.f32 %v1629_v57  ;;  %vm1515_vm8 = vweird.f32 %v1464_v27  ;;  %v1522_v21 = vor.u32 1.1754944e-38, %v1521_v15 }
 0x7e4   :  { %v1498_v52 = vmul.f32 %v4290_v34, %v1497_v40  ;;  %4299 = vtanh.f32 %v1444_v60  ;;  %v1707_v57 = vor.u32 1.1754944e-38, %v1706_v16  ;;  %vm1520_vm11 = vcmp.eq.f32.partialorder %v1519_v14, 8.507059e+37 }
 0x7e5   :  { %v1698_v8 = vmul.f32 %v4292_v48, %v1697_v13  ;;  %v1529_v14 = vmul.f32 %v5489_v38, %v5318_v12  ;;  %v1530_v12 = vmul.f32 %v5507_v20, %v5330_v25 }
 0x7e6   :  { %v1499_v32 = vadd.f32 %v4290_v34, %v1498_v52 }
 0x7e7   :  { %v4294_v58 = vpop.eup %4293  ;;  %v1699_v56 = vadd.f32 %v4292_v48, %v1698_v8 }
 0x7e8   :  { %v1503_v30 = vsel %vm1502_vm15, %v4290_v34, %v1499_v32  ;;  %v1511_v1 = vmul.f32 %v4294_v58, %v1464_v27  ;;  %v4296_v23 = vpop.eup %4295  ;;  %vm1516_vm7 = vweird.f32 %v4294_v58 }
 0x7e9   :  { %v1508_v62 = vsel %vm1505_vm1, %v1507_v36, %v1503_v30  ;;  %v1703_v43 = vsel %vm1702_vm5, %v4292_v48, %v1699_v56  ;;  %v4298_v18 = vpop.eup %4297  ;;  %vm1517_vm10 = vmor %vm1515_vm8, %vm1516_vm7 }
 0x7ea   :  { %v5522_v9 = vsel %vm4778_vm4, %v4296_v23, %v1508_v62  ;;  %v1512_v33 = vsub.f32 1.0, %v1511_v1  ;;  %v1708_v34 = vsel %vm1705_vm9, %v1707_v57, %v1703_v43  ;;  %v4300_v60 = vpop.eup %4299  ;;  %v1714_v62 = vmul.f32 %v5469_v46, %v5312_v10 }
 0x7eb   :  { %1541 = vrot.lane.b32.xlu0 %v5522_v9, %s4662_s22  ;;  %v5532_v42 = vsel %vm4778_vm4, %v4298_v18, %v1708_v34  ;;  %v1715_v57 = vmul.f32 %v5496_v24, %v5324_v7  ;;  %v1531_v7 = vmul.f32 %v5522_v9, %v5348_v35 }
 0x7ec   :  { %v1513_v49 = vmul.f32 %v4294_v58, %v1512_v33  ;;  %v1717_v35 = vmul.f32 %v5532_v42, %v5353_v11 }
 0x7ee   :  { %v1514_v26 = vadd.f32 %v4294_v58, %v1513_v49 }
 0x7f0   :  { %v1518_v39 = vsel %vm1517_vm10, %v4294_v58, %v1514_v26 }
 0x7f1   :  { %v1523_v31 = vsel %vm1520_vm11, %v1522_v21, %v1518_v39 }
 0x7f2   :  { %v5528_v40 = vsel %vm4778_vm4, %v4300_v60, %v1523_v31 }
 0x7f3   :  { %1543 = vrot.lane.b32.xlu2 %v5528_v40, %s4662_s22  ;;  %1728 = vrot.lane.b32.xlu0 %v5532_v42, %s4662_s22  ;;  %v1532_v25 = vmul.f32 %v5528_v40, %v5341_v28 }
 0x802   :  { %v1723_v27 = vpop.permute.xlu0 %1722 }
 0x803   :  { %v1734_v48 = vmul.f32 %v1723_v27, %v5469_v46 }
 0x805   :  { %1742 = vrot.lane.b32.xlu2 %v1734_v48, %s4663_s23  ;;  %v1716_v48 = vmul.f32 %v5516_v2, %v5335_v5 }
 0x81a   :  { %v1538_v53 = vpop.permute.xlu2 %1537 }
 0x81b   :  { %v1549_v41 = vmul.f32 %v1538_v53, %v5489_v38 }
 0x81d   :  { %1557 = vrot.lane.b32.xlu1 %v1549_v41, %s4663_s23 }
 0x822   :  { %v1725_v52 = vpop.permute.xlu2 %1724 }
 0x823   :  { %v1735_v13 = vmul.f32 %v1725_v52, %v5496_v24 }
 0x825   :  { %1744 = vrot.lane.b32.xlu1 %v1735_v13, %s4663_s23 }
 0x842   :  { %v1540_v32 = vpop.permute.xlu1 %1539 }
 0x843   :  { %v1550_v8 = vmul.f32 %v1540_v32, %v5507_v20 }
 0x845   :  { %1559 = vrot.lane.b32.xlu0 %v1550_v8, %s4663_s23 }
 0x84a   :  { %v1727_v58 = vpop.permute.xlu1 %1726 }
 0x84b   :  { %v1736_v36 = vmul.f32 %v1727_v58, %v5516_v2 }
 0x84d   :  { %v1544_v30 = vpop.permute.xlu2 %1543  ;;  %1746 = vrot.lane.b32.xlu0 %v1736_v36, %s4663_s23 }
 0x84e   :  { %v1552_v1 = vmul.f32 %v1544_v30, %v5528_v40 }
 0x850   :  { %1563 = vrot.lane.b32.xlu1 %v1552_v1, %s4663_s23 }
 0x85d   :  { %v1542_v56 = vpop.permute.xlu0 %1541 }
 0x85e   :  { %v1551_v23 = vmul.f32 %v1542_v56, %v5522_v9 }
 0x85f   :  { %v1743_v16 = vpop.permute.xlu2 %1742 }
 0x860   :  { %1561 = vrot.lane.b32.xlu2 %v1551_v23, %s4663_s23  ;;  %v5554_v33 = vadd.f32 %v1743_v16, %v1714_v62 }
 0x862   :  { %4301 = vtanh.f32 %v5554_v33 }
 0x865   :  { %v1729_v55 = vpop.permute.xlu0 %1728 }
 0x866   :  { %v1737_v15 = vmul.f32 %v1729_v55, %v5532_v42 }
 0x868   :  { %v4302_v49 = vpop.eup %4301  ;;  %1748 = vrot.lane.b32.xlu2 %v1737_v15, %s4663_s23 }
 0x869   :  { %1766 = vrot.lane.b32.xlu1 %v4302_v49, %s4662_s22 }
 0x88f   :  { %v1558_v43 = vpop.permute.xlu1 %1557 }
 0x890   :  { %v5562_v10 = vadd.f32 %v1558_v43, %v1529_v14 }
 0x892   :  { %4303 = vtanh.f32 %v5562_v10 }
 0x897   :  { %v1745_v26 = vpop.permute.xlu1 %1744 }
 0x898   :  { %v4304_v18 = vpop.eup %4303  ;;  %v5567_v21 = vadd.f32 %v1745_v26, %v1715_v57 }
 0x899   :  { %1581 = vrot.lane.b32.xlu0 %v4304_v18, %s4662_s22 }
 0x89a   :  { %4305 = vtanh.f32 %v5567_v21 }
 0x8a0   :  { %v4306_v34 = vpop.eup %4305 }
 0x8a1   :  { %1768 = vrot.lane.b32.xlu0 %v4306_v34, %s4662_s22 }
 0x8b7   :  { %v1560_v39 = vpop.permute.xlu0 %1559 }
 0x8b8   :  { %v5574_v60 = vadd.f32 %v1560_v39, %v1530_v12 }
 0x8ba   :  { %4307 = vtanh.f32 %v5574_v60  ;;  %v1562_v31 = vpop.permute.xlu2 %1561 }
 0x8bb   :  { %v5579_v27 = vadd.f32 %v1562_v31, %v1531_v7  ;;  %v5693_v7 = vld [vmem:[%s6600_s3] ss:$0 sm:$0xff] }
 0x8bd   :  { %4309 = vtanh.f32 %v5579_v27 }
 0x8bf   :  { %v1747_v53 = vpop.permute.xlu0 %1746 }
 0x8c0   :  { %v4308_v41 = vpop.eup %4307  ;;  %v5584_v52 = vadd.f32 %v1747_v53, %v1716_v48 }
 0x8c1   :  { %1583 = vrot.lane.b32.xlu2 %v4308_v41, %s4662_s22 }
 0x8c2   :  { %4311 = vtanh.f32 %v5584_v52  ;;  %v1564_v13 = vpop.permute.xlu1 %1563  ;;  %v1749_v32 = vpop.permute.xlu2 %1748 }
 0x8c3   :  { %v4310_v8 = vpop.eup %4309  ;;  %v5592_v58 = vadd.f32 %v1564_v13, %v1532_v25  ;;  %v5594_v5 = vadd.f32 %v1749_v32, %v1717_v35 }
 0x8c4   :  { %1585 = vrot.lane.b32.xlu1 %v4310_v8, %s4662_s22 }
 0x8c5   :  { %4313 = vtanh.f32 %v5592_v58 }
 0x8c6   :  { %4315 = vtanh.f32 %v5594_v5 }
 0x8c8   :  { %v4312_v28 = vpop.eup %4311 }
 0x8c9   :  { %1770 = vrot.lane.b32.xlu2 %v4312_v28, %s4662_s22 }
 0x8cb   :  { %v4314_v11 = vpop.eup %4313 }
 0x8cc   :  { %v4316_v36 = vpop.eup %4315  ;;  %1587 = vrot.lane.b32.xlu0 %v4314_v11, %s4662_s22 }
 0x8cd   :  { %1772 = vrot.lane.b32.xlu1 %v4316_v36, %s4662_s22 }
 0x8db   :  { %v1767_v30 = vpop.permute.xlu1 %1766 }
 0x8dc   :  { %v1778_v1 = vmul.f32 %v1767_v30, %v5469_v46  ;;  %v43_v46 = vld [vmem:[%s6597_s0 + $0x80] sm:$0xff] }
 0x8dd   :  { %3916 = vmatmul.msk.f32.gmra.mxu0 %vm65_vm0, %v43_v46 }
 0x8de   :  { %1835 = vrot.lane.b32.xlu0 %v1778_v1, %s4663_s23 }
 0x90b   :  { %v1582_v56 = vpop.permute.xlu0 %1581 }
 0x90c   :  { %v5605_v23 = vmul.f32 %v1582_v56, %v5489_v38 }
 0x90e   :  { %1786 = vrot.lane.b32.xlu2 %v5605_v23, %s4663_s23 }
 0x913   :  { %v1769_v62 = vpop.permute.xlu0 %1768 }
 0x914   :  { %v1779_v16 = vmul.f32 %v1769_v62, %v5496_v24 }
 0x916   :  { %1837 = vrot.lane.b32.xlu2 %v1779_v16, %s4663_s23 }
 0x91b   :  { %v1584_v55 = vpop.permute.xlu2 %1583 }
 0x91c   :  { %v5612_v15 = vmul.f32 %v1584_v55, %v5507_v20 }
 0x91e   :  { %1788 = vrot.lane.b32.xlu1 %v5612_v15, %s4663_s23 }
 0x923   :  { %v1771_v38 = vpop.permute.xlu2 %1770 }
 0x924   :  { %v1780_v49 = vmul.f32 %v1771_v38, %v5516_v2  ;;  %v44_v2 = vld [vmem:[%s6597_s0 + $0x88] sm:$0xff] }
 0x925   :  { %3917 = vmatmul.msk.f32.gmra.mxu0 %vm65_vm0, %v44_v2 }
 0x926   :  { %1839 = vrot.lane.b32.xlu1 %v1780_v49, %s4663_s23 }
 0x936   :  { %v1586_v24 = vpop.permute.xlu1 %1585 }
 0x937   :  { %v5623_v14 = vmul.f32 %v1586_v24, %v5522_v9 }
 0x939   :  { %1790 = vrot.lane.b32.xlu0 %v5623_v14, %s4663_s23 }
 0x93e   :  { %v1588_v20 = vpop.permute.xlu0 %1587 }
 0x93f   :  { %v5628_v43 = vmul.f32 %v1588_v20, %v5528_v40  ;;  %v1773_v57 = vpop.permute.xlu1 %1772  ;;  %v5644_v40 = vld [vmem:[%s6599_s2 + $0x18] sm:$0xff] }
 0x940   :  { %v1781_v26 = vmul.f32 %v1773_v57, %v5532_v42  ;;  %v5651_v42 = vld [vmem:[%s6599_s2 + $0x10] sm:$0xff] }
 0x941   :  { %1792 = vrot.lane.b32.xlu2 %v5628_v43, %s4663_s23 }
 0x942   :  { %1841 = vrot.lane.b32.xlu0 %v1781_v26, %s4663_s23 }
 0x950   :  { %v1836_v9 = vpop.permute.xlu0 %1835 }
 0x951   :  { %3996 = vmatmul.msk.f32.vlgmr.msrb.gmra.mxu3 %vm293_vm6, %v1836_v9  ;;  %4004 = vmatmul.msk.f32.vlgmr.msra.gmra.mxu1 %vm293_vm6, %v1836_v9 }
 0x952   :  { %2741 = vmatpush.msrb.mxu3 %v5395_v22  ;;  %2926 = vmatpush.msra.mxu1 %v5644_v40  ;;  %v5658_v22 = vld [vmem:[%s6599_s2 + $0x8] sm:$0xff] }
 0x954   :  { %2742 = vmatpush.msrb.mxu3 %v5402_v37  ;;  %2927 = vmatpush.msra.mxu1 %v5651_v42  ;;  %v5665_v37 = vld [vmem:[%s6599_s2] sm:$0xff] }
 0x956   :  { %2743 = vmatpush.msrb.mxu3 %v5409_v19  ;;  %2928 = vmatpush.msra.mxu1 %v5658_v22 }
 0x958   :  { %2744 = vmatpush.msrb.mxu3 %v5416_v61  ;;  %2929 = vmatpush.msra.mxu1 %v5665_v37  ;;  %v45_v61 = vld [vmem:[%s6597_s0 + $0x90] sm:$0xff] }
 0x959   :  { %3918 = vmatmul.msk.f32.gmra.mxu0 %vm65_vm0, %v45_v61 }
 0x95a   :  { %v227_v39 = vpop.f32.mrf.mxu0 }
 0x95b   :  { %v228_v31 = vadd.f32 %v5693_v7, %v227_v39 }
 0x968   :  { %v1787_v18 = vpop.permute.xlu2 %1786 }
 0x969   :  { %3992 = vmatmul.msk.f32.vlgmr.msrb.gmra.mxu2 %vm293_vm6, %v1787_v18 }
 0x96a   :  { %2692 = vmatpush.msrb.mxu2 %v5432_v50  ;;  %v46_v50 = vld [vmem:[%s6597_s0 + $0x98] sm:$0xff] }
 0x96b   :  { %3919 = vmatmul.msk.f32.gmra.mxu0 %vm65_vm0, %v46_v50 }
 0x96c   :  { %2693 = vmatpush.msrb.mxu2 %v5438_v3 }
 0x96e   :  { %2694 = vmatpush.msrb.mxu2 %v5444_v54 }
 0x970   :  { %v1838_v19 = vpop.permute.xlu2 %1837  ;;  %2695 = vmatpush.msrb.mxu2 %v5450_v59 }
 0x971   :  { %3997 = vmatmul.msk.f32.gmra.mxu3 %vm293_vm6, %v1838_v19  ;;  %4005 = vmatmul.msk.f32.gmra.mxu1 %vm293_vm6, %v1838_v19 }
 0x990   :  { %v1789_v3 = vpop.permute.xlu1 %1788 }
 0x991   :  { %3993 = vmatmul.msk.f32.gmra.mxu2 %vm293_vm6, %v1789_v3 }
 0x998   :  { %v1840_v54 = vpop.permute.xlu1 %1839 }
 0x999   :  { %3998 = vmatmul.msk.f32.gmra.mxu3 %vm293_vm6, %v1840_v54  ;;  %4006 = vmatmul.msk.f32.gmra.mxu1 %vm293_vm6, %v1840_v54 }
 0x99b   :  { %v1793_v34 = vpop.permute.xlu2 %1792 }
 0x9a2   :  { %v230_v30 = vpop.f32.mrf.mxu0 }
 0x9a3   :  { %v231_v62 = vadd.f32 %v5693_v7, %v230_v30 }
 0x9ab   :  { %v1791_v59 = vpop.permute.xlu0 %1790 }
 0x9ac   :  { %3994 = vmatmul.msk.f32.gmra.mxu2 %vm293_vm6, %v1791_v59 }
 0x9b4   :  { %v1842_v12 = vpop.permute.xlu0 %1841  ;;  %3995 = vmatmul.msk.f32.gmra.mxu2 %vm293_vm6, %v1793_v34 }
 0x9b5   :  { %3999 = vmatmul.msk.f32.gmra.mxu3 %vm293_vm6, %v1842_v12  ;;  %4007 = vmatmul.msk.f32.gmra.mxu1 %vm293_vm6, %v1842_v12 }
 0x9ce   :  { %v2053_v48 = vpop.f32.mrf.mxu1 }
 0x9cf   :  { %v2065_v53 = vadd.f32 %v2053_v48, %v228_v31 }
 0x9d1   :  { %v4008_v41 = vmul.f32 -1.442695, %v2065_v53 }
 0x9d3   :  { %4317 = vpow2.f32 %v4008_v41 }
 0x9d4   :  { %v1868_v46 = vpop.f32.mrf.mxu3 }
 0x9d9   :  { %v4318_v25 = vpop.eup %4317 }
 0x9da   :  { %v2085_v35 = vadd.f32 1.0, %v4318_v25 }
 0x9dc   :  { %4319 = vrcp.f32 %v2085_v35  ;;  %v2100_v28 = vand.u32 2147483648, %v2085_v35  ;;  %v2098_v36 = vand.u32 2147483647, %v2085_v35  ;;  %vm2094_vm13 = vweird.f32 %v2085_v35 }
 0x9dd   :  { %4321 = vtanh.f32 %v2065_v53 }
 0x9de   :  { %v2101_v56 = vor.u32 1.1754944e-38, %v2100_v28  ;;  %vm2099_vm15 = vcmp.eq.f32.partialorder %v2098_v36, 8.507059e+37 }
 0x9e2   :  { %v4320_v13 = vpop.eup %4319 }
 0x9e3   :  { %v2090_v32 = vmul.f32 %v4320_v13, %v2085_v35  ;;  %vm2095_vm12 = vweird.f32 %v4320_v13  ;;  %v4322_v55 = vpop.eup %4321 }
 0x9e4   :  { %vm2096_vm14 = vmor %vm2094_vm13, %vm2095_vm12 }
 0x9e5   :  { %v2091_v8 = vsub.f32 1.0, %v2090_v32 }
 0x9e7   :  { %v2092_v11 = vmul.f32 %v4320_v13, %v2091_v8 }
 0x9e9   :  { %v2093_v1 = vadd.f32 %v4320_v13, %v2092_v11 }
 0x9eb   :  { %v2097_v16 = vsel %vm2096_vm14, %v4320_v13, %v2093_v1 }
 0x9ec   :  { %v1819_v38 = vpop.f32.mrf.mxu2  ;;  %v2102_v49 = vsel %vm2099_vm15, %v2101_v56, %v2097_v16 }
 0x9ed   :  { %v1869_v24 = vadd.f32 %v1868_v46, %v1819_v38  ;;  %v5699_v20 = vsel %vm4778_vm4, %v4322_v55, %v2102_v49 }
 0x9ee   :  { %2161 = vrot.lane.b32.xlu2 %v5699_v20, %s4662_s22  ;;  %v2056_v57 = vpop.f32.mrf.mxu1 }
 0x9ef   :  { %v1880_v26 = vadd.f32 %v5476_v0, %v1869_v24  ;;  %v2066_v2 = vadd.f32 %v2056_v57, %v231_v62  ;;  %v233_v62 = vpop.f32.mrf.mxu0 }
 0x9f0   :  { %v234_v46 = vadd.f32 %v5693_v7, %v233_v62 }
 0x9f1   :  { %v4000_v9 = vmul.f32 -1.442695, %v1880_v26  ;;  %v4009_v18 = vmul.f32 -1.442695, %v2066_v2 }
 0x9f3   :  { %4323 = vpow2.f32 %v4000_v9 }
 0x9f4   :  { %4325 = vpow2.f32 %v4009_v18  ;;  %v1871_v49 = vpop.f32.mrf.mxu3 }
 0x9f9   :  { %v4324_v19 = vpop.eup %4323 }
 0x9fa   :  { %v4326_v61 = vpop.eup %4325  ;;  %v1900_v50 = vadd.f32 1.0, %v4324_v19 }
 0x9fb   :  { %v2086_v3 = vadd.f32 1.0, %v4326_v61 }
 0x9fc   :  { %4327 = vrcp.f32 %v1900_v50  ;;  %v1915_v31 = vand.u32 2147483648, %v1900_v50  ;;  %v1913_v41 = vand.u32 2147483647, %v1900_v50  ;;  %vm1909_vm2 = vweird.f32 %v1900_v50 }
 0x9fd   :  { %4329 = vrcp.f32 %v2086_v3  ;;  %v2115_v36 = vand.u32 2147483648, %v2086_v3  ;;  %vm2109_vm8 = vweird.f32 %v2086_v3  ;;  %v2113_v1 = vand.u32 2147483647, %v2086_v3 }
 0x9fe   :  { %4331 = vtanh.f32 %v1880_v26  ;;  %v1916_v13 = vor.u32 1.1754944e-38, %v1915_v31  ;;  %vm1914_vm5 = vcmp.eq.f32.partialorder %v1913_v41, 8.507059e+37  ;;  %v236_v31 = vpop.f32.mrf.mxu0 }
 0x9ff   :  { %4333 = vtanh.f32 %v2066_v2  ;;  %v2116_v16 = vor.u32 1.1754944e-38, %v2115_v36  ;;  %vm2114_vm10 = vcmp.eq.f32.partialorder %v2113_v1, 8.507059e+37 }
 0xa02   :  { %v4328_v54 = vpop.eup %4327 }
 0xa03   :  { %v4330_v59 = vpop.eup %4329  ;;  %v1905_v34 = vmul.f32 %v4328_v54, %v1900_v50  ;;  %vm1910_vm1 = vweird.f32 %v4328_v54 }
 0xa04   :  { %v2105_v12 = vmul.f32 %v4330_v59, %v2086_v3  ;;  %vm1911_vm3 = vmor %vm1909_vm2, %vm1910_vm1  ;;  %vm2110_vm7 = vweird.f32 %v4330_v59  ;;  %v4332_v28 = vpop.eup %4331 }
 0xa05   :  { %v1906_v39 = vsub.f32 1.0, %v1905_v34  ;;  %vm2111_vm9 = vmor %vm2109_vm8, %vm2110_vm7  ;;  %v4334_v38 = vpop.eup %4333 }
 0xa06   :  { %v2106_v48 = vsub.f32 1.0, %v2105_v12 }
 0xa07   :  { %v1907_v53 = vmul.f32 %v4328_v54, %v1906_v39 }
 0xa08   :  { %v2107_v25 = vmul.f32 %v4330_v59, %v2106_v48 }
 0xa09   :  { %v1908_v35 = vadd.f32 %v4328_v54, %v1907_v53 }
 0xa0a   :  { %v2108_v8 = vadd.f32 %v4330_v59, %v2107_v25 }
 0xa0b   :  { %v1912_v32 = vsel %vm1911_vm3, %v4328_v54, %v1908_v35 }
 0xa0c   :  { %v1917_v11 = vsel %vm1914_vm5, %v1916_v13, %v1912_v32  ;;  %v2112_v56 = vsel %vm2111_vm9, %v4330_v59, %v2108_v8  ;;  %v237_v32 = vadd.f32 %v5693_v7, %v236_v31 }
 0xa0d   :  { %v5706_v30 = vsel %vm4778_vm4, %v4332_v28, %v1917_v11  ;;  %v2117_v55 = vsel %vm2114_vm10, %v2116_v16, %v2112_v56 }
 0xa0e   :  { %1976 = vrot.lane.b32.xlu1 %v5706_v30, %s4662_s22  ;;  %v5713_v26 = vsel %vm4778_vm4, %v4334_v38, %v2117_v55 }
 0xa14   :  { %v1822_v24 = vpop.f32.mrf.mxu2 }
 0xa15   :  { %v1872_v57 = vadd.f32 %v1871_v49, %v1822_v24 }
 0xa16   :  { %2163 = vrot.lane.b32.xlu1 %v5713_v26, %s4662_s22  ;;  %v2059_v2 = vpop.f32.mrf.mxu1 }
 0xa17   :  { %v1881_v9 = vadd.f32 %v5476_v0, %v1872_v57  ;;  %v2067_v18 = vadd.f32 %v2059_v2, %v234_v46 }
 0xa19   :  { %v4001_v19 = vmul.f32 -1.442695, %v1881_v9  ;;  %v4010_v61 = vmul.f32 -1.442695, %v2067_v18 }
 0xa1b   :  { %4335 = vpow2.f32 %v4001_v19 }
 0xa1c   :  { %4337 = vpow2.f32 %v4010_v61  ;;  %v1874_v13 = vpop.f32.mrf.mxu3 }
 0xa21   :  { %v4336_v50 = vpop.eup %4335 }
 0xa22   :  { %v4338_v3 = vpop.eup %4337  ;;  %v1901_v54 = vadd.f32 1.0, %v4336_v50 }
 0xa23   :  { %v2087_v59 = vadd.f32 1.0, %v4338_v3 }
 0xa24   :  { %4339 = vrcp.f32 %v1901_v54  ;;  %v1928_v41 = vand.u32 2147483647, %v1901_v54  ;;  %v1930_v25 = vand.u32 2147483648, %v1901_v54  ;;  %vm1924_vm12 = vweird.f32 %v1901_v54 }
 0xa25   :  { %4341 = vrcp.f32 %v2087_v59  ;;  %v2130_v2 = vand.u32 2147483648, %v2087_v59  ;;  %vm2124_vm1 = vweird.f32 %v2087_v59  ;;  %v2128_v61 = vand.u32 2147483647, %v2087_v59 }
 0xa26   :  { %4343 = vtanh.f32 %v1881_v9  ;;  %vm1929_vm14 = vcmp.eq.f32.partialorder %v1928_v41, 8.507059e+37  ;;  %v1931_v16 = vor.u32 1.1754944e-38, %v1930_v25 }
 0xa27   :  { %4345 = vtanh.f32 %v2067_v18  ;;  %vm2129_vm3 = vcmp.eq.f32.partialorder %v2128_v61, 8.507059e+37 }
 0xa2a   :  { %v4340_v34 = vpop.eup %4339 }
 0xa2b   :  { %v4342_v12 = vpop.eup %4341  ;;  %v1920_v39 = vmul.f32 %v4340_v34, %v1901_v54  ;;  %vm1925_vm11 = vweird.f32 %v4340_v34  ;;  %v2131_v54 = vor.u32 1.1754944e-38, %v2130_v2 }
 0xa2c   :  { %v2120_v48 = vmul.f32 %v4342_v12, %v2087_v59  ;;  %vm1926_vm13 = vmor %vm1924_vm12, %vm1925_vm11  ;;  %vm2125_vm15 = vweird.f32 %v4342_v12  ;;  %v4344_v49 = vpop.eup %4343 }
 0xa2d   :  { %v1921_v53 = vsub.f32 1.0, %v1920_v39  ;;  %vm2126_vm2 = vmor %vm2124_vm1, %vm2125_vm15  ;;  %v4346_v39 = vpop.eup %4345 }
 0xa2e   :  { %v2121_v35 = vsub.f32 1.0, %v2120_v48 }
 0xa2f   :  { %v1825_v8 = vpop.f32.mrf.mxu2  ;;  %v1922_v28 = vmul.f32 %v4340_v34, %v1921_v53 }
 0xa30   :  { %v1875_v11 = vadd.f32 %v1874_v13, %v1825_v8  ;;  %v2122_v36 = vmul.f32 %v4342_v12, %v2121_v35 }
 0xa31   :  { %v1923_v1 = vadd.f32 %v4340_v34, %v1922_v28 }
 0xa32   :  { %v1882_v56 = vadd.f32 %v5476_v0, %v1875_v11  ;;  %v2062_v62 = vpop.f32.mrf.mxu1  ;;  %v2123_v38 = vadd.f32 %v4342_v12, %v2122_v36 }
 0xa33   :  { %v5720_v55 = vadd.f32 %v2062_v62, %v237_v32  ;;  %v1927_v46 = vsel %vm1926_vm13, %v4340_v34, %v1923_v1 }
 0xa34   :  { %v4002_v24 = vmul.f32 -1.442695, %v1882_v56  ;;  %v1932_v57 = vsel %vm1929_vm14, %v1931_v16, %v1927_v46  ;;  %v2127_v3 = vsel %vm2126_vm2, %v4342_v12, %v2123_v38 }
 0xa35   :  { %v4011_v9 = vmul.f32 -1.442695, %v5720_v55  ;;  %v5725_v19 = vsel %vm4778_vm4, %v4344_v49, %v1932_v57  ;;  %v2132_v31 = vsel %vm2129_vm3, %v2131_v54, %v2127_v3 }
 0xa36   :  { %4347 = vpow2.f32 %v4002_v24  ;;  %1978 = vrot.lane.b32.xlu0 %v5725_v19, %s4662_s22  ;;  %v5732_v35 = vsel %vm4778_vm4, %v4346_v39, %v2132_v31 }
 0xa37   :  { %4349 = vpow2.f32 %v4011_v9  ;;  %v1828_v50 = vpop.f32.mrf.mxu2 }
 0xa38   :  { %v1877_v18 = vpop.f32.mrf.mxu3 }
 0xa39   :  { %v1878_v34 = vadd.f32 %v1877_v18, %v1828_v50 }
 0xa3b   :  { %v1883_v48 = vadd.f32 %v5476_v0, %v1878_v34 }
 0xa3c   :  { %v4348_v53 = vpop.eup %4347 }
 0xa3d   :  { %v4350_v41 = vpop.eup %4349  ;;  %v1902_v25 = vadd.f32 1.0, %v4348_v53  ;;  %v4003_v59 = vmul.f32 -1.442695, %v1883_v48 }
 0xa3e   :  { %v2088_v13 = vadd.f32 1.0, %v4350_v41  ;;  %2165 = vrot.lane.b32.xlu0 %v5732_v35, %s4662_s22 }
 0xa3f   :  { %4351 = vrcp.f32 %v1902_v25  ;;  %v1945_v1 = vand.u32 2147483648, %v1902_v25  ;;  %v1943_v46 = vand.u32 2147483647, %v1902_v25  ;;  %vm1939_vm7 = vweird.f32 %v1902_v25 }
 0xa40   :  { %4353 = vrcp.f32 %v2088_v13  ;;  %v2145_v50 = vand.u32 2147483648, %v2088_v13  ;;  %vm2139_vm11 = vweird.f32 %v2088_v13  ;;  %v2143_v18 = vand.u32 2147483647, %v2088_v13 }
 0xa41   :  { %4355 = vpow2.f32 %v4003_v59  ;;  %v1946_v24 = vor.u32 1.1754944e-38, %v1945_v1  ;;  %vm1944_vm9 = vcmp.eq.f32.partialorder %v1943_v46, 8.507059e+37 }
 0xa42   :  { %4357 = vtanh.f32 %v1882_v56  ;;  %v2146_v39 = vor.u32 1.1754944e-38, %v2145_v50  ;;  %vm2144_vm13 = vcmp.eq.f32.partialorder %v2143_v18, 8.507059e+37 }
 0xa45   :  { %v4352_v12 = vpop.eup %4351 }
 0xa46   :  { %v4354_v32 = vpop.eup %4353  ;;  %v1935_v8 = vmul.f32 %v4352_v12, %v1902_v25  ;;  %vm1940_vm5 = vweird.f32 %v4352_v12 }
 0xa47   :  { %v4356_v28 = vpop.eup %4355  ;;  %v2135_v0 = vmul.f32 %v4354_v32, %v2088_v13  ;;  %vm1941_vm8 = vmor %vm1939_vm7, %vm1940_vm5  ;;  %vm2140_vm10 = vweird.f32 %v4354_v32 }
 0xa48   :  { %v1903_v11 = vadd.f32 1.0, %v4356_v28  ;;  %v1936_v36 = vsub.f32 1.0, %v1935_v8  ;;  %v4358_v9 = vpop.eup %4357  ;;  %vm2141_vm12 = vmor %vm2139_vm11, %vm2140_vm10 }
 0xa49   :  { %v2136_v62 = vsub.f32 1.0, %v2135_v0 }
 0xa4a   :  { %4359 = vrcp.f32 %v1903_v11  ;;  %v1937_v16 = vmul.f32 %v4352_v12, %v1936_v36  ;;  %v1960_v53 = vand.u32 2147483648, %v1903_v11  ;;  %v1958_v59 = vand.u32 2147483647, %v1903_v11 }
 0xa4b   :  { %v2137_v38 = vmul.f32 %v4354_v32, %v2136_v62  ;;  %4361 = vtanh.f32 %v5720_v55  ;;  %vm1954_vm15 = vweird.f32 %v1903_v11 }
 0xa4c   :  { %v1938_v49 = vadd.f32 %v4352_v12, %v1937_v16  ;;  %4363 = vtanh.f32 %v1883_v48  ;;  %v1961_v13 = vor.u32 1.1754944e-38, %v1960_v53  ;;  %vm1959_vm2 = vcmp.eq.f32.partialorder %v1958_v59, 8.507059e+37 }
 0xa4d   :  { %v2138_v2 = vadd.f32 %v4354_v32, %v2137_v38  ;;  %v1968_v53 = vmul.f32 %v5706_v30, %v5562_v10  ;;  %v2154_v59 = vmul.f32 %v5713_v26, %v5567_v21  ;;  %v2155_v21 = vmul.f32 %v5732_v35, %v5584_v52 }
 0xa4e   :  { %v1942_v57 = vsel %vm1941_vm8, %v4352_v12, %v1938_v49 }
 0xa4f   :  { %v1947_v61 = vsel %vm1944_vm9, %v1946_v24, %v1942_v57  ;;  %v2142_v34 = vsel %vm2141_vm12, %v4354_v32, %v2138_v2 }
 0xa50   :  { %v4360_v3 = vpop.eup %4359  ;;  %v5738_v56 = vsel %vm4778_vm4, %v4358_v9, %v1947_v61  ;;  %v2147_v41 = vsel %vm2144_vm13, %v2146_v39, %v2142_v34 }
 0xa51   :  { %1980 = vrot.lane.b32.xlu2 %v5738_v56, %s4662_s22  ;;  %v1950_v54 = vmul.f32 %v4360_v3, %v1903_v11  ;;  %vm1955_vm14 = vweird.f32 %v4360_v3  ;;  %v4362_v12 = vpop.eup %4361  ;;  %v2162_v11 = vpop.permute.xlu2 %2161 }
 0xa52   :  { %v5745_v55 = vsel %vm4778_vm4, %v4362_v12, %v2147_v41  ;;  %vm1956_vm1 = vmor %vm1954_vm15, %vm1955_vm14  ;;  %v4364_v48 = vpop.eup %4363  ;;  %v2173_v36 = vmul.f32 %v2162_v11, %v5699_v20 }
 0xa53   :  { %v1951_v31 = vsub.f32 1.0, %v1950_v54  ;;  %v2153_v54 = vmul.f32 %v5699_v20, %v5554_v33  ;;  %v2156_v52 = vmul.f32 %v5745_v55, %v5594_v5 }
 0xa55   :  { %v1952_v25 = vmul.f32 %v4360_v3, %v1951_v31 }
 0xa57   :  { %v1953_v8 = vadd.f32 %v4360_v3, %v1952_v25 }
 0xa59   :  { %2167 = vrot.lane.b32.xlu2 %v5745_v55, %s4662_s22  ;;  %v1957_v32 = vsel %vm1956_vm1, %v4360_v3, %v1953_v8 }
 0xa5a   :  { %v1962_v28 = vsel %vm1959_vm2, %v1961_v13, %v1957_v32  ;;  %v1969_v13 = vmul.f32 %v5725_v19, %v5574_v60 }
 0xa5b   :  { %v5751_v0 = vsel %vm4778_vm4, %v4364_v48, %v1962_v28 }
 0xa5c   :  { %1982 = vrot.lane.b32.xlu1 %v5751_v0, %s4662_s22 }
 0xa64   :  { %2181 = vrot.lane.b32.xlu1 %v2173_v36, %s4663_s23 }
 0xa80   :  { %v1977_v1 = vpop.permute.xlu1 %1976 }
 0xa81   :  { %v1988_v62 = vmul.f32 %v1977_v1, %v5706_v30  ;;  %v1970_v1 = vmul.f32 %v5738_v56, %v5579_v27  ;;  %v1971_v27 = vmul.f32 %v5751_v0, %v5592_v58 }
 0xa83   :  { %1996 = vrot.lane.b32.xlu0 %v1988_v62, %s4663_s23 }
 0xa88   :  { %v2164_v16 = vpop.permute.xlu1 %2163 }
 0xa89   :  { %v2174_v46 = vmul.f32 %v2164_v16, %v5713_v26 }
 0xa8b   :  { %2183 = vrot.lane.b32.xlu0 %v2174_v46, %s4663_s23 }
 0xaa8   :  { %v1979_v38 = vpop.permute.xlu0 %1978 }
 0xaa9   :  { %v1989_v49 = vmul.f32 %v1979_v38, %v5725_v19 }
 0xaab   :  { %v1981_v24 = vpop.permute.xlu2 %1980  ;;  %1998 = vrot.lane.b32.xlu2 %v1989_v49, %s4663_s23 }
 0xaac   :  { %v1990_v57 = vmul.f32 %v1981_v24, %v5738_v56 }
 0xaae   :  { %2000 = vrot.lane.b32.xlu1 %v1990_v57, %s4663_s23 }
 0xab0   :  { %v2166_v2 = vpop.permute.xlu0 %2165 }
 0xab1   :  { %v2175_v9 = vmul.f32 %v2166_v2, %v5732_v35 }
 0xab3   :  { %v2168_v61 = vpop.permute.xlu2 %2167  ;;  %2185 = vrot.lane.b32.xlu2 %v2175_v9, %s4663_s23 }
 0xab4   :  { %v2176_v50 = vmul.f32 %v2168_v61, %v5745_v55 }
 0xab6   :  { %2187 = vrot.lane.b32.xlu1 %v2176_v50, %s4663_s23 }
 0xace   :  { %v1983_v3 = vpop.permute.xlu1 %1982 }
 0xacf   :  { %v1991_v18 = vmul.f32 %v1983_v3, %v5751_v0 }
 0xad1   :  { %2002 = vrot.lane.b32.xlu0 %v1991_v18, %s4663_s23 }
 0xad6   :  { %v2182_v34 = vpop.permute.xlu1 %2181 }
 0xad7   :  { %v5773_v39 = vadd.f32 %v2182_v34, %v2153_v54 }
 0xad9   :  { %4365 = vtanh.f32 %v5773_v39 }
 0xadf   :  { %v4366_v31 = vpop.eup %4365 }
 0xae0   :  { %2205 = vrot.lane.b32.xlu0 %v4366_v31, %s4662_s22 }
 0xaf5   :  { %v1997_v41 = vpop.permute.xlu0 %1996 }
 0xaf6   :  { %v5779_v25 = vadd.f32 %v1997_v41, %v1968_v53 }
 0xaf8   :  { %4367 = vtanh.f32 %v5779_v25 }
 0xafd   :  { %v2184_v33 = vpop.permute.xlu0 %2183 }
 0xafe   :  { %v4368_v12 = vpop.eup %4367  ;;  %v5784_v8 = vadd.f32 %v2184_v33, %v2154_v59 }
 0xaff   :  { %2020 = vrot.lane.b32.xlu2 %v4368_v12, %s4662_s22  ;;  %v5874_v12 = vld [vmem:[%s6601_s4 + $0x8] sm:$0xff] }
 0xb00   :  { %4369 = vtanh.f32 %v5784_v8 }
 0xb05   :  { %v1999_v10 = vpop.permute.xlu2 %1998 }
 0xb06   :  { %v4370_v32 = vpop.eup %4369  ;;  %v5790_v48 = vadd.f32 %v1999_v10, %v1969_v13 }
 0xb07   :  { %2207 = vrot.lane.b32.xlu2 %v4370_v32, %s4662_s22  ;;  %v5907_v32 = vld [vmem:[%s6602_s5] sm:$0xff] }
 0xb08   :  { %4371 = vtanh.f32 %v5790_v48 }
 0xb0d   :  { %v2186_v28 = vpop.permute.xlu2 %2185 }
 0xb0e   :  { %v4372_v11 = vpop.eup %4371  ;;  %v5796_v36 = vadd.f32 %v2186_v28, %v2155_v21  ;;  %v49_v21 = vld [vmem:[%s6597_s0 + $0xb0] sm:$0xff]  ;;  %v50_v28 = vld [vmem:[%s6597_s0 + $0xb8] sm:$0xff] }
 0xb0f   :  { %2022 = vrot.lane.b32.xlu1 %v4372_v11, %s4662_s22 }
 0xb10   :  { %4373 = vtanh.f32 %v5796_v36 }
 0xb16   :  { %v4374_v60 = vpop.eup %4373 }
 0xb17   :  { %2209 = vrot.lane.b32.xlu1 %v4374_v60, %s4662_s22 }
 0xb20   :  { %v2001_v62 = vpop.permute.xlu1 %2000 }
 0xb21   :  { %v5803_v16 = vadd.f32 %v2001_v62, %v1970_v1 }
 0xb23   :  { %4375 = vtanh.f32 %v5803_v16 }
 0xb28   :  { %v2188_v46 = vpop.permute.xlu1 %2187 }
 0xb29   :  { %v4376_v38 = vpop.eup %4375  ;;  %v5808_v49 = vadd.f32 %v2188_v46, %v2156_v52 }
 0xb2a   :  { %2024 = vrot.lane.b32.xlu0 %v4376_v38, %s4662_s22 }
 0xb2b   :  { %4377 = vtanh.f32 %v5808_v49 }
 0xb31   :  { %v4378_v24 = vpop.eup %4377 }
 0xb32   :  { %2211 = vrot.lane.b32.xlu0 %v4378_v24, %s4662_s22 }
 0xb43   :  { %v2003_v57 = vpop.permute.xlu0 %2002 }
 0xb44   :  { %v5815_v2 = vadd.f32 %v2003_v57, %v1971_v27 }
 0xb46   :  { %4379 = vtanh.f32 %v5815_v2 }
 0xb4c   :  { %v4380_v5 = vpop.eup %4379 }
 0xb4d   :  { %2026 = vrot.lane.b32.xlu2 %v4380_v5, %s4662_s22 }
 0xb52   :  { %v2206_v9 = vpop.permute.xlu0 %2205 }
 0xb53   :  { %v2217_v61 = vmul.f32 %v2206_v9, %v5699_v20 }
 0xb55   :  { %2274 = vrot.lane.b32.xlu2 %v2217_v61, %s4663_s23 }
 0xb59   :  { %v2021_v50 = vpop.permute.xlu2 %2020 }
 0xb5a   :  { %v5822_v3 = vmul.f32 %v2021_v50, %v5706_v30  ;;  %v47_v30 = vld [vmem:[%s6597_s0 + $0xa0] sm:$0xff] }
 0xb5b   :  { %3920 = vmatmul.msk.f32.gmra.mxu0 %vm65_vm0, %v47_v30 }
 0xb5c   :  { %2225 = vrot.lane.b32.xlu1 %v5822_v3, %s4663_s23 }
 0xb61   :  { %v2208_v58 = vpop.permute.xlu2 %2207 }
 0xb62   :  { %v2218_v18 = vmul.f32 %v2208_v58, %v5713_v26 }
 0xb64   :  { %2276 = vrot.lane.b32.xlu1 %v2218_v18, %s4663_s23 }
 0xb81   :  { %v2023_v54 = vpop.permute.xlu1 %2022 }
 0xb82   :  { %v5829_v34 = vmul.f32 %v2023_v54, %v5725_v19 }
 0xb84   :  { %2227 = vrot.lane.b32.xlu0 %v5829_v34, %s4663_s23 }
 0xb89   :  { %v2210_v20 = vpop.permute.xlu1 %2209 }
 0xb8a   :  { %v2219_v31 = vmul.f32 %v2210_v20, %v5732_v35 }
 0xb8c   :  { %2278 = vrot.lane.b32.xlu0 %v2219_v31, %s4663_s23 }
 0xb9c   :  { %v2025_v26 = vpop.permute.xlu0 %2024 }
 0xb9d   :  { %v5840_v53 = vmul.f32 %v2025_v26, %v5738_v56  ;;  %v48_v56 = vld [vmem:[%s6597_s0 + $0xa8] sm:$0xff] }
 0xb9e   :  { %3921 = vmatmul.msk.f32.gmra.mxu0 %vm65_vm0, %v48_v56 }
 0xb9f   :  { %6610 = vst [vmem:[#allocation5_spill] sm:$0xff] %v5840_v53  ;;  %2229 = vrot.lane.b32.xlu2 %v5840_v53, %s4663_s23 }
 0xba4   :  { %v2212_v19 = vpop.permute.xlu0 %2211 }
 0xba5   :  { %v2220_v41 = vmul.f32 %v2212_v19, %v5745_v55  ;;  %v5860_v55 = vld [vmem:[%s6601_s4 + $0x18] sm:$0xff] }
 0xba6   :  { %3922 = vmatmul.msk.f32.gmra.mxu0 %vm65_vm0, %v49_v21 }
 0xba7   :  { %v2027_v59 = vpop.permute.xlu2 %2026  ;;  %2280 = vrot.lane.b32.xlu2 %v2220_v41, %s4663_s23 }
 0xba8   :  { %v5847_v35 = vmul.f32 %v2027_v59, %v5751_v0  ;;  %v5867_v0 = vld [vmem:[%s6601_s4 + $0x10] sm:$0xff] }
 0xbaa   :  { %2231 = vrot.lane.b32.xlu1 %v5847_v35, %s4663_s23 }
 0xbae   :  { %3923 = vmatmul.msk.f32.gmra.mxu0 %vm65_vm0, %v50_v28 }
 0xbaf   :  { %v2275_v33 = vpop.permute.xlu2 %2274 }
 0xbb0   :  { %4016 = vmatmul.msk.f32.vlgmr.msra.gmra.mxu3 %vm293_vm6, %v2275_v33  ;;  %4024 = vmatmul.msk.f32.vlgmr.msrb.gmra.mxu1 %vm293_vm6, %v2275_v33 }
 0xbb1   :  { %3180 = vmatpush.msra.mxu3 %v5860_v55  ;;  %3365 = vmatpush.msrb.mxu1 %v5644_v40  ;;  %v5881_v40 = vld [vmem:[%s6601_s4] sm:$0xff] }
 0xbb3   :  { %3181 = vmatpush.msra.mxu3 %v5867_v0  ;;  %3366 = vmatpush.msrb.mxu1 %v5651_v42  ;;  %v5889_v42 = vld [vmem:[%s6602_s5 + $0x18] sm:$0xff] }
 0xbb5   :  { %3182 = vmatpush.msra.mxu3 %v5874_v12  ;;  %3367 = vmatpush.msrb.mxu1 %v5658_v22  ;;  %v5895_v22 = vld [vmem:[%s6602_s5 + $0x10] sm:$0xff] }
 0xbb7   :  { %3183 = vmatpush.msra.mxu3 %v5881_v40  ;;  %3368 = vmatpush.msrb.mxu1 %v5665_v37  ;;  %v5901_v37 = vld [vmem:[%s6602_s5 + $0x8] sm:$0xff] }
 0xbce   :  { %v2226_v13 = vpop.permute.xlu1 %2225 }
 0xbcf   :  { %4012 = vmatmul.msk.f32.vlgmr.msra.gmra.mxu2 %vm293_vm6, %v2226_v13 }
 0xbd0   :  { %3131 = vmatpush.msra.mxu2 %v5889_v42 }
 0xbd2   :  { %3132 = vmatpush.msra.mxu2 %v5895_v22 }
 0xbd4   :  { %3133 = vmatpush.msra.mxu2 %v5901_v37 }
 0xbd6   :  { %v2277_v10 = vpop.permute.xlu1 %2276  ;;  %3134 = vmatpush.msra.mxu2 %v5907_v32 }
 0xbd7   :  { %4017 = vmatmul.msk.f32.gmra.mxu3 %vm293_vm6, %v2277_v10  ;;  %4025 = vmatmul.msk.f32.gmra.mxu1 %vm293_vm6, %v2277_v10 }
 0xbd8   :  { %v239_v46 = vpop.f32.mrf.mxu0 }
 0xbd9   :  { %v240_v38 = vadd.f32 %v5693_v7, %v239_v46 }
 0xbf6   :  { %v2228_v11 = vpop.permute.xlu0 %2227 }
 0xbf7   :  { %4013 = vmatmul.msk.f32.gmra.mxu2 %vm293_vm6, %v2228_v11  ;;  %v5938_v11 = vld [vmem:[%s6603_s6] ss:$0 sm:$0xff] }
 0xbf9   :  { %v2230_v60 = vpop.permute.xlu2 %2229 }
 0xbfe   :  { %v2279_v1 = vpop.permute.xlu0 %2278 }
 0xbff   :  { %4014 = vmatmul.msk.f32.gmra.mxu2 %vm293_vm6, %v2230_v60  ;;  %4018 = vmatmul.msk.f32.gmra.mxu3 %vm293_vm6, %v2279_v1 }
 0xc00   :  { %4026 = vmatmul.msk.f32.gmra.mxu1 %vm293_vm6, %v2279_v1 }
 0xc01   :  { %v2281_v62 = vpop.permute.xlu2 %2280 }
 0xc07   :  { %4019 = vmatmul.msk.f32.gmra.mxu3 %vm293_vm6, %v2281_v62 }
 0xc08   :  { %4027 = vmatmul.msk.f32.gmra.mxu1 %vm293_vm6, %v2281_v62 }
 0xc1b   :  { %v242_v33 = vpop.f32.mrf.mxu0 }
 0xc1c   :  { %v2232_v52 = vpop.permute.xlu1 %2231  ;;  %v243_v56 = vadd.f32 %v5693_v7, %v242_v33 }
 0xc1d   :  { %4015 = vmatmul.msk.f32.gmra.mxu2 %vm293_vm6, %v2232_v52 }
 0xc2d   :  { %v2492_v24 = vpop.f32.mrf.mxu1 }
 0xc2e   :  { %v2504_v27 = vadd.f32 %v2492_v24, %v240_v38 }
 0xc30   :  { %v4028_v57 = vmul.f32 -1.442695, %v2504_v27 }
 0xc32   :  { %4381 = vpow2.f32 %v4028_v57 }
 0xc33   :  { %v2307_v13 = vpop.f32.mrf.mxu3 }
 0xc38   :  { %v4382_v5 = vpop.eup %4381 }
 0xc39   :  { %v2524_v9 = vadd.f32 1.0, %v4382_v5 }
 0xc3b   :  { %4383 = vrcp.f32 %v2524_v9  ;;  %v2539_v18 = vand.u32 2147483648, %v2524_v9  ;;  %v2537_v20 = vand.u32 2147483647, %v2524_v9  ;;  %vm2533_vm5 = vweird.f32 %v2524_v9 }
 0xc3c   :  { %4385 = vtanh.f32 %v2504_v27 }
 0xc3d   :  { %v2540_v30 = vor.u32 1.1754944e-38, %v2539_v18  ;;  %vm2538_vm8 = vcmp.eq.f32.partialorder %v2537_v20, 8.507059e+37 }
 0xc41   :  { %v4384_v61 = vpop.eup %4383 }
 0xc42   :  { %v2529_v50 = vmul.f32 %v4384_v61, %v2524_v9  ;;  %vm2534_vm3 = vweird.f32 %v4384_v61  ;;  %v4386_v19 = vpop.eup %4385 }
 0xc43   :  { %vm2535_vm7 = vmor %vm2533_vm5, %vm2534_vm3 }
 0xc44   :  { %v2530_v58 = vsub.f32 1.0, %v2529_v50 }
 0xc46   :  { %v2531_v54 = vmul.f32 %v4384_v61, %v2530_v58 }
 0xc48   :  { %v2532_v31 = vadd.f32 %v4384_v61, %v2531_v54 }
 0xc4a   :  { %v2536_v26 = vsel %vm2535_vm7, %v4384_v61, %v2532_v31 }
 0xc4b   :  { %v2541_v41 = vsel %vm2538_vm8, %v2540_v30, %v2536_v26 }
 0xc4c   :  { %v5930_v59 = vsel %vm4778_vm4, %v4386_v19, %v2541_v41 }
 0xc4d   :  { %2600 = vrot.lane.b32.xlu1 %v5930_v59, %s4662_s22 }
 0xc52   :  { %v2258_v10 = vpop.f32.mrf.mxu2 }
 0xc53   :  { %v2308_v21 = vadd.f32 %v2307_v13, %v2258_v10 }
 0xc54   :  { %v2495_v28 = vpop.f32.mrf.mxu1 }
 0xc55   :  { %v2319_v60 = vadd.f32 %v5938_v11, %v2308_v21  ;;  %v2505_v1 = vadd.f32 %v2495_v28, %v243_v56  ;;  %v245_v28 = vpop.f32.mrf.mxu0 }
 0xc57   :  { %v4020_v62 = vmul.f32 -1.442695, %v2319_v60  ;;  %v4029_v52 = vmul.f32 -1.442695, %v2505_v1 }
 0xc59   :  { %4387 = vpow2.f32 %v4020_v62 }
 0xc5a   :  { %4389 = vpow2.f32 %v4029_v52 }
 0xc5f   :  { %v4388_v46 = vpop.eup %4387 }
 0xc60   :  { %v4390_v38 = vpop.eup %4389  ;;  %v2339_v24 = vadd.f32 1.0, %v4388_v46 }
 0xc61   :  { %v2525_v27 = vadd.f32 1.0, %v4390_v38  ;;  %v2310_v38 = vpop.f32.mrf.mxu3 }
 0xc62   :  { %4391 = vrcp.f32 %v2339_v24  ;;  %v2354_v58 = vand.u32 2147483648, %v2339_v24  ;;  %v2352_v20 = vand.u32 2147483647, %v2339_v24  ;;  %vm2348_vm10 = vweird.f32 %v2339_v24 }
 0xc63   :  { %4393 = vrcp.f32 %v2525_v27  ;;  %v2554_v13 = vand.u32 2147483648, %v2525_v27  ;;  %vm2548_vm14 = vweird.f32 %v2525_v27  ;;  %v2552_v21 = vand.u32 2147483647, %v2525_v27 }
 0xc64   :  { %4395 = vtanh.f32 %v2319_v60  ;;  %v2355_v26 = vor.u32 1.1754944e-38, %v2354_v58  ;;  %vm2353_vm12 = vcmp.eq.f32.partialorder %v2352_v20, 8.507059e+37  ;;  %v248_v58 = vpop.f32.mrf.mxu0 }
 0xc65   :  { %4397 = vtanh.f32 %v2505_v1  ;;  %v2555_v62 = vor.u32 1.1754944e-38, %v2554_v13  ;;  %vm2553_vm1 = vcmp.eq.f32.partialorder %v2552_v21, 8.507059e+37 }
 0xc68   :  { %v4392_v57 = vpop.eup %4391 }
 0xc69   :  { %v4394_v5 = vpop.eup %4393  ;;  %v2344_v9 = vmul.f32 %v4392_v57, %v2339_v24  ;;  %vm2349_vm9 = vweird.f32 %v4392_v57  ;;  %v246_v24 = vadd.f32 %v5693_v7, %v245_v28 }
 0xc6a   :  { %v2544_v61 = vmul.f32 %v4394_v5, %v2525_v27  ;;  %vm2350_vm11 = vmor %vm2348_vm10, %vm2349_vm9  ;;  %vm2549_vm13 = vweird.f32 %v4394_v5  ;;  %v4396_v33 = vpop.eup %4395 }
 0xc6b   :  { %v2345_v50 = vsub.f32 1.0, %v2344_v9  ;;  %vm2550_vm15 = vmor %vm2548_vm14, %vm2549_vm13  ;;  %v4398_v46 = vpop.eup %4397 }
 0xc6c   :  { %v2545_v18 = vsub.f32 1.0, %v2544_v61 }
 0xc6d   :  { %v2346_v54 = vmul.f32 %v4392_v57, %v2345_v50 }
 0xc6e   :  { %v2546_v31 = vmul.f32 %v4394_v5, %v2545_v18 }
 0xc6f   :  { %v2347_v30 = vadd.f32 %v4392_v57, %v2346_v54  ;;  %v249_v54 = vadd.f32 %v5693_v7, %v248_v58 }
 0xc70   :  { %v2547_v41 = vadd.f32 %v4394_v5, %v2546_v31 }
 0xc71   :  { %v2351_v19 = vsel %vm2350_vm11, %v4392_v57, %v2347_v30 }
 0xc72   :  { %v2356_v56 = vsel %vm2353_vm12, %v2355_v26, %v2351_v19  ;;  %v2551_v60 = vsel %vm2550_vm15, %v4394_v5, %v2547_v41 }
 0xc73   :  { %v5943_v10 = vsel %vm4778_vm4, %v4396_v33, %v2356_v56  ;;  %v2556_v52 = vsel %vm2553_vm1, %v2555_v62, %v2551_v60 }
 0xc74   :  { %2415 = vrot.lane.b32.xlu0 %v5943_v10, %s4662_s22  ;;  %v5950_v61 = vsel %vm4778_vm4, %v4398_v46, %v2556_v52 }
 0xc7a   :  { %v2261_v57 = vpop.f32.mrf.mxu2 }
 0xc7b   :  { %v2311_v9 = vadd.f32 %v2310_v38, %v2261_v57 }
 0xc7c   :  { %2602 = vrot.lane.b32.xlu0 %v5950_v61, %s4662_s22 }
 0xc7d   :  { %v2320_v1 = vadd.f32 %v5938_v11, %v2311_v9  ;;  %v2498_v27 = vpop.f32.mrf.mxu1 }
 0xc7e   :  { %v2506_v5 = vadd.f32 %v2498_v27, %v246_v24 }
 0xc7f   :  { %v4021_v50 = vmul.f32 -1.442695, %v2320_v1 }
 0xc80   :  { %v4030_v18 = vmul.f32 -1.442695, %v2506_v5 }
 0xc81   :  { %4399 = vpow2.f32 %v4021_v50 }
 0xc82   :  { %4401 = vpow2.f32 %v4030_v18  ;;  %v2264_v20 = vpop.f32.mrf.mxu2  ;;  %v2313_v31 = vpop.f32.mrf.mxu3 }
 0xc83   :  { %v2314_v30 = vadd.f32 %v2313_v31, %v2264_v20 }
 0xc85   :  { %v2321_v26 = vadd.f32 %v5938_v11, %v2314_v30  ;;  %v2501_v19 = vpop.f32.mrf.mxu1 }
 0xc86   :  { %v5957_v41 = vadd.f32 %v2501_v19, %v249_v54 }
 0xc87   :  { %v4400_v33 = vpop.eup %4399  ;;  %v4022_v56 = vmul.f32 -1.442695, %v2321_v26 }
 0xc88   :  { %v4402_v13 = vpop.eup %4401  ;;  %v2340_v21 = vadd.f32 1.0, %v4400_v33  ;;  %v4031_v28 = vmul.f32 -1.442695, %v5957_v41 }
 0xc89   :  { %v2526_v60 = vadd.f32 1.0, %v4402_v13  ;;  %4403 = vpow2.f32 %v4022_v56 }
 0xc8a   :  { %4405 = vrcp.f32 %v2340_v21  ;;  %v2367_v50 = vand.u32 2147483647, %v2340_v21  ;;  %v2369_v58 = vand.u32 2147483648, %v2340_v21  ;;  %vm2363_vm3 = vweird.f32 %v2340_v21 }
 0xc8b   :  { %4407 = vrcp.f32 %v2526_v60  ;;  %vm2563_vm9 = vweird.f32 %v2526_v60 }
 0xc8c   :  { %4409 = vpow2.f32 %v4031_v28  ;;  %vm2368_vm7 = vcmp.eq.f32.partialorder %v2367_v50, 8.507059e+37  ;;  %v2370_v19 = vor.u32 1.1754944e-38, %v2369_v58 }
 0xc8f   :  { %v4404_v7 = vpop.eup %4403 }
 0xc90   :  { %v4406_v62 = vpop.eup %4405  ;;  %v2341_v52 = vadd.f32 1.0, %v4404_v7  ;;  %v2569_v7 = vand.u32 2147483648, %v2526_v60 }
 0xc91   :  { %v4408_v46 = vpop.eup %4407  ;;  %v2359_v38 = vmul.f32 %v4406_v62, %v2340_v21  ;;  %vm2364_vm2 = vweird.f32 %v4406_v62 }
 0xc92   :  { %v4410_v24 = vpop.eup %4409  ;;  %4411 = vrcp.f32 %v2341_v52  ;;  %v2559_v57 = vmul.f32 %v4408_v46, %v2526_v60  ;;  %vm2365_vm5 = vmor %vm2363_vm3, %vm2364_vm2  ;;  %vm2564_vm8 = vweird.f32 %v4408_v46  ;;  %vm2378_vm13 = vweird.f32 %v2341_v52 }
 0xc93   :  { %v5960_v9 = vadd.f32 1.0, %v4410_v24  ;;  %v2360_v27 = vsub.f32 1.0, %v2359_v38  ;;  %4413 = vtanh.f32 %v2320_v1  ;;  %vm5969_vm10 = vmor %vm2563_vm9, %vm2564_vm8 }
 0xc94   :  { %v2560_v18 = vsub.f32 1.0, %v2559_v57  ;;  %v2567_v57 = vand.u32 2147483647, %v2526_v60 }
 0xc95   :  { %4415 = vrcp.f32 %v5960_v9  ;;  %v2361_v54 = vmul.f32 %v4406_v62, %v2360_v27  ;;  %v2384_v27 = vand.u32 2147483648, %v2341_v52  ;;  %vm2578_vm2 = vweird.f32 %v5960_v9 }
 0xc96   :  { %v2561_v20 = vmul.f32 %v4408_v46, %v2560_v18  ;;  %4417 = vtanh.f32 %v2506_v5  ;;  %v2382_v18 = vand.u32 2147483647, %v2341_v52  ;;  %vm2568_vm12 = vcmp.eq.f32.partialorder %v2567_v57, 8.507059e+37 }
 0xc97   :  { %v2362_v31 = vadd.f32 %v4406_v62, %v2361_v54  ;;  %4419 = vtanh.f32 %v2321_v26  ;;  %v2570_v54 = vor.u32 1.1754944e-38, %v2569_v7  ;;  %v2584_v7 = vand.u32 2147483648, %v5960_v9 }
 0xc98   :  { %v4412_v30 = vpop.eup %4411  ;;  %v2562_v56 = vadd.f32 %v4408_v46, %v2561_v20  ;;  %vm2383_vm15 = vcmp.eq.f32.partialorder %v2382_v18, 8.507059e+37  ;;  %4421 = vtanh.f32 %v5957_v41 }
 0xc99   :  { %v2366_v33 = vsel %vm2365_vm5, %v4406_v62, %v2362_v31  ;;  %v2374_v13 = vmul.f32 %v4412_v30, %v2341_v52  ;;  %v4414_v28 = vpop.eup %4413  ;;  %vm2379_vm11 = vweird.f32 %v4412_v30  ;;  %v2316_v31 = vpop.f32.mrf.mxu3 }
 0xc9a   :  { %v2371_v1 = vsel %vm2368_vm7, %v2370_v19, %v2366_v33  ;;  %v2566_v50 = vsel %vm5969_vm10, %v4408_v46, %v2562_v56  ;;  %vm2380_vm14 = vmor %vm2378_vm13, %vm2379_vm11 }
 0xc9b   :  { %v4416_v38 = vpop.eup %4415  ;;  %v5965_v24 = vsel %vm4778_vm4, %v4414_v28, %v2371_v1  ;;  %v2375_v21 = vsub.f32 1.0, %v2374_v13  ;;  %v2571_v33 = vsel %vm2568_vm12, %v2570_v54, %v2566_v50  ;;  %v2385_v13 = vor.u32 1.1754944e-38, %v2384_v27 }
 0xc9c   :  { %2417 = vrot.lane.b32.xlu2 %v5965_v24, %s4662_s22  ;;  %v2574_v5 = vmul.f32 %v4416_v38, %v5960_v9  ;;  %v4418_v20 = vpop.eup %4417  ;;  %vm2579_vm1 = vweird.f32 %v4416_v38 }
 0xc9d   :  { %v2376_v58 = vmul.f32 %v4412_v30, %v2375_v21  ;;  %v4420_v46 = vpop.eup %4419  ;;  %v5981_v57 = vsel %vm4778_vm4, %v4418_v20, %v2571_v33  ;;  %vm2580_vm3 = vmor %vm2578_vm2, %vm2579_vm1 }
 0xc9e   :  { %v2575_v60 = vsub.f32 1.0, %v2574_v5  ;;  %v2585_v5 = vor.u32 1.1754944e-38, %v2584_v7 }
 0xc9f   :  { %v2377_v26 = vadd.f32 %v4412_v30, %v2376_v58  ;;  %v4422_v58 = vpop.eup %4421 }
 0xca0   :  { %v2267_v19 = vpop.f32.mrf.mxu2  ;;  %v2576_v28 = vmul.f32 %v4416_v38, %v2575_v60 }
 0xca1   :  { %v2317_v1 = vadd.f32 %v2316_v31, %v2267_v19  ;;  %v2381_v53 = vsel %vm2380_vm14, %v4412_v30, %v2377_v26  ;;  %v2582_v30 = vand.u32 2147483647, %v5960_v9 }
 0xca2   :  { %v2386_v56 = vsel %vm2383_vm15, %v2385_v13, %v2381_v53  ;;  %v2577_v21 = vadd.f32 %v4416_v38, %v2576_v28 }
 0xca3   :  { %v2322_v52 = vadd.f32 %v5938_v11, %v2317_v1  ;;  %v5985_v62 = vsel %vm4778_vm4, %v4420_v46, %v2386_v56  ;;  %vm2583_vm5 = vcmp.eq.f32.partialorder %v2582_v30, 8.507059e+37 }
 0xca4   :  { %2604 = vrot.lane.b32.xlu2 %v5981_v57, %s4662_s22  ;;  %2419 = vrot.lane.b32.xlu1 %v5985_v62, %s4662_s22  ;;  %v2581_v27 = vsel %vm2580_vm3, %v4416_v38, %v2577_v21 }
 0xca5   :  { %v4023_v53 = vmul.f32 -1.442695, %v2322_v52  ;;  %v2586_v50 = vsel %vm2583_vm5, %v2585_v5, %v2581_v27 }
 0xca6   :  { %v5995_v18 = vsel %vm4778_vm4, %v4422_v58, %v2586_v50 }
 0xca7   :  { %4423 = vpow2.f32 %v4023_v53 }
 0xcac   :  { %2606 = vrot.lane.b32.xlu1 %v5995_v18, %s4662_s22 }
 0xcad   :  { %v4424_v41 = vpop.eup %4423 }
 0xcae   :  { %v2342_v9 = vadd.f32 1.0, %v4424_v41 }
 0xcb0   :  { %4425 = vrcp.f32 %v2342_v9  ;;  %v2399_v38 = vand.u32 2147483648, %v2342_v9  ;;  %v2397_v31 = vand.u32 2147483647, %v2342_v9  ;;  %vm2393_vm8 = vweird.f32 %v2342_v9 }
 0xcb1   :  { %4427 = vtanh.f32 %v2322_v52 }
 0xcb2   :  { %v2400_v33 = vor.u32 1.1754944e-38, %v2399_v38  ;;  %vm2398_vm10 = vcmp.eq.f32.partialorder %v2397_v31, 8.507059e+37 }
 0xcb6   :  { %v4426_v54 = vpop.eup %4425 }
 0xcb7   :  { %v2389_v60 = vmul.f32 %v4426_v54, %v2342_v9  ;;  %vm2394_vm7 = vweird.f32 %v4426_v54  ;;  %v4428_v28 = vpop.eup %4427 }
 0xcb8   :  { %vm2395_vm9 = vmor %vm2393_vm8, %vm2394_vm7 }
 0xcb9   :  { %v2390_v26 = vsub.f32 1.0, %v2389_v60 }
 0xcbb   :  { %v2391_v20 = vmul.f32 %v4426_v54, %v2390_v26 }
 0xcbd   :  { %v2392_v19 = vadd.f32 %v4426_v54, %v2391_v20  ;;  %v2592_v20 = vmul.f32 %v5930_v59, %v5773_v39 }
 0xcbf   :  { %v2396_v13 = vsel %vm2395_vm9, %v4426_v54, %v2392_v19  ;;  %v2601_v56 = vpop.permute.xlu1 %2600 }
 0xcc0   :  { %v2401_v1 = vsel %vm2398_vm10, %v2400_v33, %v2396_v13  ;;  %v2612_v21 = vmul.f32 %v2601_v56, %v5930_v59  ;;  %v2407_v33 = vmul.f32 %v5943_v10, %v5779_v25  ;;  %v2593_v56 = vmul.f32 %v5950_v61, %v5784_v8 }
 0xcc1   :  { %v6001_v46 = vsel %vm4778_vm4, %v4428_v28, %v2401_v1  ;;  %v2594_v8 = vmul.f32 %v5981_v57, %v5796_v36 }
 0xcc2   :  { %2421 = vrot.lane.b32.xlu0 %v6001_v46, %s4662_s22  ;;  %v2410_v36 = vmul.f32 %v6001_v46, %v5815_v2 }
 0xcca   :  { %2620 = vrot.lane.b32.xlu0 %v2612_v21, %s4663_s23 }
 0xce6   :  { %v2416_v7 = vpop.permute.xlu0 %2415 }
 0xce7   :  { %v2427_v52 = vmul.f32 %v2416_v7, %v5943_v10 }
 0xce9   :  { %2435 = vrot.lane.b32.xlu2 %v2427_v52, %s4663_s23  ;;  %v2408_v52 = vmul.f32 %v5965_v24, %v5790_v48  ;;  %v2409_v48 = vmul.f32 %v5985_v62, %v5803_v16 }
 0xcee   :  { %v2603_v30 = vpop.permute.xlu0 %2602 }
 0xcef   :  { %v2613_v53 = vmul.f32 %v2603_v30, %v5950_v61 }
 0xcf1   :  { %2622 = vrot.lane.b32.xlu2 %v2613_v53, %s4663_s23 }
 0xcf6   :  { %v2418_v27 = vpop.permute.xlu2 %2417 }
 0xcf7   :  { %v2428_v5 = vmul.f32 %v2418_v27, %v5965_v24 }
 0xcf9   :  { %2437 = vrot.lane.b32.xlu1 %v2428_v5, %s4663_s23 }
 0xcfe   :  { %v2605_v50 = vpop.permute.xlu2 %2604 }
 0xcff   :  { %v2614_v58 = vmul.f32 %v2605_v50, %v5981_v57 }
 0xd01   :  { %2624 = vrot.lane.b32.xlu1 %v2614_v58, %s4663_s23 }
 0xd16   :  { %v2420_v41 = vpop.permute.xlu1 %2419 }
 0xd17   :  { %v2429_v9 = vmul.f32 %v2420_v41, %v5985_v62 }
 0xd19   :  { %2439 = vrot.lane.b32.xlu0 %v2429_v9, %s4663_s23 }
 0xd1e   :  { %v2607_v54 = vpop.permute.xlu1 %2606 }
 0xd1f   :  { %v2615_v60 = vmul.f32 %v2607_v54, %v5995_v18 }
 0xd21   :  { %2626 = vrot.lane.b32.xlu0 %v2615_v60, %s4663_s23 }
 0xd34   :  { %v2422_v26 = vpop.permute.xlu0 %2421 }
 0xd35   :  { %v2430_v38 = vmul.f32 %v2422_v26, %v6001_v46  ;;  %v2595_v26 = vmul.f32 %v5995_v18, %v5808_v49 }
 0xd37   :  { %2441 = vrot.lane.b32.xlu2 %v2430_v38, %s4663_s23 }
 0xd3c   :  { %v2621_v31 = vpop.permute.xlu0 %2620 }
 0xd3d   :  { %v6023_v19 = vadd.f32 %v2621_v31, %v2592_v20 }
 0xd3f   :  { %4429 = vtanh.f32 %v6023_v19 }
 0xd43   :  { %v2436_v13 = vpop.permute.xlu2 %2435 }
 0xd44   :  { %v6028_v28 = vadd.f32 %v2436_v13, %v2407_v33 }
 0xd45   :  { %v4430_v1 = vpop.eup %4429 }
 0xd46   :  { %2644 = vrot.lane.b32.xlu2 %v4430_v1, %s4662_s22  ;;  %4431 = vtanh.f32 %v6028_v28 }
 0xd4b   :  { %v2623_v39 = vpop.permute.xlu2 %2622 }
 0xd4c   :  { %v4432_v21 = vpop.eup %4431  ;;  %v6034_v7 = vadd.f32 %v2623_v39, %v2593_v56 }
 0xd4d   :  { %2459 = vrot.lane.b32.xlu1 %v4432_v21, %s4662_s22 }
 0xd4e   :  { %4433 = vtanh.f32 %v6034_v7 }
 0xd54   :  { %v4434_v25 = vpop.eup %4433 }
 0xd55   :  { %2646 = vrot.lane.b32.xlu1 %v4434_v25, %s4662_s22 }
 0xd6b   :  { %v2438_v30 = vpop.permute.xlu1 %2437 }
 0xd6c   :  { %v6041_v53 = vadd.f32 %v2438_v30, %v2408_v52 }
 0xd6e   :  { %4435 = vtanh.f32 %v6041_v53 }
 0xd73   :  { %v2625_v27 = vpop.permute.xlu1 %2624 }
 0xd74   :  { %v4436_v5 = vpop.eup %4435  ;;  %v6046_v50 = vadd.f32 %v2625_v27, %v2594_v8 }
 0xd75   :  { %2461 = vrot.lane.b32.xlu0 %v4436_v5, %s4662_s22  ;;  %v52_v5 = vld [vmem:[%s6597_s0 + $0xc8] sm:$0xff] }
 0xd76   :  { %4437 = vtanh.f32 %v6046_v50 }
 0xd7c   :  { %v4438_v58 = vpop.eup %4437 }
 0xd7d   :  { %2648 = vrot.lane.b32.xlu0 %v4438_v58, %s4662_s22  ;;  %v6136_v58 = vld [vmem:[%s6600_s3] ss:$0 sm:$0xff] }
 0xd8b   :  { %v2440_v41 = vpop.permute.xlu0 %2439 }
 0xd8c   :  { %v6053_v9 = vadd.f32 %v2440_v41, %v2409_v48 }
 0xd8e   :  { %4439 = vtanh.f32 %v6053_v9 }
 0xd91   :  { %v2442_v54 = vpop.permute.xlu2 %2441 }
 0xd92   :  { %v6058_v60 = vadd.f32 %v2442_v54, %v2410_v36 }
 0xd93   :  { %v2627_v38 = vpop.permute.xlu0 %2626 }
 0xd94   :  { %v4440_v20 = vpop.eup %4439  ;;  %4441 = vtanh.f32 %v6058_v60  ;;  %v6063_v31 = vadd.f32 %v2627_v38, %v2595_v26 }
 0xd95   :  { %2463 = vrot.lane.b32.xlu2 %v4440_v20, %s4662_s22 }
 0xd96   :  { %4443 = vtanh.f32 %v6063_v31 }
 0xd9a   :  { %v4442_v16 = vpop.eup %4441 }
 0xd9b   :  { %2465 = vrot.lane.b32.xlu1 %v4442_v16, %s4662_s22 }
 0xd9c   :  { %v4444_v2 = vpop.eup %4443 }
 0xd9d   :  { %2650 = vrot.lane.b32.xlu2 %v4444_v2, %s4662_s22 }
 0xda0   :  { %v2645_v33 = vpop.permute.xlu2 %2644 }
 0xda1   :  { %v2656_v13 = vmul.f32 %v2645_v33, %v5930_v59 }
 0xda3   :  { %2713 = vrot.lane.b32.xlu1 %v2656_v13, %s4663_s23 }
 0xdbf   :  { %v2460_v49 = vpop.permute.xlu1 %2459 }
 0xdc0   :  { %v2471_v1 = vmul.f32 %v2460_v49, %v5943_v10  ;;  %v51_v10 = vld [vmem:[%s6597_s0 + $0xc0] sm:$0xff] }
 0xdc1   :  { %3924 = vmatmul.msk.f32.gmra.mxu0 %vm65_vm0, %v51_v10 }
 0xdc2   :  { %2664 = vrot.lane.b32.xlu0 %v2471_v1, %s4663_s23 }
 0xdc7   :  { %v2647_v56 = vpop.permute.xlu1 %2646 }
 0xdc8   :  { %v2657_v39 = vmul.f32 %v2647_v56, %v5950_v61 }
 0xdc9   :  { %3925 = vmatmul.msk.f32.gmra.mxu0 %vm65_vm0, %v52_v5 }
 0xdca   :  { %2715 = vrot.lane.b32.xlu0 %v2657_v39, %s4663_s23 }
 0xde7   :  { %v2462_v21 = vpop.permute.xlu0 %2461 }
 0xde8   :  { %v2472_v25 = vmul.f32 %v2462_v21, %v5965_v24 }
 0xdea   :  { %2666 = vrot.lane.b32.xlu2 %v2472_v25, %s4663_s23 }
 0xdef   :  { %v2649_v52 = vpop.permute.xlu0 %2648  ;;  %v2464_v30 = vpop.permute.xlu2 %2463 }
 0xdf0   :  { %v2658_v59 = vmul.f32 %v2649_v52, %v5981_v57  ;;  %v2473_v8 = vmul.f32 %v2464_v30, %v5985_v62 }
 0xdf2   :  { %2717 = vrot.lane.b32.xlu2 %v2658_v59, %s4663_s23  ;;  %2668 = vrot.lane.b32.xlu1 %v2473_v8, %s4663_s23 }
 0xdf7   :  { %v2651_v61 = vpop.permute.xlu2 %2650 }
 0xdf8   :  { %v2659_v24 = vmul.f32 %v2651_v61, %v5995_v18  ;;  %v53_v18 = vld [vmem:[%s6597_s0 + $0xd0] sm:$0xff] }
 0xdf9   :  { %3926 = vmatmul.msk.f32.gmra.mxu0 %vm65_vm0, %v53_v18 }
 0xdfa   :  { %2719 = vrot.lane.b32.xlu1 %v2659_v24, %s4663_s23 }
 0xe0d   :  { %v2466_v27 = vpop.permute.xlu1 %2465 }
 0xe0e   :  { %v2474_v57 = vmul.f32 %v2466_v27, %v6001_v46 }
 0xe10   :  { %2670 = vrot.lane.b32.xlu0 %v2474_v57, %s4663_s23 }
 0xe15   :  { %v2714_v62 = vpop.permute.xlu1 %2713 }
 0xe16   :  { %4036 = vmatmul.msk.f32.vlgmr.msrb.gmra.mxu3 %vm293_vm6, %v2714_v62  ;;  %4044 = vmatmul.msk.f32.vlgmr.msra.gmra.mxu1 %vm293_vm6, %v2714_v62 }
 0xe17   :  { %3619 = vmatpush.msrb.mxu3 %v5860_v55 }
 0xe19   :  { %3620 = vmatpush.msrb.mxu3 %v5867_v0 }
 0xe1b   :  { %3621 = vmatpush.msrb.mxu3 %v5874_v12  ;;  %v54_v12 = vld [vmem:[%s6597_s0 + $0xd8] sm:$0xff] }
 0xe1c   :  { %3927 = vmatmul.msk.f32.gmra.mxu0 %vm65_vm0, %v54_v12 }
 0xe1d   :  { %3622 = vmatpush.msrb.mxu3 %v5881_v40 }
 0xe34   :  { %v6103_v46 = vpop.permute.xlu0 %2664 }
 0xe35   :  { %4032 = vmatmul.msk.f32.vlgmr.msrb.gmra.mxu2 %vm293_vm6, %v6103_v46 }
 0xe36   :  { %3570 = vmatpush.msrb.mxu2 %v5889_v42 }
 0xe38   :  { %3571 = vmatpush.msrb.mxu2 %v5895_v22 }
 0xe3a   :  { %3572 = vmatpush.msrb.mxu2 %v5901_v37 }
 0xe3c   :  { %v2716_v55 = vpop.permute.xlu0 %2715  ;;  %3573 = vmatpush.msrb.mxu2 %v5907_v32 }
 0xe3d   :  { %4037 = vmatmul.msk.f32.gmra.mxu3 %vm293_vm6, %v2716_v55  ;;  %4045 = vmatmul.msk.f32.gmra.mxu1 %vm293_vm6, %v2716_v55 }
 0xe3e   :  { %v251_v32 = vpop.f32.mrf.mxu0 }
 0xe3f   :  { %v252_v48 = vadd.f32 %v6136_v58, %v251_v32 }
 0xe44   :  { %v6113_v0 = vpop.permute.xlu2 %2666 }
 0xe45   :  { %4033 = vmatmul.msk.f32.gmra.mxu2 %vm293_vm6, %v6113_v0 }
 0xe46   :  { %v254_v30 = vpop.f32.mrf.mxu0 }
 0xe47   :  { %v255_v59 = vadd.f32 %v6136_v58, %v254_v30 }
 0xe4c   :  { %v2718_v40 = vpop.permute.xlu2 %2717 }
 0xe4d   :  { %4038 = vmatmul.msk.f32.gmra.mxu3 %vm293_vm6, %v2718_v40  ;;  %4046 = vmatmul.msk.f32.gmra.mxu1 %vm293_vm6, %v2718_v40 }
 0xe64   :  { %v6123_v42 = vpop.permute.xlu1 %2668 }
 0xe65   :  { %4034 = vmatmul.msk.f32.gmra.mxu2 %vm293_vm6, %v6123_v42 }
 0xe6c   :  { %v2720_v22 = vpop.permute.xlu1 %2719 }
 0xe6d   :  { %4039 = vmatmul.msk.f32.gmra.mxu3 %vm293_vm6, %v2720_v22  ;;  %4047 = vmatmul.msk.f32.gmra.mxu1 %vm293_vm6, %v2720_v22 }
 0xe76   :  { %v257_v18 = vpop.f32.mrf.mxu0 }
 0xe77   :  { %v258_v32 = vadd.f32 %v6136_v58, %v257_v18 }
 0xe82   :  { %v6129_v37 = vpop.permute.xlu0 %2670 }
 0xe83   :  { %4035 = vmatmul.msk.f32.gmra.mxu2 %vm293_vm6, %v6129_v37 }
 0xe93   :  { %v2931_v41 = vpop.f32.mrf.mxu1 }
 0xe94   :  { %v2943_v36 = vadd.f32 %v2931_v41, %v252_v48 }
 0xe96   :  { %v4048_v54 = vmul.f32 -1.442695, %v2943_v36 }
 0xe98   :  { %4445 = vpow2.f32 %v4048_v54 }
 0xe99   :  { %v2746_v8 = vpop.f32.mrf.mxu3 }
 0xe9e   :  { %v4446_v26 = vpop.eup %4445 }
 0xe9f   :  { %v2963_v38 = vadd.f32 1.0, %v4446_v26 }
 0xea1   :  { %4447 = vrcp.f32 %v2963_v38  ;;  %v2978_v33 = vand.u32 2147483648, %v2963_v38  ;;  %v2976_v49 = vand.u32 2147483647, %v2963_v38  ;;  %vm2972_vm12 = vweird.f32 %v2963_v38 }
 0xea2   :  { %4449 = vtanh.f32 %v2943_v36 }
 0xea3   :  { %v2979_v56 = vor.u32 1.1754944e-38, %v2978_v33  ;;  %vm2977_vm14 = vcmp.eq.f32.partialorder %v2976_v49, 8.507059e+37 }
 0xea7   :  { %v4448_v20 = vpop.eup %4447 }
 0xea8   :  { %v2968_v16 = vmul.f32 %v4448_v20, %v2963_v38  ;;  %vm2973_vm11 = vweird.f32 %v4448_v20  ;;  %v4450_v21 = vpop.eup %4449 }
 0xea9   :  { %vm2974_vm13 = vmor %vm2972_vm12, %vm2973_vm11 }
 0xeaa   :  { %v2969_v2 = vsub.f32 1.0, %v2968_v16 }
 0xeac   :  { %v2970_v13 = vmul.f32 %v4448_v20, %v2969_v2 }
 0xeae   :  { %v2971_v1 = vadd.f32 %v4448_v20, %v2970_v13 }
 0xeb0   :  { %v2975_v39 = vsel %vm2974_vm13, %v4448_v20, %v2971_v1 }
 0xeb1   :  { %v2980_v25 = vsel %vm2977_vm14, %v2979_v56, %v2975_v39 }
 0xeb2   :  { %v6141_v52 = vsel %vm4778_vm4, %v4450_v21, %v2980_v25 }
 0xeb3   :  { %3039 = vrot.lane.b32.xlu0 %v6141_v52, %s4662_s22 }
 0xeb8   :  { %v2697_v10 = vpop.f32.mrf.mxu2 }
 0xeb9   :  { %v2747_v61 = vadd.f32 %v2746_v8, %v2697_v10 }
 0xeba   :  { %v2934_v24 = vpop.f32.mrf.mxu1 }
 0xebb   :  { %v2758_v27 = vadd.f32 %v5938_v11, %v2747_v61  ;;  %v2944_v57 = vadd.f32 %v2934_v24, %v255_v59 }
 0xebd   :  { %v4040_v62 = vmul.f32 -1.442695, %v2758_v27  ;;  %v4049_v5 = vmul.f32 -1.442695, %v2944_v57 }
 0xebf   :  { %4451 = vpow2.f32 %v4040_v62 }
 0xec0   :  { %4453 = vpow2.f32 %v4049_v5  ;;  %v2749_v48 = vpop.f32.mrf.mxu3 }
 0xec5   :  { %v4452_v55 = vpop.eup %4451 }
 0xec6   :  { %v4454_v12 = vpop.eup %4453  ;;  %v2778_v40 = vadd.f32 1.0, %v4452_v55 }
 0xec7   :  { %v2964_v22 = vadd.f32 1.0, %v4454_v12 }
 0xec8   :  { %4455 = vrcp.f32 %v2778_v40  ;;  %v2700_v41 = vpop.f32.mrf.mxu2  ;;  %v2791_v56 = vand.u32 2147483647, %v2778_v40  ;;  %v2793_v39 = vand.u32 2147483648, %v2778_v40  ;;  %vm2787_vm1 = vweird.f32 %v2778_v40 }
 0xec9   :  { %4457 = vrcp.f32 %v2964_v22  ;;  %v2750_v36 = vadd.f32 %v2749_v48, %v2700_v41  ;;  %v2993_v12 = vand.u32 2147483648, %v2964_v22  ;;  %vm2987_vm7 = vweird.f32 %v2964_v22 }
 0xeca   :  { %v2937_v54 = vpop.f32.mrf.mxu1  ;;  %vm2792_vm3 = vcmp.eq.f32.partialorder %v2791_v56, 8.507059e+37  ;;  %v2794_v24 = vor.u32 1.1754944e-38, %v2793_v39 }
 0xecb   :  { %v2759_v26 = vadd.f32 %v5938_v11, %v2750_v36  ;;  %v6149_v38 = vadd.f32 %v2937_v54, %v258_v32  ;;  %v2994_v41 = vor.u32 1.1754944e-38, %v2993_v12 }
 0xecd   :  { %v4041_v20 = vmul.f32 -1.442695, %v2759_v26  ;;  %v4050_v16 = vmul.f32 -1.442695, %v6149_v38 }
 0xece   :  { %v4456_v2 = vpop.eup %4455 }
 0xecf   :  { %v4458_v33 = vpop.eup %4457  ;;  %4459 = vpow2.f32 %v4041_v20  ;;  %v2783_v13 = vmul.f32 %v4456_v2, %v2778_v40  ;;  %vm2788_vm15 = vweird.f32 %v4456_v2  ;;  %v2991_v40 = vand.u32 2147483647, %v2964_v22 }
 0xed0   :  { %4461 = vpow2.f32 %v4050_v16  ;;  %v2983_v49 = vmul.f32 %v4458_v33, %v2964_v22  ;;  %vm2789_vm2 = vmor %vm2787_vm1, %vm2788_vm15  ;;  %vm2988_vm5 = vweird.f32 %v4458_v33 }
 0xed1   :  { %v2784_v1 = vsub.f32 1.0, %v2783_v13  ;;  %4463 = vtanh.f32 %v2758_v27  ;;  %vm2989_vm8 = vmor %vm2987_vm7, %vm2988_vm5  ;;  %vm2992_vm9 = vcmp.eq.f32.partialorder %v2991_v40, 8.507059e+37 }
 0xed2   :  { %v2984_v21 = vsub.f32 1.0, %v2983_v49 }
 0xed3   :  { %v2785_v25 = vmul.f32 %v4456_v2, %v2784_v1  ;;  %v260_v1 = vpop.f32.mrf.mxu0 }
 0xed4   :  { %v2985_v30 = vmul.f32 %v4458_v33, %v2984_v21 }
 0xed5   :  { %v4460_v59 = vpop.eup %4459  ;;  %v2786_v8 = vadd.f32 %v4456_v2, %v2785_v25 }
 0xed6   :  { %v4462_v10 = vpop.eup %4461  ;;  %v2779_v61 = vadd.f32 1.0, %v4460_v59  ;;  %v2986_v18 = vadd.f32 %v4458_v33, %v2985_v30  ;;  %v261_v30 = vadd.f32 %v6136_v58, %v260_v1 }
 0xed7   :  { %v6152_v62 = vadd.f32 1.0, %v4462_v10  ;;  %v2790_v5 = vsel %vm2789_vm2, %v4456_v2, %v2786_v8  ;;  %v4464_v27 = vpop.eup %4463 }
 0xed8   :  { %4465 = vrcp.f32 %v2779_v61  ;;  %v2795_v55 = vsel %vm2792_vm3, %v2794_v24, %v2790_v5  ;;  %v2990_v48 = vsel %vm2989_vm8, %v4458_v33, %v2986_v18  ;;  %v2806_v39 = vand.u32 2147483647, %v2779_v61  ;;  %v2752_v24 = vpop.f32.mrf.mxu3 }
 0xed9   :  { %4467 = vrcp.f32 %v6152_v62  ;;  %v6157_v32 = vsel %vm4778_vm4, %v4464_v27, %v2795_v55  ;;  %v2995_v54 = vsel %vm2992_vm9, %v2994_v41, %v2990_v48  ;;  %vm2802_vm11 = vweird.f32 %v2779_v61 }
 0xeda   :  { %4469 = vtanh.f32 %v2944_v57  ;;  %2854 = vrot.lane.b32.xlu2 %v6157_v32, %s4662_s22  ;;  %v2808_v57 = vand.u32 2147483648, %v2779_v61  ;;  %vm2807_vm13 = vcmp.eq.f32.partialorder %v2806_v39, 8.507059e+37  ;;  %v3008_v27 = vand.u32 2147483648, %v6152_v62 }
 0xedb   :  { %4471 = vtanh.f32 %v2759_v26  ;;  %vm3002_vm15 = vweird.f32 %v6152_v62 }
 0xedc   :  { %v2809_v59 = vor.u32 1.1754944e-38, %v2808_v57  ;;  %4473 = vtanh.f32 %v6149_v38 }
 0xede   :  { %v4466_v36 = vpop.eup %4465 }
 0xedf   :  { %v4468_v20 = vpop.eup %4467  ;;  %v2798_v16 = vmul.f32 %v4466_v36, %v2779_v61  ;;  %vm2803_vm10 = vweird.f32 %v4466_v36  ;;  %v3006_v61 = vand.u32 2147483647, %v6152_v62 }
 0xee0   :  { %v4470_v2 = vpop.eup %4469  ;;  %v2998_v13 = vmul.f32 %v4468_v20, %v6152_v62  ;;  %vm2804_vm12 = vmor %vm2802_vm11, %vm2803_vm10  ;;  %vm3003_vm14 = vweird.f32 %v4468_v20 }
 0xee1   :  { %v6164_v49 = vsel %vm4778_vm4, %v4470_v2, %v2995_v54  ;;  %v2799_v22 = vsub.f32 1.0, %v2798_v16  ;;  %v4472_v26 = vpop.eup %4471  ;;  %vm3004_vm1 = vmor %vm3002_vm15, %vm3003_vm14  ;;  %v3009_v54 = vor.u32 1.1754944e-38, %v3008_v27  ;;  %vm3007_vm2 = vcmp.eq.f32.partialorder %v3006_v61, 8.507059e+37 }
 0xee2   :  { %3041 = vrot.lane.b32.xlu2 %v6164_v49, %s4662_s22  ;;  %v2999_v33 = vsub.f32 1.0, %v2998_v13 }
 0xee3   :  { %v2800_v56 = vmul.f32 %v4466_v36, %v2799_v22  ;;  %v4474_v22 = vpop.eup %4473 }
 0xee4   :  { %v3000_v21 = vmul.f32 %v4468_v20, %v2999_v33 }
 0xee5   :  { %v2801_v25 = vadd.f32 %v4466_v36, %v2800_v56 }
 0xee6   :  { %v3001_v10 = vadd.f32 %v4468_v20, %v3000_v21 }
 0xee7   :  { %v2805_v8 = vsel %vm2804_vm12, %v4466_v36, %v2801_v25 }
 0xee8   :  { %v2703_v5 = vpop.f32.mrf.mxu2  ;;  %v2810_v18 = vsel %vm2807_vm13, %v2809_v59, %v2805_v8  ;;  %v3005_v36 = vsel %vm3004_vm1, %v4468_v20, %v3001_v10 }
 0xee9   :  { %v2753_v55 = vadd.f32 %v2752_v24, %v2703_v5  ;;  %v6172_v12 = vsel %vm4778_vm4, %v4472_v26, %v2810_v18  ;;  %v3010_v13 = vsel %vm3007_vm2, %v3009_v54, %v3005_v36 }
 0xeea   :  { %2856 = vrot.lane.b32.xlu1 %v6172_v12, %s4662_s22  ;;  %v2940_v40 = vpop.f32.mrf.mxu1  ;;  %v6182_v38 = vsel %vm4778_vm4, %v4474_v22, %v3010_v13 }
 0xeeb   :  { %v2760_v48 = vadd.f32 %v5938_v11, %v2753_v55  ;;  %v2946_v41 = vadd.f32 %v2940_v40, %v261_v30 }
 0xeed   :  { %v4042_v16 = vmul.f32 -1.442695, %v2760_v48  ;;  %v4051_v2 = vmul.f32 -1.442695, %v2946_v41 }
 0xeef   :  { %4475 = vpow2.f32 %v4042_v16 }
 0xef0   :  { %4477 = vpow2.f32 %v4051_v2  ;;  %v2755_v5 = vpop.f32.mrf.mxu3 }
 0xef2   :  { %3043 = vrot.lane.b32.xlu1 %v6182_v38, %s4662_s22 }
 0xef5   :  { %v4476_v62 = vpop.eup %4475 }
 0xef6   :  { %v4478_v57 = vpop.eup %4477  ;;  %v2780_v33 = vadd.f32 1.0, %v4476_v62 }
 0xef7   :  { %v2966_v1 = vadd.f32 1.0, %v4478_v57 }
 0xef8   :  { %4479 = vrcp.f32 %v2780_v33  ;;  %v2821_v30 = vand.u32 2147483647, %v2780_v33  ;;  %v2823_v59 = vand.u32 2147483648, %v2780_v33  ;;  %vm2817_vm5 = vweird.f32 %v2780_v33 }
 0xef9   :  { %4481 = vrcp.f32 %v2966_v1  ;;  %vm3017_vm10 = vweird.f32 %v2966_v1  ;;  %v3021_v13 = vand.u32 2147483647, %v2966_v1 }
 0xefa   :  { %4483 = vtanh.f32 %v2760_v48  ;;  %vm2822_vm8 = vcmp.eq.f32.partialorder %v2821_v30, 8.507059e+37  ;;  %v2824_v27 = vor.u32 1.1754944e-38, %v2823_v59  ;;  %v3023_v48 = vand.u32 2147483648, %v2966_v1 }
 0xefb   :  { %4485 = vtanh.f32 %v2946_v41  ;;  %vm3022_vm12 = vcmp.eq.f32.partialorder %v3021_v13, 8.507059e+37 }
 0xefc   :  { %v3024_v57 = vor.u32 1.1754944e-38, %v3023_v48 }
 0xefe   :  { %v4480_v20 = vpop.eup %4479 }
 0xeff   :  { %v4482_v56 = vpop.eup %4481  ;;  %v2813_v39 = vmul.f32 %v4480_v20, %v2780_v33  ;;  %vm2818_vm3 = vweird.f32 %v4480_v20 }
 0xf00   :  { %v3013_v21 = vmul.f32 %v4482_v56, %v2966_v1  ;;  %vm2819_vm7 = vmor %vm2817_vm5, %vm2818_vm3  ;;  %vm3018_vm9 = vweird.f32 %v4482_v56  ;;  %v4484_v36 = vpop.eup %4483 }
 0xf01   :  { %v2814_v25 = vsub.f32 1.0, %v2813_v39  ;;  %vm3019_vm11 = vmor %vm3017_vm10, %vm3018_vm9 }
 0xf02   :  { %v3014_v8 = vsub.f32 1.0, %v3013_v21 }
 0xf03   :  { %v2815_v10 = vmul.f32 %v4480_v20, %v2814_v25 }
 0xf04   :  { %v3015_v26 = vmul.f32 %v4482_v56, %v3014_v8 }
 0xf05   :  { %v2816_v24 = vadd.f32 %v4480_v20, %v2815_v10 }
 0xf06   :  { %v2706_v18 = vpop.f32.mrf.mxu2  ;;  %v3016_v40 = vadd.f32 %v4482_v56, %v3015_v26 }
 0xf07   :  { %v2756_v55 = vadd.f32 %v2755_v5, %v2706_v18  ;;  %v2820_v61 = vsel %vm2819_vm7, %v4480_v20, %v2816_v24  ;;  %v4486_v20 = vpop.eup %4485 }
 0xf08   :  { %v2825_v54 = vsel %vm2822_vm8, %v2824_v27, %v2820_v61  ;;  %v3020_v62 = vsel %vm3019_vm11, %v4482_v56, %v3016_v40 }
 0xf09   :  { %v2761_v16 = vadd.f32 %v5938_v11, %v2756_v55  ;;  %v6189_v2 = vsel %vm4778_vm4, %v4484_v36, %v2825_v54  ;;  %v3025_v33 = vsel %vm3022_vm12, %v3024_v57, %v3020_v62 }
 0xf0a   :  { %2858 = vrot.lane.b32.xlu0 %v6189_v2, %s4662_s22  ;;  %v6195_v11 = vsel %vm4778_vm4, %v4486_v20, %v3025_v33 }
 0xf0b   :  { %v4043_v22 = vmul.f32 -1.442695, %v2761_v16 }
 0xf0d   :  { %4487 = vpow2.f32 %v4043_v22 }
 0xf12   :  { %3045 = vrot.lane.b32.xlu0 %v6195_v11, %s4662_s22 }
 0xf13   :  { %v4488_v1 = vpop.eup %4487 }
 0xf14   :  { %v2781_v41 = vadd.f32 1.0, %v4488_v1 }
 0xf16   :  { %4489 = vrcp.f32 %v2781_v41  ;;  %v2838_v56 = vand.u32 2147483648, %v2781_v41  ;;  %v2836_v59 = vand.u32 2147483647, %v2781_v41  ;;  %vm2832_vm14 = vweird.f32 %v2781_v41 }
 0xf17   :  { %4491 = vtanh.f32 %v2761_v16 }
 0xf18   :  { %v2839_v10 = vor.u32 1.1754944e-38, %v2838_v56  ;;  %vm2837_vm1 = vcmp.eq.f32.partialorder %v2836_v59, 8.507059e+37 }
 0xf1c   :  { %v4490_v39 = vpop.eup %4489 }
 0xf1d   :  { %v2828_v21 = vmul.f32 %v4490_v39, %v2781_v41  ;;  %vm2833_vm13 = vweird.f32 %v4490_v39  ;;  %v4492_v24 = vpop.eup %4491 }
 0xf1e   :  { %vm2834_vm15 = vmor %vm2832_vm14, %vm2833_vm13 }
 0xf1f   :  { %v2829_v25 = vsub.f32 1.0, %v2828_v21 }
 0xf21   :  { %v2830_v30 = vmul.f32 %v4490_v39, %v2829_v25 }
 0xf23   :  { %v2831_v8 = vadd.f32 %v4490_v39, %v2830_v30  ;;  %v2846_v30 = vmul.f32 %v6157_v32, %v6028_v28  ;;  %v2847_v28 = vmul.f32 %v6172_v12, %v6041_v53  ;;  %v3034_v53 = vmul.f32 %v6195_v11, %v6063_v31 }
 0xf25   :  { %v2835_v26 = vsel %vm2834_vm15, %v4490_v39, %v2831_v8  ;;  %v3040_v27 = vpop.permute.xlu0 %3039  ;;  %v3031_v39 = vmul.f32 %v6141_v52, %v6023_v19 }
 0xf26   :  { %v2840_v5 = vsel %vm2837_vm1, %v2839_v10, %v2835_v26  ;;  %v3051_v55 = vmul.f32 %v3040_v27, %v6141_v52  ;;  %v3032_v10 = vmul.f32 %v6164_v49, %v6034_v7  ;;  %v3033_v7 = vmul.f32 %v6182_v38, %v6046_v50 }
 0xf27   :  { %v6201_v18 = vsel %vm4778_vm4, %v4492_v24, %v2840_v5 }
 0xf28   :  { %2860 = vrot.lane.b32.xlu2 %v6201_v18, %s4662_s22 }
 0xf30   :  { %3059 = vrot.lane.b32.xlu2 %v3051_v55, %s4663_s23 }
 0xf34   :  { %v2855_v61 = vpop.permute.xlu2 %2854 }
 0xf35   :  { %v2866_v40 = vmul.f32 %v2855_v61, %v6157_v32  ;;  %v2848_v61 = vmul.f32 %v6189_v2, %v6053_v9 }
 0xf37   :  { %2874 = vrot.lane.b32.xlu1 %v2866_v40, %s4663_s23 }
 0xf3c   :  { %v3042_v36 = vpop.permute.xlu2 %3041 }
 0xf3d   :  { %v3052_v54 = vmul.f32 %v3042_v36, %v6164_v49 }
 0xf3f   :  { %3061 = vrot.lane.b32.xlu1 %v3052_v54, %s4663_s23 }
 0xf5c   :  { %v2857_v48 = vpop.permute.xlu1 %2856 }
 0xf5d   :  { %v2867_v16 = vmul.f32 %v2857_v48, %v6172_v12 }
 0xf5f   :  { %2876 = vrot.lane.b32.xlu0 %v2867_v16, %s4663_s23 }
 0xf64   :  { %v3044_v13 = vpop.permute.xlu1 %3043 }
 0xf65   :  { %v3053_v22 = vmul.f32 %v3044_v13, %v6182_v38 }
 0xf67   :  { %3063 = vrot.lane.b32.xlu0 %v3053_v22, %s4663_s23 }
 0xf7c   :  { %v2859_v62 = vpop.permute.xlu0 %2858 }
 0xf7d   :  { %v2868_v57 = vmul.f32 %v2859_v62, %v6189_v2 }
 0xf7f   :  { %2878 = vrot.lane.b32.xlu2 %v2868_v57, %s4663_s23  ;;  %v2849_v57 = vmul.f32 %v6201_v18, %v6058_v60 }
 0xf82   :  { %v2861_v33 = vpop.permute.xlu2 %2860 }
 0xf83   :  { %v2869_v20 = vmul.f32 %v2861_v33, %v6201_v18 }
 0xf84   :  { %v3046_v1 = vpop.permute.xlu0 %3045 }
 0xf85   :  { %2880 = vrot.lane.b32.xlu1 %v2869_v20, %s4663_s23  ;;  %v3054_v41 = vmul.f32 %v3046_v1, %v6195_v11 }
 0xf87   :  { %3065 = vrot.lane.b32.xlu2 %v3054_v41, %s4663_s23 }
 0xf8a   :  { %v3060_v21 = vpop.permute.xlu2 %3059 }
 0xf8b   :  { %v6223_v25 = vadd.f32 %v3060_v21, %v3031_v39 }
 0xf8d   :  { %4493 = vtanh.f32 %v6223_v25 }
 0xf93   :  { %v4494_v56 = vpop.eup %4493 }
 0xf94   :  { %3083 = vrot.lane.b32.xlu1 %v4494_v56, %s4662_s22 }
 0xfa9   :  { %v2875_v59 = vpop.permute.xlu1 %2874 }
 0xfaa   :  { %v6229_v8 = vadd.f32 %v2875_v59, %v2846_v30 }
 0xfac   :  { %4495 = vtanh.f32 %v6229_v8 }
 0xfb1   :  { %v3062_v19 = vpop.permute.xlu1 %3061 }
 0xfb2   :  { %v4496_v26 = vpop.eup %4495  ;;  %v6234_v24 = vadd.f32 %v3062_v19, %v3032_v10  ;;  %v55_v19 = vld [vmem:[%s6597_s0 + $0xe0] sm:$0xff] }
 0xfb3   :  { %2898 = vrot.lane.b32.xlu0 %v4496_v26, %s4662_s22  ;;  %3928 = vmatmul.msk.f32.gmra.mxu0 %vm65_vm0, %v55_v19 }
 0xfb4   :  { %4497 = vtanh.f32 %v6234_v24 }
 0xfba   :  { %v4498_v5 = vpop.eup %4497 }
 0xfbb   :  { %3085 = vrot.lane.b32.xlu0 %v4498_v5, %s4662_s22 }
 0xfd1   :  { %v2877_v27 = vpop.permute.xlu0 %2876 }
 0xfd2   :  { %v6241_v55 = vadd.f32 %v2877_v27, %v2847_v28 }
 0xfd4   :  { %4499 = vtanh.f32 %v6241_v55 }
 0xfd9   :  { %v3064_v40 = vpop.permute.xlu0 %3063  ;;  %v2879_v36 = vpop.permute.xlu2 %2878 }
 0xfda   :  { %v4500_v54 = vpop.eup %4499  ;;  %v6248_v48 = vadd.f32 %v3064_v40, %v3033_v7  ;;  %v6250_v16 = vadd.f32 %v2879_v36, %v2848_v61  ;;  %v58_v61 = vld [vmem:[%s6597_s0 + $0xf8] sm:$0xff] }
 0xfdb   :  { %2900 = vrot.lane.b32.xlu2 %v4500_v54, %s4662_s22 }
 0xfdc   :  { %4501 = vtanh.f32 %v6248_v48 }
 0xfdd   :  { %4503 = vtanh.f32 %v6250_v16 }
 0xfe1   :  { %v3066_v50 = vpop.permute.xlu2 %3065 }
 0xfe2   :  { %v4502_v13 = vpop.eup %4501  ;;  %v6257_v22 = vadd.f32 %v3066_v50, %v3034_v53 }
 0xfe3   :  { %v4504_v9 = vpop.eup %4503  ;;  %3087 = vrot.lane.b32.xlu2 %v4502_v13, %s4662_s22 }
 0xfe4   :  { %4505 = vtanh.f32 %v6257_v22  ;;  %2902 = vrot.lane.b32.xlu1 %v4504_v9, %s4662_s22 }
 0xfea   :  { %v4506_v62 = vpop.eup %4505 }
 0xfec   :  { %3089 = vrot.lane.b32.xlu1 %v4506_v62, %s4662_s22 }
 0xff7   :  { %v2881_v33 = vpop.permute.xlu1 %2880 }
 0xff8   :  { %v6265_v20 = vadd.f32 %v2881_v33, %v2849_v57 }
 0xffa   :  { %4507 = vtanh.f32 %v6265_v20 }
0x1000   :  { %v4508_v31 = vpop.eup %4507 }
0x1001   :  { %2904 = vrot.lane.b32.xlu0 %v4508_v31, %s4662_s22 }
0x1006   :  { %v3084_v1 = vpop.permute.xlu1 %3083 }
0x1007   :  { %v3095_v41 = vmul.f32 %v3084_v1, %v6141_v52 }
0x1009   :  { %3152 = vrot.lane.b32.xlu0 %v3095_v41, %s4663_s23 }
0x1025   :  { %v2899_v39 = vpop.permute.xlu0 %2898 }
0x1026   :  { %v6272_v21 = vmul.f32 %v2899_v39, %v6157_v32 }
0x1028   :  { %3103 = vrot.lane.b32.xlu2 %v6272_v21, %s4663_s23 }
0x102d   :  { %v3086_v60 = vpop.permute.xlu0 %3085 }
0x102e   :  { %v3096_v56 = vmul.f32 %v3086_v60, %v6164_v49 }
0x1030   :  { %3154 = vrot.lane.b32.xlu2 %v3096_v56, %s4663_s23  ;;  %v263_v50 = vpop.f32.mrf.mxu0 }
0x1031   :  { %v264_v13 = vadd.f32 %v6136_v58, %v263_v50 }
0x1035   :  { %v2901_v30 = vpop.permute.xlu2 %2900 }
0x1036   :  { %v6279_v59 = vmul.f32 %v2901_v30, %v6172_v12 }
0x1038   :  { %3105 = vrot.lane.b32.xlu1 %v6279_v59, %s4663_s23 }
0x103d   :  { %v3088_v52 = vpop.permute.xlu2 %3087 }
0x103e   :  { %v3097_v10 = vmul.f32 %v3088_v52, %v6182_v38  ;;  %v56_v38 = vld [vmem:[%s6597_s0 + $0xe8] sm:$0xff]  ;;  %v6330_v52 = vld [vmem:[%s6603_s6] ss:$0 sm:$0xff]  ;;  %s4664_s6 = smov 96  }
0x103f   :  { %3929 = vmatmul.msk.f32.gmra.mxu0 %vm65_vm0, %v56_v38 }
0x1040   :  { %3156 = vrot.lane.b32.xlu1 %v3097_v10, %s4663_s23 }
0x1056   :  { %v2903_v32 = vpop.permute.xlu1 %2902 }
0x1057   :  { %v6289_v49 = vmul.f32 %v2903_v32, %v6189_v2 }
0x1059   :  { %3107 = vrot.lane.b32.xlu0 %v6289_v49, %s4663_s23 }
0x105e   :  { %v3090_v12 = vpop.permute.xlu1 %3089 }
0x105f   :  { %v3098_v26 = vmul.f32 %v3090_v12, %v6195_v11 }
0x1061   :  { %3158 = vrot.lane.b32.xlu0 %v3098_v26, %s4663_s23 }
0x1073   :  { %v2905_v5 = vpop.permute.xlu0 %2904 }
0x1074   :  { %v6301_v2 = vmul.f32 %v2905_v5, %v6201_v18  ;;  %v57_v18 = vld [vmem:[%s6597_s0 + $0xf0] sm:$0xff] }
0x1075   :  { %3930 = vmatmul.msk.f32.gmra.mxu0 %vm65_vm0, %v57_v18 }
0x1076   :  { %3109 = vrot.lane.b32.xlu2 %v6301_v2, %s4663_s23 }
0x107b   :  { %v3153_v28 = vpop.permute.xlu0 %3152 }
0x107c   :  { %4056 = vmatmul.msk.f32.vlgmr.msra.gmra.mxu3 %vm293_vm6, %v3153_v28  ;;  %4064 = vmatmul.msk.f32.vlgmr.msrb.gmra.mxu1 %vm293_vm6, %v3153_v28 }
0x107d   :  { %3931 = vmatmul.msk.f32.gmra.mxu0 %vm65_vm0, %v58_v61 }
0x1082   :  { %v3104_v11 = vpop.permute.xlu2 %3103 }
0x1083   :  { %4052 = vmatmul.msk.f32.vlgmr.msra.gmra.mxu2 %vm293_vm6, %v3104_v11 }
0x108a   :  { %v3155_v27 = vpop.permute.xlu2 %3154 }
0x108b   :  { %4057 = vmatmul.msk.f32.gmra.mxu3 %vm293_vm6, %v3155_v27  ;;  %4065 = vmatmul.msk.f32.gmra.mxu1 %vm293_vm6, %v3155_v27 }
0x10aa   :  { %v3106_v7 = vpop.permute.xlu1 %3105 }
0x10ab   :  { %4053 = vmatmul.msk.f32.gmra.mxu2 %vm293_vm6, %v3106_v7 }
0x10b2   :  { %v3157_v40 = vpop.permute.xlu1 %3156 }
0x10b3   :  { %4058 = vmatmul.msk.f32.gmra.mxu3 %vm293_vm6, %v3157_v40  ;;  %4066 = vmatmul.msk.f32.gmra.mxu1 %vm293_vm6, %v3157_v40 }
0x10bc   :  { %v266_v33 = vpop.f32.mrf.mxu0 }
0x10bd   :  { %v267_v41 = vadd.f32 %v6136_v58, %v266_v33 }
0x10cb   :  { %v3108_v36 = vpop.permute.xlu0 %3107 }
0x10cc   :  { %4054 = vmatmul.msk.f32.gmra.mxu2 %vm293_vm6, %v3108_v36 }
0x10d0   :  { %v3110_v54 = vpop.permute.xlu2 %3109 }
0x10d3   :  { %v3159_v53 = vpop.permute.xlu0 %3158 }
0x10d4   :  { %4055 = vmatmul.msk.f32.gmra.mxu2 %vm293_vm6, %v3110_v54  ;;  %4059 = vmatmul.msk.f32.gmra.mxu3 %vm293_vm6, %v3159_v53 }
0x10d5   :  { %4067 = vmatmul.msk.f32.gmra.mxu1 %vm293_vm6, %v3159_v53 }
0x10f9   :  { %v3370_v9 = vpop.f32.mrf.mxu1 }
0x10fa   :  { %v3382_v62 = vadd.f32 %v3370_v9, %v264_v13 }
0x10fc   :  { %v4068_v57 = vmul.f32 -1.442695, %v3382_v62 }
0x10fe   :  { %4509 = vpow2.f32 %v4068_v57 }
0x10ff   :  { %v3185_v39 = vpop.f32.mrf.mxu3 }
0x1104   :  { %v4510_v31 = vpop.eup %4509 }
0x1105   :  { %v3402_v1 = vadd.f32 1.0, %v4510_v31 }
0x1106   :  { %v3136_v60 = vpop.f32.mrf.mxu2 }
0x1107   :  { %4511 = vrcp.f32 %v3402_v1  ;;  %v3186_v56 = vadd.f32 %v3185_v39, %v3136_v60  ;;  %v3417_v28 = vand.u32 2147483648, %v3402_v1  ;;  %v3415_v27 = vand.u32 2147483647, %v3402_v1 }
0x1108   :  { %v3373_v30 = vpop.f32.mrf.mxu1  ;;  %vm3411_vm2 = vweird.f32 %v3402_v1 }
0x1109   :  { %v3197_v10 = vadd.f32 %v6330_v52, %v3186_v56  ;;  %v3383_v32 = vadd.f32 %v3373_v30, %v267_v41  ;;  %v3418_v54 = vor.u32 1.1754944e-38, %v3417_v28  ;;  %vm3416_vm5 = vcmp.eq.f32.partialorder %v3415_v27, 8.507059e+37 }
0x110b   :  { %v4060_v19 = vmul.f32 -1.442695, %v3197_v10  ;;  %v4069_v12 = vmul.f32 -1.442695, %v3383_v32 }
0x110d   :  { %v4512_v26 = vpop.eup %4511  ;;  %4513 = vpow2.f32 %v4060_v19 }
0x110e   :  { %4515 = vpow2.f32 %v4069_v12  ;;  %v3407_v38 = vmul.f32 %v4512_v26, %v3402_v1  ;;  %vm3412_vm0 = vweird.f32 %v4512_v26 }
0x110f   :  { %4517 = vtanh.f32 %v3382_v62  ;;  %vm3413_vm3 = vmor %vm3411_vm2, %vm3412_vm0 }
0x1110   :  { %v3408_v5 = vsub.f32 1.0, %v3407_v38 }
0x1112   :  { %v3409_v11 = vmul.f32 %v4512_v26, %v3408_v5 }
0x1113   :  { %v4514_v18 = vpop.eup %4513 }
0x1114   :  { %v4516_v7 = vpop.eup %4515  ;;  %v3217_v61 = vadd.f32 1.0, %v4514_v18  ;;  %v3410_v40 = vadd.f32 %v4512_v26, %v3409_v11 }
0x1115   :  { %v3403_v36 = vadd.f32 1.0, %v4516_v7  ;;  %v4518_v50 = vpop.eup %4517  ;;  %v269_v7 = vpop.f32.mrf.mxu0 }
0x1116   :  { %4519 = vrcp.f32 %v3217_v61  ;;  %v3414_v53 = vsel %vm3413_vm3, %v4512_v26, %v3410_v40  ;;  %v3232_v41 = vand.u32 2147483648, %v3217_v61  ;;  %v3230_v56 = vand.u32 2147483647, %v3217_v61 }
0x1117   :  { %4521 = vrcp.f32 %v3403_v36  ;;  %v3419_v13 = vsel %vm3416_vm5, %v3418_v54, %v3414_v53  ;;  %vm3226_vm8 = vweird.f32 %v3217_v61  ;;  %v3432_v11 = vand.u32 2147483648, %v3403_v36 }
0x1118   :  { %v6335_v9 = vsel %vm4778_vm4, %v4518_v50, %v3419_v13  ;;  %4523 = vtanh.f32 %v3197_v10  ;;  %v3233_v12 = vor.u32 1.1754944e-38, %v3232_v41  ;;  %vm3231_vm10 = vcmp.eq.f32.partialorder %v3230_v56, 8.507059e+37  ;;  %v3188_v50 = vpop.f32.mrf.mxu3 }
0x1119   :  { %3478 = vrot.lane.b32.xlu2 %v6335_v9, %s4662_s22  ;;  %vm3426_vm12 = vweird.f32 %v3403_v36  ;;  %v3430_v27 = vand.u32 2147483647, %v3403_v36  ;;  %4525 = vtanh.f32 %v3383_v32  ;;  %v270_v54 = vadd.f32 %v6136_v58, %v269_v7 }
0x111b   :  { %vm3431_vm14 = vcmp.eq.f32.partialorder %v3430_v27, 8.507059e+37 }
0x111c   :  { %v4520_v62 = vpop.eup %4519 }
0x111d   :  { %v4522_v57 = vpop.eup %4521  ;;  %v3222_v33 = vmul.f32 %v4520_v62, %v3217_v61  ;;  %vm3227_vm7 = vweird.f32 %v4520_v62  ;;  %v3433_v61 = vor.u32 1.1754944e-38, %v3432_v11 }
0x111e   :  { %v3422_v31 = vmul.f32 %v4522_v57, %v3403_v36  ;;  %vm3228_vm9 = vmor %vm3226_vm8, %vm3227_vm7  ;;  %vm3427_vm11 = vweird.f32 %v4522_v57  ;;  %v4524_v5 = vpop.eup %4523 }
0x111f   :  { %v3223_v1 = vsub.f32 1.0, %v3222_v33  ;;  %vm3428_vm13 = vmor %vm3426_vm12, %vm3427_vm11  ;;  %v4526_v53 = vpop.eup %4525 }
0x1120   :  { %v3423_v39 = vsub.f32 1.0, %v3422_v31 }
0x1121   :  { %v3224_v60 = vmul.f32 %v4520_v62, %v3223_v1 }
0x1122   :  { %v3424_v30 = vmul.f32 %v4522_v57, %v3423_v39 }
0x1123   :  { %v3225_v19 = vadd.f32 %v4520_v62, %v3224_v60 }
0x1124   :  { %v3425_v38 = vadd.f32 %v4522_v57, %v3424_v30 }
0x1125   :  { %v3229_v26 = vsel %vm3228_vm9, %v4520_v62, %v3225_v19 }
0x1126   :  { %v3234_v28 = vsel %vm3231_vm10, %v3233_v12, %v3229_v26  ;;  %v3429_v18 = vsel %vm3428_vm13, %v4522_v57, %v3425_v38 }
0x1127   :  { %v6341_v10 = vsel %vm4778_vm4, %v4524_v5, %v3234_v28  ;;  %v3434_v40 = vsel %vm3431_vm14, %v3433_v61, %v3429_v18  ;;  %v272_v61 = vpop.f32.mrf.mxu0 }
0x1128   :  { %3293 = vrot.lane.b32.xlu1 %v6341_v10, %s4662_s22  ;;  %v6348_v33 = vsel %vm4778_vm4, %v4526_v53, %v3434_v40 }
0x112e   :  { %v3139_v13 = vpop.f32.mrf.mxu2 }
0x112f   :  { %v3189_v62 = vadd.f32 %v3188_v50, %v3139_v13 }
0x1130   :  { %3480 = vrot.lane.b32.xlu1 %v6348_v33, %s4662_s22  ;;  %v3376_v32 = vpop.f32.mrf.mxu1 }
0x1131   :  { %v3198_v36 = vadd.f32 %v6330_v52, %v3189_v62  ;;  %v3384_v57 = vadd.f32 %v3376_v32, %v270_v54 }
0x1133   :  { %v4061_v31 = vmul.f32 -1.442695, %v3198_v36  ;;  %v4070_v1 = vmul.f32 -1.442695, %v3384_v57 }
0x1135   :  { %4527 = vpow2.f32 %v4061_v31 }
0x1136   :  { %4529 = vpow2.f32 %v4070_v1  ;;  %v3191_v32 = vpop.f32.mrf.mxu3 }
0x113b   :  { %v4528_v41 = vpop.eup %4527 }
0x113c   :  { %v4530_v39 = vpop.eup %4529  ;;  %v3218_v60 = vadd.f32 1.0, %v4528_v41 }
0x113d   :  { %v3404_v56 = vadd.f32 1.0, %v4530_v39 }
0x113e   :  { %4531 = vrcp.f32 %v3218_v60  ;;  %v3247_v5 = vand.u32 2147483648, %v3218_v60  ;;  %v3245_v27 = vand.u32 2147483647, %v3218_v60  ;;  %vm3241_vm1 = vweird.f32 %v3218_v60 }
0x113f   :  { %4533 = vrcp.f32 %v3404_v56  ;;  %v3447_v62 = vand.u32 2147483648, %v3404_v56  ;;  %vm3441_vm5 = vweird.f32 %v3404_v56  ;;  %v3445_v41 = vand.u32 2147483647, %v3404_v56 }
0x1140   :  { %4535 = vtanh.f32 %v3198_v36  ;;  %v3248_v40 = vor.u32 1.1754944e-38, %v3247_v5  ;;  %vm3246_vm2 = vcmp.eq.f32.partialorder %v3245_v27, 8.507059e+37  ;;  %v273_v36 = vadd.f32 %v6136_v58, %v272_v61 }
0x1141   :  { %4537 = vtanh.f32 %v3384_v57  ;;  %vm3446_vm8 = vcmp.eq.f32.partialorder %v3445_v41, 8.507059e+37 }
0x1144   :  { %v4532_v30 = vpop.eup %4531 }
0x1145   :  { %v4534_v19 = vpop.eup %4533  ;;  %v3237_v12 = vmul.f32 %v4532_v30, %v3218_v60  ;;  %vm3242_vm15 = vweird.f32 %v4532_v30 }
0x1146   :  { %v3437_v26 = vmul.f32 %v4534_v19, %v3404_v56  ;;  %vm3243_vm0 = vmor %vm3241_vm1, %vm3242_vm15  ;;  %vm3442_vm3 = vweird.f32 %v4534_v19  ;;  %v4536_v50 = vpop.eup %4535 }
0x1147   :  { %v3238_v38 = vsub.f32 1.0, %v3237_v12  ;;  %vm3443_vm7 = vmor %vm3441_vm5, %vm3442_vm3 }
0x1148   :  { %v3438_v28 = vsub.f32 1.0, %v3437_v26  ;;  %v3448_v26 = vor.u32 1.1754944e-38, %v3447_v62 }
0x1149   :  { %v3239_v11 = vmul.f32 %v4532_v30, %v3238_v38 }
0x114a   :  { %v3439_v18 = vmul.f32 %v4534_v19, %v3438_v28 }
0x114b   :  { %v3240_v7 = vadd.f32 %v4532_v30, %v3239_v11  ;;  %v4538_v11 = vpop.eup %4537 }
0x114c   :  { %v3440_v53 = vadd.f32 %v4534_v19, %v3439_v18 }
0x114d   :  { %v3244_v54 = vsel %vm3243_vm0, %v4532_v30, %v3240_v7 }
0x114e   :  { %v3249_v13 = vsel %vm3246_vm2, %v3248_v40, %v3244_v54  ;;  %v3444_v60 = vsel %vm3443_vm7, %v4534_v19, %v3440_v53 }
0x114f   :  { %v3142_v31 = vpop.f32.mrf.mxu2  ;;  %v6356_v1 = vsel %vm4778_vm4, %v4536_v50, %v3249_v13  ;;  %v3449_v5 = vsel %vm3446_vm8, %v3448_v26, %v3444_v60 }
0x1150   :  { %v3192_v39 = vadd.f32 %v3191_v32, %v3142_v31  ;;  %3295 = vrot.lane.b32.xlu0 %v6356_v1, %s4662_s22  ;;  %v6363_v27 = vsel %vm4778_vm4, %v4538_v11, %v3449_v5 }
0x1152   :  { %v3199_v30 = vadd.f32 %v6330_v52, %v3192_v39  ;;  %v3379_v12 = vpop.f32.mrf.mxu1 }
0x1153   :  { %v3385_v38 = vadd.f32 %v3379_v12, %v273_v36 }
0x1154   :  { %v4062_v58 = vmul.f32 -1.442695, %v3199_v30 }
0x1155   :  { %v4071_v28 = vmul.f32 -1.442695, %v3385_v38 }
0x1156   :  { %4539 = vpow2.f32 %v4062_v58 }
0x1157   :  { %4541 = vpow2.f32 %v4071_v28  ;;  %v3145_v56 = vpop.f32.mrf.mxu2  ;;  %v3194_v57 = vpop.f32.mrf.mxu3 }
0x1158   :  { %v3195_v18 = vadd.f32 %v3194_v57, %v3145_v56  ;;  %3482 = vrot.lane.b32.xlu0 %v6363_v27, %s4662_s22 }
0x115a   :  { %v3200_v19 = vadd.f32 %v6330_v52, %v3195_v18 }
0x115c   :  { %v4540_v7 = vpop.eup %4539  ;;  %v4063_v61 = vmul.f32 -1.442695, %v3200_v19 }
0x115d   :  { %v4542_v40 = vpop.eup %4541  ;;  %v3219_v54 = vadd.f32 1.0, %v4540_v7 }
0x115e   :  { %v3405_v53 = vadd.f32 1.0, %v4542_v40  ;;  %4543 = vpow2.f32 %v4063_v61 }
0x115f   :  { %4545 = vrcp.f32 %v3219_v54  ;;  %v3260_v39 = vand.u32 2147483647, %v3219_v54  ;;  %v3262_v60 = vand.u32 2147483648, %v3219_v54  ;;  %vm3256_vm10 = vweird.f32 %v3219_v54 }
0x1160   :  { %4547 = vrcp.f32 %v3405_v53  ;;  %vm3456_vm14 = vweird.f32 %v3405_v53 }
0x1161   :  { %vm3261_vm12 = vcmp.eq.f32.partialorder %v3260_v39, 8.507059e+37  ;;  %v3263_v11 = vor.u32 1.1754944e-38, %v3262_v60 }
0x1164   :  { %v4544_v50 = vpop.eup %4543 }
0x1165   :  { %v4546_v13 = vpop.eup %4545  ;;  %v3220_v62 = vadd.f32 1.0, %v4544_v50  ;;  %v3460_v50 = vand.u32 2147483647, %v3405_v53 }
0x1166   :  { %v4548_v32 = vpop.eup %4547  ;;  %v3252_v36 = vmul.f32 %v4546_v13, %v3219_v54  ;;  %vm3257_vm9 = vweird.f32 %v4546_v13 }
0x1167   :  { %4549 = vrcp.f32 %v3220_v62  ;;  %v3452_v31 = vmul.f32 %v4548_v32, %v3405_v53  ;;  %vm3258_vm11 = vmor %vm3256_vm10, %vm3257_vm9  ;;  %vm3457_vm13 = vweird.f32 %v4548_v32  ;;  %v3277_v54 = vand.u32 2147483648, %v3220_v62 }
0x1168   :  { %v3253_v41 = vsub.f32 1.0, %v3252_v36  ;;  %4551 = vtanh.f32 %v3199_v30  ;;  %v3462_v30 = vand.u32 2147483648, %v3405_v53  ;;  %vm3458_vm15 = vmor %vm3456_vm14, %vm3457_vm13  ;;  %vm3461_vm0 = vcmp.eq.f32.partialorder %v3460_v50, 8.507059e+37 }
0x1169   :  { %v3453_v12 = vsub.f32 1.0, %v3452_v31  ;;  %4553 = vtanh.f32 %v3385_v38  ;;  %vm3271_vm2 = vweird.f32 %v3220_v62 }
0x116a   :  { %v3254_v26 = vmul.f32 %v4546_v13, %v3253_v41  ;;  %4555 = vtanh.f32 %v3200_v19  ;;  %v3275_v41 = vand.u32 2147483647, %v3220_v62  ;;  %v3463_v38 = vor.u32 1.1754944e-38, %v3462_v30 }
0x116b   :  { %v3454_v58 = vmul.f32 %v4548_v32, %v3453_v12 }
0x116c   :  { %v3255_v5 = vadd.f32 %v4546_v13, %v3254_v26  ;;  %v3278_v26 = vor.u32 1.1754944e-38, %v3277_v54  ;;  %vm3276_vm5 = vcmp.eq.f32.partialorder %v3275_v41, 8.507059e+37 }
0x116d   :  { %v4550_v28 = vpop.eup %4549  ;;  %v3455_v57 = vadd.f32 %v4548_v32, %v3454_v58 }
0x116e   :  { %v3259_v56 = vsel %vm3258_vm11, %v4546_v13, %v3255_v5  ;;  %v3267_v18 = vmul.f32 %v4550_v28, %v3220_v62  ;;  %v4552_v7 = vpop.eup %4551  ;;  %vm3272_vm1 = vweird.f32 %v4550_v28 }
0x116f   :  { %v3264_v61 = vsel %vm3261_vm12, %v3263_v11, %v3259_v56  ;;  %v3459_v13 = vsel %vm3458_vm15, %v4548_v32, %v3455_v57  ;;  %v4554_v60 = vpop.eup %4553  ;;  %vm3273_vm3 = vmor %vm3271_vm2, %vm3272_vm1 }
0x1170   :  { %v6370_v40 = vsel %vm4778_vm4, %v4552_v7, %v3264_v61  ;;  %v3268_v36 = vsub.f32 1.0, %v3267_v18  ;;  %v3464_v12 = vsel %vm3461_vm0, %v3463_v38, %v3459_v13  ;;  %v4556_v19 = vpop.eup %4555 }
0x1171   :  { %3297 = vrot.lane.b32.xlu2 %v6370_v40, %s4662_s22  ;;  %v6376_v5 = vsel %vm4778_vm4, %v4554_v60, %v3464_v12 }
0x1172   :  { %v3269_v31 = vmul.f32 %v4550_v28, %v3268_v36 }
0x1173   :  { %v3479_v62 = vpop.permute.xlu2 %3478 }
0x1174   :  { %v3270_v39 = vadd.f32 %v4550_v28, %v3269_v31 }
0x1176   :  { %v3274_v53 = vsel %vm3273_vm3, %v4550_v28, %v3270_v39  ;;  %v3490_v28 = vmul.f32 %v3479_v62, %v6335_v9  ;;  %v3470_v39 = vmul.f32 %v6335_v9, %v6223_v25  ;;  %v3471_v62 = vmul.f32 %v6348_v33, %v6234_v24 }
0x1177   :  { %v3279_v58 = vsel %vm3276_vm5, %v3278_v26, %v3274_v53  ;;  %v3285_v53 = vmul.f32 %v6341_v10, %v6229_v8  ;;  %v3472_v24 = vmul.f32 %v6363_v27, %v6248_v48  ;;  %v3473_v48 = vmul.f32 %v6376_v5, %v6257_v22 }
0x1178   :  { %v6380_v32 = vsel %vm4778_vm4, %v4556_v19, %v3279_v58 }
0x1179   :  { %3484 = vrot.lane.b32.xlu2 %v6376_v5, %s4662_s22  ;;  %3299 = vrot.lane.b32.xlu1 %v6380_v32, %s4662_s22 }
0x1181   :  { %3498 = vrot.lane.b32.xlu1 %v3490_v28, %s4663_s23 }
0x119a   :  { %v3294_v11 = vpop.permute.xlu1 %3293 }
0x119b   :  { %v3305_v56 = vmul.f32 %v3294_v11, %v6341_v10 }
0x119d   :  { %3313 = vrot.lane.b32.xlu0 %v3305_v56, %s4663_s23  ;;  %v3286_v56 = vmul.f32 %v6356_v1, %v6241_v55  ;;  %v3287_v55 = vmul.f32 %v6370_v40, %v6250_v16  ;;  %v3288_v16 = vmul.f32 %v6380_v32, %v6265_v20 }
0x11a2   :  { %v3481_v57 = vpop.permute.xlu1 %3480 }
0x11a3   :  { %v3491_v18 = vmul.f32 %v3481_v57, %v6348_v33 }
0x11a5   :  { %3500 = vrot.lane.b32.xlu0 %v3491_v18, %s4663_s23 }
0x11c2   :  { %v3296_v7 = vpop.permute.xlu0 %3295 }
0x11c3   :  { %v3306_v61 = vmul.f32 %v3296_v7, %v6356_v1 }
0x11c5   :  { %3315 = vrot.lane.b32.xlu2 %v3306_v61, %s4663_s23 }
0x11ca   :  { %v3483_v30 = vpop.permute.xlu0 %3482 }
0x11cb   :  { %v3492_v50 = vmul.f32 %v3483_v30, %v6363_v27  ;;  %v3298_v36 = vpop.permute.xlu2 %3297 }
0x11cc   :  { %v3307_v54 = vmul.f32 %v3298_v36, %v6370_v40 }
0x11cd   :  { %3502 = vrot.lane.b32.xlu2 %v3492_v50, %s4663_s23 }
0x11ce   :  { %3317 = vrot.lane.b32.xlu1 %v3307_v54, %s4663_s23 }
0x11d3   :  { %v3485_v13 = vpop.permute.xlu2 %3484 }
0x11d4   :  { %v3493_v31 = vmul.f32 %v3485_v13, %v6376_v5 }
0x11d6   :  { %3504 = vrot.lane.b32.xlu1 %v3493_v31, %s4663_s23 }
0x11eb   :  { %v3300_v41 = vpop.permute.xlu1 %3299 }
0x11ec   :  { %v3308_v38 = vmul.f32 %v3300_v41, %v6380_v32 }
0x11ee   :  { %3319 = vrot.lane.b32.xlu0 %v3308_v38, %s4663_s23 }
0x11f3   :  { %v3499_v60 = vpop.permute.xlu1 %3498 }
0x11f4   :  { %v3510_v12 = vadd.f32 %v3499_v60, %v3470_v39 }
0x11f6   :  { %4557 = vtanh.f32 %v3510_v12 }
0x11fc   :  { %v4558_v26 = vpop.eup %4557 }
0x11fd   :  { %3522 = vrot.lane.b32.xlu0 %v4558_v26, %s4662_s22 }
0x120f   :  { %v3314_v19 = vpop.permute.xlu0 %3313 }
0x1210   :  { %v6407_v58 = vadd.f32 %v3314_v19, %v3285_v53 }
0x1212   :  { %4559 = vtanh.f32 %v6407_v58 }
0x1217   :  { %v3501_v28 = vpop.permute.xlu0 %3500 }
0x1218   :  { %v4560_v11 = vpop.eup %4559  ;;  %v3511_v25 = vadd.f32 %v3501_v28, %v3471_v62 }
0x1219   :  { %3337 = vrot.lane.b32.xlu2 %v4560_v11, %s4662_s22 }
0x121a   :  { %4561 = vtanh.f32 %v3511_v25 }
0x121f   :  { %v3316_v57 = vpop.permute.xlu2 %3315 }
0x1220   :  { %v4562_v18 = vpop.eup %4561  ;;  %v6415_v8 = vadd.f32 %v3316_v57, %v3286_v56 }
0x1221   :  { %3524 = vrot.lane.b32.xlu2 %v4562_v18, %s4662_s22 }
0x1222   :  { %4563 = vtanh.f32 %v6415_v8 }
0x1227   :  { %v3503_v7 = vpop.permute.xlu2 %3502 }
0x1228   :  { %v4564_v61 = vpop.eup %4563  ;;  %v3512_v30 = vadd.f32 %v3503_v7, %v3472_v24 }
0x1229   :  { %3339 = vrot.lane.b32.xlu1 %v4564_v61, %s4662_s22 }
0x122a   :  { %4565 = vtanh.f32 %v3512_v30 }
0x1230   :  { %v4566_v50 = vpop.eup %4565 }
0x1231   :  { %3526 = vrot.lane.b32.xlu1 %v4566_v50, %s4662_s22 }
0x1240   :  { %v3318_v36 = vpop.permute.xlu1 %3317 }
0x1241   :  { %v6425_v54 = vadd.f32 %v3318_v36, %v3287_v55 }
0x1243   :  { %4567 = vtanh.f32 %v6425_v54 }
0x1248   :  { %v3505_v13 = vpop.permute.xlu1 %3504 }
0x1249   :  { %v4568_v31 = vpop.eup %4567  ;;  %v3513_v41 = vadd.f32 %v3505_v13, %v3473_v48 }
0x124a   :  { %3341 = vrot.lane.b32.xlu0 %v4568_v31, %s4662_s22 }
0x124b   :  { %4569 = vtanh.f32 %v3513_v41 }
0x1251   :  { %v4570_v38 = vpop.eup %4569 }
0x1252   :  { %3528 = vrot.lane.b32.xlu0 %v4570_v38, %s4662_s22 }
0x1260   :  { %v3320_v39 = vpop.permute.xlu0 %3319 }
0x1261   :  { %v6434_v60 = vadd.f32 %v3320_v39, %v3288_v16 }
0x1263   :  { %4571 = vtanh.f32 %v6434_v60 }
0x1269   :  { %v4572_v12 = vpop.eup %4571 }
0x126a   :  { %3343 = vrot.lane.b32.xlu2 %v4572_v12, %s4662_s22 }
0x126f   :  { %v3523_v22 = vpop.permute.xlu0 %3522 }
0x1270   :  { %v3534_v26 = vmul.f32 %v3523_v22, %v6335_v9 }
0x1272   :  { %3591 = vrot.lane.b32.xlu2 %v3534_v26, %s4663_s23 }
0x1273   :  { %v3338_v53 = vpop.permute.xlu2 %3337 }
0x1274   :  { %v6441_v19 = vmul.f32 %v3338_v53, %v6341_v10 }
0x1276   :  { %3542 = vrot.lane.b32.xlu1 %v6441_v19, %s4663_s23 }
0x127b   :  { %v3525_v20 = vpop.permute.xlu2 %3524 }
0x127c   :  { %v3535_v62 = vmul.f32 %v3525_v20, %v6348_v33 }
0x127e   :  { %3593 = vrot.lane.b32.xlu1 %v3535_v62, %s4663_s23 }
0x129b   :  { %v3340_v28 = vpop.permute.xlu1 %3339 }
0x129c   :  { %v6448_v11 = vmul.f32 %v3340_v28, %v6356_v1 }
0x129e   :  { %3544 = vrot.lane.b32.xlu0 %v6448_v11, %s4663_s23 }
0x12a3   :  { %v3527_v9 = vpop.permute.xlu1 %3526 }
0x12a4   :  { %v3536_v25 = vmul.f32 %v3527_v9, %v6363_v27 }
0x12a6   :  { %3595 = vrot.lane.b32.xlu0 %v3536_v25, %s4663_s23 }
0x12bc   :  { %v3342_v10 = vpop.permute.xlu0 %3341 }
0x12bd   :  { %v6455_v56 = vmul.f32 %v3342_v10, %v6370_v40 }
0x12bf   :  { %3546 = vrot.lane.b32.xlu2 %v6455_v56, %s4663_s23 }
0x12c4   :  { %v3529_v33 = vpop.permute.xlu0 %3528  ;;  %v3344_v57 = vpop.permute.xlu2 %3343 }
0x12c5   :  { %v3537_v1 = vmul.f32 %v3529_v33, %v6376_v5  ;;  %v6461_v18 = vmul.f32 %v3344_v57, %v6380_v32 }
0x12c7   :  { %3597 = vrot.lane.b32.xlu2 %v3537_v1, %s4663_s23  ;;  %3548 = vrot.lane.b32.xlu1 %v6461_v18, %s4663_s23 }
0x12cc   :  { %v3592_v27 = vpop.permute.xlu2 %3591 }
0x12cd   :  { %4076 = vmatmul.msk.f32.vlgmr.msrb.gmra.mxu3 %vm293_vm6, %v3592_v27 }
0x12e8   :  { %v3543_v40 = vpop.permute.xlu1 %3542 }
0x12e9   :  { %4072 = vmatmul.msk.f32.vlgmr.msrb.gmra.mxu2 %vm293_vm6, %v3543_v40 }
0x12f0   :  { %v3594_v24 = vpop.permute.xlu1 %3593 }
0x12f1   :  { %4077 = vmatmul.msk.f32.gmra.mxu3 %vm293_vm6, %v3594_v24 }
0x1310   :  { %v3545_v7 = vpop.permute.xlu0 %3544 }
0x1311   :  { %4073 = vmatmul.msk.f32.gmra.mxu2 %vm293_vm6, %v3545_v7 }
0x1318   :  { %v3596_v5 = vpop.permute.xlu0 %3595 }
0x1319   :  { %v3547_v32 = vpop.permute.xlu2 %3546  ;;  %4078 = vmatmul.msk.f32.gmra.mxu3 %vm293_vm6, %v3596_v5 }
0x131a   :  { %4074 = vmatmul.msk.f32.gmra.mxu2 %vm293_vm6, %v3547_v32 }
0x1321   :  { %v3598_v61 = vpop.permute.xlu2 %3597 }
0x1322   :  { %4079 = vmatmul.msk.f32.gmra.mxu3 %vm293_vm6, %v3598_v61 }
0x1339   :  { %v3549_v30 = vpop.permute.xlu1 %3548 }
0x133a   :  { %4075 = vmatmul.msk.f32.gmra.mxu2 %vm293_vm6, %v3549_v30 }
0x1350   :  { %v3624_v50 = vpop.f32.mrf.mxu3 }
0x136c   :  { %v3575_v55 = vpop.f32.mrf.mxu2 }
0x136d   :  { %v3625_v36 = vadd.f32 %v3624_v50, %v3575_v55 }
0x136f   :  { %v3636_v48 = vadd.f32 %v6330_v52, %v3625_v36 }
0x1371   :  { %v4080_v13 = vmul.f32 -1.442695, %v3636_v48 }
0x1373   :  { %4573 = vpow2.f32 %v4080_v13 }
0x1374   :  { %v3627_v10 = vpop.f32.mrf.mxu3 }
0x1379   :  { %v4574_v31 = vpop.eup %4573 }
0x137a   :  { %v3656_v41 = vadd.f32 1.0, %v4574_v31 }
0x137c   :  { %4575 = vrcp.f32 %v3656_v41  ;;  %v3671_v12 = vand.u32 2147483648, %v3656_v41  ;;  %v3669_v26 = vand.u32 2147483647, %v3656_v41  ;;  %vm3665_vm8 = vweird.f32 %v3656_v41 }
0x137d   :  { %4577 = vtanh.f32 %v3636_v48 }
0x137e   :  { %v3672_v20 = vor.u32 1.1754944e-38, %v3671_v12  ;;  %vm3670_vm10 = vcmp.eq.f32.partialorder %v3669_v26, 8.507059e+37 }
0x1382   :  { %v4576_v38 = vpop.eup %4575 }
0x1383   :  { %v3661_v16 = vmul.f32 %v4576_v38, %v3656_v41  ;;  %vm3666_vm7 = vweird.f32 %v4576_v38  ;;  %v4578_v28 = vpop.eup %4577 }
0x1384   :  { %vm3667_vm9 = vmor %vm3665_vm8, %vm3666_vm7 }
0x1385   :  { %v3662_v39 = vsub.f32 1.0, %v3661_v16 }
0x1387   :  { %v3663_v22 = vmul.f32 %v4576_v38, %v3662_v39 }
0x1389   :  { %v3664_v53 = vadd.f32 %v4576_v38, %v3663_v22 }
0x138b   :  { %v3668_v62 = vsel %vm3667_vm9, %v4576_v38, %v3664_v53  ;;  %vm3857_vm9 = vcmask 785408  }
0x138c   :  { %v3673_v9 = vsel %vm3670_vm10, %v3672_v20, %v3668_v62 }
0x138d   :  { %v6477_v25 = vsel %vm4778_vm4, %v4578_v28, %v3673_v9 }
0x138e   :  { %3732 = vrot.lane.b32.xlu0 %v6477_v25, %s4662_s22 }
0x1394   :  { %v3578_v33 = vpop.f32.mrf.mxu2 }
0x1395   :  { %v3628_v57 = vadd.f32 %v3627_v10, %v3578_v33 }
0x1397   :  { %v3637_v1 = vadd.f32 %v6330_v52, %v3628_v57 }
0x1399   :  { %v4081_v27 = vmul.f32 -1.442695, %v3637_v1 }
0x139b   :  { %4579 = vpow2.f32 %v4081_v27 }
0x139c   :  { %v3630_v40 = vpop.f32.mrf.mxu3 }
0x139d   :  { %v3581_v24 = vpop.f32.mrf.mxu2 }
0x139e   :  { %v3631_v7 = vadd.f32 %v3630_v40, %v3581_v24 }
0x13a0   :  { %v3638_v5 = vadd.f32 %v6330_v52, %v3631_v7 }
0x13a1   :  { %v4580_v32 = vpop.eup %4579 }
0x13a2   :  { %v3657_v61 = vadd.f32 1.0, %v4580_v32  ;;  %v4082_v30 = vmul.f32 -1.442695, %v3638_v5 }
0x13a4   :  { %4581 = vrcp.f32 %v3657_v61  ;;  %v3686_v31 = vand.u32 2147483648, %v3657_v61  ;;  %v3684_v38 = vand.u32 2147483647, %v3657_v61  ;;  %vm3680_vm12 = vweird.f32 %v3657_v61 }
0x13a5   :  { %4583 = vpow2.f32 %v4082_v30  ;;  %v3633_v27 = vpop.f32.mrf.mxu3 }
0x13a6   :  { %4585 = vtanh.f32 %v3637_v1  ;;  %v3687_v39 = vor.u32 1.1754944e-38, %v3686_v31  ;;  %vm3685_vm14 = vcmp.eq.f32.partialorder %v3684_v38, 8.507059e+37 }
0x13aa   :  { %v4582_v50 = vpop.eup %4581 }
0x13ab   :  { %v4584_v55 = vpop.eup %4583  ;;  %v3676_v36 = vmul.f32 %v4582_v50, %v3657_v61  ;;  %vm3681_vm11 = vweird.f32 %v4582_v50 }
0x13ac   :  { %v3658_v48 = vadd.f32 1.0, %v4584_v55  ;;  %vm3682_vm13 = vmor %vm3680_vm12, %vm3681_vm11  ;;  %v4586_v12 = vpop.eup %4585 }
0x13ad   :  { %v3677_v13 = vsub.f32 1.0, %v3676_v36 }
0x13ae   :  { %4587 = vrcp.f32 %v3658_v48  ;;  %v3701_v9 = vand.u32 2147483648, %v3658_v48  ;;  %v3699_v33 = vand.u32 2147483647, %v3658_v48  ;;  %vm3695_vm1 = vweird.f32 %v3658_v48 }
0x13af   :  { %v3678_v41 = vmul.f32 %v4582_v50, %v3677_v13  ;;  %4589 = vtanh.f32 %v3638_v5 }
0x13b0   :  { %v3702_v1 = vor.u32 1.1754944e-38, %v3701_v9  ;;  %vm3700_vm2 = vcmp.eq.f32.partialorder %v3699_v33, 8.507059e+37 }
0x13b1   :  { %v3679_v16 = vadd.f32 %v4582_v50, %v3678_v41 }
0x13b3   :  { %v3683_v22 = vsel %vm3682_vm13, %v4582_v50, %v3679_v16 }
0x13b4   :  { %v4588_v26 = vpop.eup %4587  ;;  %v3688_v53 = vsel %vm3685_vm14, %v3687_v39, %v3683_v22 }
0x13b5   :  { %v6485_v20 = vsel %vm4778_vm4, %v4586_v12, %v3688_v53  ;;  %v3691_v62 = vmul.f32 %v4588_v26, %v3658_v48  ;;  %vm3696_vm15 = vweird.f32 %v4588_v26  ;;  %v4590_v7 = vpop.eup %4589 }
0x13b6   :  { %3734 = vrot.lane.b32.xlu1 %v6485_v20, %s4662_s22  ;;  %vm3697_vm0 = vmor %vm3695_vm1, %vm3696_vm15 }
0x13b7   :  { %v3692_v28 = vsub.f32 1.0, %v3691_v62 }
0x13b9   :  { %v3693_v10 = vmul.f32 %v4588_v26, %v3692_v28 }
0x13bb   :  { %v3694_v57 = vadd.f32 %v4588_v26, %v3693_v10 }
0x13bd   :  { %v3584_v40 = vpop.f32.mrf.mxu2  ;;  %v3698_v24 = vsel %vm3697_vm0, %v4588_v26, %v3694_v57 }
0x13be   :  { %v3634_v32 = vadd.f32 %v3633_v27, %v3584_v40  ;;  %v3703_v61 = vsel %vm3700_vm2, %v3702_v1, %v3698_v24 }
0x13bf   :  { %v6491_v30 = vsel %vm4778_vm4, %v4590_v7, %v3703_v61 }
0x13c0   :  { %v3639_v5 = vadd.f32 %v6330_v52, %v3634_v32  ;;  %3736 = vrot.lane.b32.xlu2 %v6491_v30, %s4662_s22 }
0x13c2   :  { %v4083_v50 = vmul.f32 -1.442695, %v3639_v5 }
0x13c4   :  { %4591 = vpow2.f32 %v4083_v50 }
0x13ca   :  { %v4592_v55 = vpop.eup %4591 }
0x13cb   :  { %v3659_v36 = vadd.f32 1.0, %v4592_v55 }
0x13cd   :  { %4593 = vrcp.f32 %v3659_v36  ;;  %v3716_v41 = vand.u32 2147483648, %v3659_v36  ;;  %v3714_v16 = vand.u32 2147483647, %v3659_v36  ;;  %vm3710_vm5 = vweird.f32 %v3659_v36 }
0x13ce   :  { %4595 = vtanh.f32 %v3639_v5 }
0x13cf   :  { %v3717_v52 = vor.u32 1.1754944e-38, %v3716_v41  ;;  %vm3715_vm8 = vcmp.eq.f32.partialorder %v3714_v16, 8.507059e+37 }
0x13d3   :  { %v4594_v48 = vpop.eup %4593 }
0x13d4   :  { %v3706_v13 = vmul.f32 %v4594_v48, %v3659_v36  ;;  %vm3711_vm3 = vweird.f32 %v4594_v48  ;;  %v4596_v22 = vpop.eup %4595 }
0x13d5   :  { %vm3712_vm7 = vmor %vm3710_vm5, %vm3711_vm3 }
0x13d6   :  { %v3707_v31 = vsub.f32 1.0, %v3706_v13 }
0x13d8   :  { %v3708_v38 = vmul.f32 %v4594_v48, %v3707_v31 }
0x13da   :  { %v3709_v39 = vadd.f32 %v4594_v48, %v3708_v38 }
0x13dc   :  { %v3713_v12 = vsel %vm3712_vm7, %v4594_v48, %v3709_v39 }
0x13dd   :  { %v3718_v26 = vsel %vm3715_vm8, %v3717_v52, %v3713_v12 }
0x13de   :  { %v6498_v53 = vsel %vm4778_vm4, %v4596_v22, %v3718_v26  ;;  %vm3852_vm4 = vcmask 523264  }
0x13df   :  { %3738 = vrot.lane.b32.xlu0 %v6498_v53, %s4662_s22  ;;  %v3727_v50 = vmul.f32 %v6498_v53, %v6434_v60 }
0x1400   :  { %v3733_v62 = vpop.permute.xlu0 %3732 }
0x1401   :  { %v3744_v28 = vmul.f32 %v3733_v62, %v6477_v25 }
0x1403   :  { %3752 = vrot.lane.b32.xlu1 %v3744_v28, %s4663_s23 }
0x141a   :  { %v3737_v9 = vpop.permute.xlu2 %3736 }
0x141b   :  { %v3746_v10 = vmul.f32 %v3737_v9, %v6491_v30 }
0x141d   :  { %3756 = vrot.lane.b32.xlu0 %v3746_v10, %s4663_s23 }
0x1425   :  { %3796 = vrot.lane.b32.xlu0 %v5361_v44, %s4662_s22 }
0x1428   :  { %v3735_v33 = vpop.permute.xlu1 %3734 }
0x1429   :  { %v3745_v45 = vmul.f32 %v3735_v33, %v6485_v20 }
0x142b   :  { %3754 = vrot.lane.b32.xlu2 %v3745_v45, %s4663_s23 }
0x142d   :  { %3802 = vrot.lane.b32.xlu0 %v5384_v17, %s4662_s22  ;;  %v3724_v17 = vmul.f32 %v6477_v25, %v6407_v58 }
0x1433   :  { %3800 = vrot.lane.b32.xlu2 %v5379_v6, %s4662_s22 }
0x1435   :  { %3828 = vrot.lane.b32.xlu0 %v6289_v49, %s4662_s22 }
0x143b   :  { %3826 = vrot.lane.b32.xlu2 %v6279_v59, %s4662_s22 }
0x143d   :  { %3810 = vrot.lane.b32.xlu0 %v5612_v15, %s4664_s6 }
0x1443   :  { %3808 = vrot.lane.b32.xlu2 %v5605_v23, %s4664_s6 }
0x1445   :  { %3836 = vrot.lane.b32.xlu0 %v6441_v19, %s4664_s6 }
0x144b   :  { %3814 = vrot.lane.b32.xlu2 %v5628_v43, %s4664_s6 }
0x1451   :  { %v3739_v44 = vpop.permute.xlu0 %3738 }
0x1452   :  { %v3747_v6 = vmul.f32 %v3739_v44, %v6498_v53 }
0x1454   :  { %3758 = vrot.lane.b32.xlu1 %v3747_v6, %s4663_s23 }
0x145c   :  { %3798 = vrot.lane.b32.xlu1 %v5372_v47, %s4662_s22  ;;  %v3725_v47 = vmul.f32 %v6485_v20, %v6415_v8 }
0x1464   :  { %3824 = vrot.lane.b32.xlu1 %v6272_v21, %s4662_s22 }
0x146c   :  { %3830 = vrot.lane.b32.xlu1 %v6301_v2, %s4662_s22 }
0x1474   :  { %3812 = vrot.lane.b32.xlu1 %v5623_v14, %s4664_s6  ;;  %v3726_v14 = vmul.f32 %v6491_v30, %v6425_v54 }
0x1475   :  { %v3753_v23 = vpop.permute.xlu1 %3752 }
0x1476   :  { %v3764_v15 = vadd.f32 %v3753_v23, %v3724_v17 }
0x1478   :  { %4597 = vtanh.f32 %v3764_v15 }
0x147e   :  { %v4598_v43 = vpop.eup %4597 }
0x147f   :  { %3776 = vrot.lane.b32.xlu2 %v4598_v43, %s4662_s22 }
0x1485   :  { %v3755_v59 = vpop.permute.xlu2 %3754 }
0x1486   :  { %v3765_v21 = vadd.f32 %v3755_v59, %v3725_v47 }
0x1488   :  { %4599 = vtanh.f32 %v3765_v21 }
0x148d   :  { %v3801_v49 = vpop.permute.xlu2 %3800 }
0x148e   :  { %v4600_v2 = vpop.eup %4599 }
0x148f   :  { %v3757_v19 = vpop.permute.xlu0 %3756  ;;  %3778 = vrot.lane.b32.xlu0 %v4600_v2, %s4662_s22 }
0x1490   :  { %v3766_v58 = vadd.f32 %v3757_v19, %v3726_v14 }
0x1492   :  { %4601 = vtanh.f32 %v3766_v58 }
0x1495   :  { %v3827_v57 = vpop.permute.xlu2 %3826 }
0x1497   :  { %3842 = vrot.lane.b32.xlu0 %v6461_v18, %s4664_s6  ;;  %v3797_v27 = vpop.permute.xlu0 %3796 }
0x1498   :  { %v4602_v1 = vpop.eup %4601  ;;  %v3848_v8 = vsel %vm293_vm6, %v5164_v29, %v3797_v27 }
0x1499   :  { %3780 = vrot.lane.b32.xlu1 %v4602_v1, %s4662_s22 }
0x149d   :  { %v3809_v40 = vpop.permute.xlu2 %3808 }
0x149e   :  { %v3853_v54 = vsel %vm3852_vm4, %v3848_v8, %v3809_v40 }
0x149f   :  { %v3858_v24 = vsel %vm3857_vm9, %v3853_v54, %v5822_v3  ;;  %v3803_v18 = vpop.permute.xlu0 %3802 }
0x14a0   :  { %3874 = vst [vmem:[#allocation2] sm:$0xff] %v3858_v24  ;;  %v3851_v7 = vsel %vm293_vm6, %v5192_v4, %v3803_v18 }
0x14a1   :  { %3838 = vrot.lane.b32.xlu1 %v6448_v11, %s4664_s6 }
0x14a5   :  { %v3815_v32 = vpop.permute.xlu2 %3814 }
0x14a6   :  { %v3856_v61 = vsel %vm3852_vm4, %v3851_v7, %v3815_v32 }
0x14a7   :  { %v3861_v29 = vsel %vm3857_vm9, %v3856_v61, %v5847_v35  ;;  %v3829_v5 = vpop.permute.xlu0 %3828 }
0x14a8   :  { %3880 = vst [vmem:[#allocation2 + $0x30] sm:$0xff] %v3861_v29 }
0x14af   :  { %v3811_v48 = vpop.permute.xlu0 %3810 }
0x14b7   :  { %v3837_v38 = vpop.permute.xlu0 %3836 }
0x14c6   :  { %v3759_v3 = vpop.permute.xlu1 %3758 }
0x14c7   :  { %v3767_v55 = vadd.f32 %v3759_v3, %v3727_v50 }
0x14c9   :  { %4603 = vtanh.f32 %v3767_v55 }
0x14ce   :  { %v3799_v36 = vpop.permute.xlu1 %3798 }
0x14cf   :  { %v4604_v11 = vpop.eup %4603  ;;  %v3849_v4 = vsel %vm293_vm6, %v5182_v51, %v3799_v36 }
0x14d0   :  { %v3854_v13 = vsel %vm3852_vm4, %v3849_v4, %v3811_v48  ;;  %3782 = vrot.lane.b32.xlu2 %v4604_v11, %s4662_s22  ;;  %s4665_s22 = smov [#allocation2]  }
0x14d1   :  { %v3859_v35 = vsel %vm3857_vm9, %v3854_v13, %v5829_v34  ;;  %v3850_v34 = vsel %vm293_vm6, %v5186_v63, %v3801_v49  ;;  %s3886_s23 = sshll.u32 %s4665_s22, 4  ;;  %s3887_s23 = int_to_ptr.vmem [resolvable:$true] %s3886_s23 }
0x14d2   :  { %3876 = vst [vmem:[#allocation2 + $0x10] sm:$0xff] %v3859_v35 }
0x14d6   :  { %v3825_v31 = vpop.permute.xlu1 %3824 }
0x14d7   :  { %v3862_v60 = vsel %vm293_vm6, %v6103_v46, %v3825_v31  ;;  %v6613_v46 = vld [vmem:[#allocation5_spill] sm:$0xff] }
0x14d8   :  { %3840 = vrot.lane.b32.xlu2 %v6455_v56, %s4664_s6  ;;  %v3866_v51 = vsel %vm3852_vm4, %v3862_v60, %v3837_v38 }
0x14d9   :  { %v3777_v41 = vpop.permute.xlu2 %3776 }
0x14da   :  { %v3788_v16 = vmul.f32 %v3777_v41, %v6477_v25  ;;  %v3863_v25 = vsel %vm293_vm6, %v6113_v0, %v3827_v57  ;;  %v3864_v0 = vsel %vm293_vm6, %v6123_v42, %v3829_v5 }
0x14dc   :  { %v3870_v39 = vsel %vm3857_vm9, %v3866_v51, %v3788_v16 }
0x14dd   :  { %3875 = vst [vmem:[#allocation2 + $0x8] sm:$0xff] %v3870_v39 }
0x14de   :  { %v3831_v52 = vpop.permute.xlu1 %3830 }
0x14df   :  { %v3865_v44 = vsel %vm293_vm6, %v6129_v37, %v3831_v52 }
0x14e6   :  { %v3813_v12 = vpop.permute.xlu1 %3812 }
0x14e7   :  { %v3855_v22 = vsel %vm3852_vm4, %v3850_v34, %v3813_v12 }
0x14e8   :  { %v3860_v26 = vsel %vm3857_vm9, %v3855_v22, %v6613_v46 }
0x14e9   :  { %3878 = vst [vmem:[#allocation2 + $0x20] sm:$0xff] %v3860_v26 }
0x1501   :  { %v3779_v62 = vpop.permute.xlu0 %3778 }
0x1502   :  { %v3789_v28 = vmul.f32 %v3779_v62, %v6485_v20 }
0x1509   :  { %v3843_v63 = vpop.permute.xlu0 %3842 }
0x150a   :  { %v3869_v17 = vsel %vm3852_vm4, %v3865_v44, %v3843_v63 }
0x150b   :  { %v3781_v56 = vpop.permute.xlu1 %3780 }
0x150c   :  { %v3790_v20 = vmul.f32 %v3781_v56, %v6491_v30 }
0x1513   :  { %v3839_v9 = vpop.permute.xlu1 %3838 }
0x1514   :  { %v3867_v10 = vsel %vm3852_vm4, %v3863_v25, %v3839_v9 }
0x1515   :  { %v3871_v33 = vsel %vm3857_vm9, %v3867_v10, %v3789_v28 }
0x1516   :  { %3877 = vst [vmem:[#allocation2 + $0x18] sm:$0xff] %v3871_v33 }
0x152a   :  { %v3783_v45 = vpop.permute.xlu2 %3782 }
0x152b   :  { %v3791_v6 = vmul.f32 %v3783_v45, %v6498_v53 }
0x152d   :  { %v3873_v23 = vsel %vm3857_vm9, %v3869_v17, %v3791_v6 }
0x152e   :  { %3881 = vst [vmem:[#allocation2 + $0x38] sm:$0xff] %v3873_v23 }
0x1532   :  { %v3841_v15 = vpop.permute.xlu2 %3840 }
0x1533   :  { %v3868_v37 = vsel %vm3852_vm4, %v3864_v0, %v3841_v15 }
0x1534   :  { %v3872_v53 = vsel %vm3857_vm9, %v3868_v37, %v3790_v20 }
0x1535   :  { %3879 = vst [vmem:[#allocation2 + $0x28] sm:$0xff] %v3872_v53 }
0x1536   :  { %3894 = dma.vmem_to_hbm [thread:$0]  %s3887_s23, 1024, %s3889_s18, [#allocation3], %s4666_s19, %s4666_s19, %s4667_s20  }
0x1537   :  { %4659 = dma.done.wait [#allocation3], 1024  }
0x1538   :  { %4660 = vsyncadd [#allocation3], 4294966272 }
0x1539   :  { %3899 = vsyncpa [#allocation3], 1 }

</bundles_post_ra>
